<compile_context>
chip_gen: v6e
topology: v6e:2x2x1
jax: 0.10.0
libtpu: 0.0.40
codegen_flags: <defaults>
</compile_context>

<pallas_src>
import functools

import jax
import jax.numpy as jnp
from jax import lax
from jax.experimental import pallas as pl
from jax.experimental.pallas import tpu as pltpu


# ----------------------------------------------------------------------------
# Fused kernel: sqdist -> KNN -> gather -> [conv, InstanceNorm, leaky_relu] x L -> max over K
# ----------------------------------------------------------------------------
def _flow_embedding_kernel(pos1T_ref, pos2_ref, pos2T_ref, feat1T_ref, feat2T_ref,
                           *refs, nsample, num_layers, eps=1e-5, slope=0.1):
    o_ref = refs[-1]
    params = refs[:-1]           # [w0_posT, w0_f2T, w0_f1T, g0, b0, (wT_l, g_l, b_l) ...]

    pos1T = pos1T_ref[0]         # [3, N]   channels x query points
    pos2 = pos2_ref[0]           # [M, 3]
    pos2T = pos2T_ref[0]         # [3, M]
    feat1T = feat1T_ref[0]       # [C, N]
    feat2T = feat2T_ref[0]       # [C, M]
    n = pos1T.shape[1]
    m = pos2.shape[0]

    w0_posT = params[0][...]     # [C0, 3]
    w0_f2T = params[1][...]      # [C0, C]
    w0_f1T = params[2][...]      # [C0, C]
    acc_t = jnp.float32

    # ---- pairwise squared distance (transposed): distT[m, n] = ||pos1[n] - pos2[m]||^2
    #      cross term via 3 VPU broadcast FMAs instead of an MXU matmul with contraction 3.
    s1 = jnp.sum(pos1T * pos1T, axis=0, keepdims=True)                 # [1, N]
    s2 = jnp.sum(pos2 * pos2, axis=1, keepdims=True)                   # [M, 1]  (||p2||^2 in-kernel)
    crossT = (pos2[:, 0:1] * pos1T[0:1, :]
              + pos2[:, 1:2] * pos1T[1:2, :]
              + pos2[:, 2:3] * pos1T[2:3, :])                          # [M, N]
    distT = s2 + s1 - 2.0 * crossT                                     # [M, N]

    # ---- gather + first conv fused (conv is linear => commutes with one-hot gather)
    A = (jnp.dot(w0_posT, pos2T, preferred_element_type=acc_t)
         + jnp.dot(w0_f2T, feat2T, preferred_element_type=acc_t))      # [C0, M]
    base = (jnp.dot(w0_f1T, feat1T, preferred_element_type=acc_t)
            - jnp.dot(w0_posT, pos1T, preferred_element_type=acc_t))   # [C0, N]

    # ---- K-NN: iterative masked arg-min over the resident distance tile
    iota_m = lax.broadcasted_iota(jnp.int32, (m, n), 0).astype(jnp.float32)
    hs = []                                                            # K tiles of [C0, N]
    for _ in range(nsample):
        dmin = jnp.min(distT, axis=0, keepdims=True)                   # [1, N]
        cand = jnp.where(distT == dmin, iota_m, jnp.float32(m))
        amin = jnp.min(cand, axis=0, keepdims=True)                    # smallest-index tie-break
        sel_b = iota_m == amin                                         # one-hot column mask [M, N]
        sel = jnp.where(sel_b, jnp.float32(1.0), jnp.float32(0.0))
        # fused gather + layer-0 1x1 conv: one [C0,M] x [M,N] MXU matmul per neighbour
        hs.append(jnp.dot(A, sel, preferred_element_type=acc_t) + base)
        distT = jnp.where(sel_b, jnp.float32(1e30), distT)             # exclude for next k

    # ---- [1x1 conv -> InstanceNorm2d(affine=True) -> leaky_relu(0.1)] x L, then max over K
    inv_kn = 1.0 / float(nsample * n)
    p = 3
    for layer in range(num_layers):
        if layer > 0:
            wT = params[p][...]                                        # [C_l, C_{l-1}]
            p += 1
            hs = [jnp.dot(wT, h, preferred_element_type=acc_t) for h in hs]
        gamma = params[p][...]                                         # [C_l, 1]
        beta = params[p + 1][...]                                      # [C_l, 1]
        p += 2
        # per-(batch, channel) stats over the N*K spatial extent (lane reduces, accumulated over k)
        mean = sum(jnp.sum(h, axis=1, keepdims=True) for h in hs) * inv_kn
        cs = [h - mean for h in hs]
        var = sum(jnp.sum(c * c, axis=1, keepdims=True) for c in cs) * inv_kn
        scale = lax.rsqrt(var + eps) * gamma
        new_hs = []
        for c in cs:
            z = c * scale + beta
            new_hs.append(jnp.where(z >= 0.0, z, slope * z))
        hs = new_hs

    out = hs[0]
    for h in hs[1:]:
        out = jnp.maximum(out, h)
    o_ref[0] = out                                                     # [C_last, N] lane-dense


def flow_embedding_pallas(pos1T, pos2, pos2T, feat1T, feat2T, params, *,
                          nsample, num_layers, cout):
    B, _, N = pos1T.shape
    M = pos2.shape[1]
    C = feat1T.shape[1]
    in_specs = [
        pl.BlockSpec((1, 3, N), lambda b: (b, 0, 0)),
        pl.BlockSpec((1, M, 3), lambda b: (b, 0, 0)),
        pl.BlockSpec((1, 3, M), lambda b: (b, 0, 0)),
        pl.BlockSpec((1, C, N), lambda b: (b, 0, 0)),
        pl.BlockSpec((1, C, M), lambda b: (b, 0, 0)),
    ]
    args = [pos1T, pos2, pos2T, feat1T, feat2T]
    for prm in params:
        in_specs.append(pl.BlockSpec(prm.shape, lambda b: (0, 0)))     # params: loaded once, reused
        args.append(prm)
    kernel = functools.partial(_flow_embedding_kernel,
                               nsample=nsample, num_layers=num_layers)
    return pl.pallas_call(
        kernel,
        out_shape=jax.ShapeDtypeStruct((B, cout, N), jnp.float32),
        grid=(B,),
        in_specs=in_specs,
        out_specs=pl.BlockSpec((1, cout, N), lambda b: (b, 0, 0)),
        compiler_params=pltpu.CompilerParams(
            dimension_semantics=("parallel",),         # v7x: one batch per TensorCore
            vmem_limit_bytes=32 * 1024 * 1024,
        ),
    )(*args)


# ----------------------------------------------------------------------------
# Module wrapper (deterministic synthetic parameters)
# ----------------------------------------------------------------------------
class FlowEmbeddingPallas:
    def __init__(self, nsample, in_channel, mlp, key):
        self.nsample = nsample
        last = in_channel * 2 + 3            # corr_func == 'concat'
        self.weights, self.gammas, self.betas = [], [], []
        for out_c in mlp:
            kw, kg, kb, key = jax.random.split(key, 4)
            w = jax.random.normal(kw, (last, out_c), jnp.float32) / jnp.sqrt(float(last))
            g = 1.0 + 0.1 * jax.random.normal(kg, (out_c,), jnp.float32)
            b = 0.1 * jax.random.normal(kb, (out_c,), jnp.float32)
            self.weights.append(w)
            self.gammas.append(g)
            self.betas.append(b)
            last = out_c

    def __call__(self, pos1, pos2, feat1, feat2):
        # pos1, pos2: [B, N, 3]; feat1, feat2: [B, N, C]
        B, N, _ = pos1.shape
        C = feat1.shape[2]
        # channels-first copies (tiny layout plumbing so points sit on the lane axis in-kernel)
        pos1T = jnp.transpose(pos1, (0, 2, 1))     # [B, 3, N]
        pos2T = jnp.transpose(pos2, (0, 2, 1))     # [B, 3, M]
        feat1T = jnp.transpose(feat1, (0, 2, 1))   # [B, C, N]
        feat2T = jnp.transpose(feat2, (0, 2, 1))   # [B, C, M]
        # split the layer-0 weight by input-channel group [pos_diff(3) | feat2(C) | feat1(C)]
        # (matches torch.cat([pos_diff, feat2_grouped, feature1], dim=1) channel order)
        w0 = self.weights[0]
        params = [w0[0:3].T, w0[3:3 + C].T, w0[3 + C:3 + 2 * C].T,
                  self.gammas[0][:, None], self.betas[0][:, None]]
        for w, g, b in zip(self.weights[1:], self.gammas[1:], self.betas[1:]):
            params += [w.T, g[:, None], b[:, None]]
        out_cn = flow_embedding_pallas(
            pos1T, pos2, pos2T, feat1T, feat2T, params,
            nsample=self.nsample, num_layers=len(self.weights),
            cout=self.weights[-1].shape[1])
        return jnp.transpose(out_cn, (0, 2, 1))    # [B, N, mlp[-1]]


# ----------------------------------------------------------------------------
# Pure-JAX reference (same math, no Pallas) used for verification
# ----------------------------------------------------------------------------
def reference(module, pos1, pos2, feat1, feat2):
    B, N, _ = pos1.shape
    K = module.nsample
    diff = pos1[:, :, None, :] - pos2[:, None, :, :]
    dist = jnp.sum(diff * diff, axis=-1)                               # [B, N, M]
    _, idx = lax.top_k(-dist, K)
    idx_flat = idx.reshape(B, N * K)
    pos2_grp = jnp.take_along_axis(pos2, idx_flat[..., None], axis=1).reshape(B, N, K, 3)
    feat2_grp = jnp.take_along_axis(feat2, idx_flat[..., None], axis=1).reshape(B, N, K, -1)
    pos_diff = pos2_grp - pos1[:, :, None, :]
    feat1_rep = jnp.broadcast_to(feat1[:, :, None, :], feat2_grp.shape)
    h = jnp.concatenate([pos_diff, feat2_grp, feat1_rep], axis=-1)
    for w, g, bt in zip(module.weights, module.gammas, module.betas):
        y = jnp.einsum('bnkc,cd->bnkd', h, w, precision=lax.Precision.HIGHEST)
        mean = jnp.mean(y, axis=(1, 2), keepdims=True)
        var = jnp.mean((y - mean) ** 2, axis=(1, 2), keepdims=True)
        z = (y - mean) * lax.rsqrt(var + 1e-5) * g.reshape(1, 1, 1, -1) + bt.reshape(1, 1, 1, -1)
        h = jnp.where(z >= 0.0, z, 0.1 * z)
    return jnp.max(h, axis=2)                                          # [B, N, Cout]


if __name__ == "__main__":
    key = jax.random.PRNGKey(0)
    kp1, kp2, kf1, kf2, kparams = jax.random.split(key, 5)

    B, N, C, K = 2, 64, 4, 8
    mlp = [16, 16]

    pos1 = jax.random.normal(kp1, (B, N, 3), jnp.float32)
    pos2 = jax.random.normal(kp2, (B, N, 3), jnp.float32)
    feat1 = jax.random.normal(kf1, (B, N, C), jnp.float32)
    feat2 = jax.random.normal(kf2, (B, N, C), jnp.float32)

    module = FlowEmbeddingPallas(K, C, mlp, kparams)

    out = jax.block_until_ready(module(pos1, pos2, feat1, feat2))
    ref = jax.block_until_ready(reference(module, pos1, pos2, feat1, feat2))

    assert out.shape == (B, N, mlp[-1]), out.shape
    if not bool(jnp.allclose(out, ref, atol=2e-3, rtol=2e-3)):
        raise AssertionError("Pallas FlowEmbedding does not match reference")
    print("KERNEL_OK")
</pallas_src>

<mosaic_0001>
module attributes {stable_mosaic.version = 11 : i64} {
  func.func @_flow_embedding_kernel(%arg0: i32, %arg1: memref<1x3x64xf32, #tpu.memory_space<vmem>>, %arg2: memref<1x64x3xf32, #tpu.memory_space<vmem>>, %arg3: memref<1x3x64xf32, #tpu.memory_space<vmem>>, %arg4: memref<1x4x64xf32, #tpu.memory_space<vmem>>, %arg5: memref<1x4x64xf32, #tpu.memory_space<vmem>>, %arg6: memref<16x3xf32, #tpu.memory_space<vmem>>, %arg7: memref<16x4xf32, #tpu.memory_space<vmem>>, %arg8: memref<16x4xf32, #tpu.memory_space<vmem>>, %arg9: memref<16x1xf32, #tpu.memory_space<vmem>>, %arg10: memref<16x1xf32, #tpu.memory_space<vmem>>, %arg11: memref<16x16xf32, #tpu.memory_space<vmem>>, %arg12: memref<16x1xf32, #tpu.memory_space<vmem>>, %arg13: memref<16x1xf32, #tpu.memory_space<vmem>>, %arg14: memref<1x16x64xf32, #tpu.memory_space<vmem>>) attributes {dimension_semantics = [#tpu.dimension_semantics<parallel>], iteration_bounds = array<i64: 2>, scalar_prefetch = 0 : i64, scratch_operands = 0 : i64, tpu.core_type = #tpu.core_type<tc>, window_params = [{transform_indices = @transform_0, window_bounds = array<i64: 1, 3, 64>}, {transform_indices = @transform_1, window_bounds = array<i64: 1, 64, 3>}, {transform_indices = @transform_2, window_bounds = array<i64: 1, 3, 64>}, {transform_indices = @transform_3, window_bounds = array<i64: 1, 4, 64>}, {transform_indices = @transform_4, window_bounds = array<i64: 1, 4, 64>}, {pipeline_mode = #tpu.pipeline_mode<synchronous>, transform_indices = @transform_5, window_bounds = array<i64: 16, 3>}, {pipeline_mode = #tpu.pipeline_mode<synchronous>, transform_indices = @transform_6, window_bounds = array<i64: 16, 4>}, {pipeline_mode = #tpu.pipeline_mode<synchronous>, transform_indices = @transform_7, window_bounds = array<i64: 16, 4>}, {pipeline_mode = #tpu.pipeline_mode<synchronous>, transform_indices = @transform_8, window_bounds = array<i64: 16, 1>}, {pipeline_mode = #tpu.pipeline_mode<synchronous>, transform_indices = @transform_9, window_bounds = array<i64: 16, 1>}, {pipeline_mode = #tpu.pipeline_mode<synchronous>, transform_indices = @transform_10, window_bounds = array<i64: 16, 16>}, {pipeline_mode = #tpu.pipeline_mode<synchronous>, transform_indices = @transform_11, window_bounds = array<i64: 16, 1>}, {pipeline_mode = #tpu.pipeline_mode<synchronous>, transform_indices = @transform_12, window_bounds = array<i64: 16, 1>}, {transform_indices = @transform_13, window_bounds = array<i64: 1, 16, 64>}]} {
    %c0 = arith.constant 0 : index
    %c0_0 = arith.constant 0 : index
    %c0_1 = arith.constant 0 : index
    %0 = vector.load %arg1[%c0, %c0_0, %c0_1] : memref<1x3x64xf32, #tpu.memory_space<vmem>>, vector<1x3x64xf32>
    %1 = vector.shape_cast %0 : vector<1x3x64xf32> to vector<3x64xf32>
    %c0_2 = arith.constant 0 : index
    %c0_3 = arith.constant 0 : index
    %c0_4 = arith.constant 0 : index
    %2 = vector.load %arg2[%c0_2, %c0_3, %c0_4] : memref<1x64x3xf32, #tpu.memory_space<vmem>>, vector<1x64x3xf32>
    %3 = vector.shape_cast %2 : vector<1x64x3xf32> to vector<64x3xf32>
    %c0_5 = arith.constant 0 : index
    %c0_6 = arith.constant 0 : index
    %c0_7 = arith.constant 0 : index
    %4 = vector.load %arg3[%c0_5, %c0_6, %c0_7] : memref<1x3x64xf32, #tpu.memory_space<vmem>>, vector<1x3x64xf32>
    %5 = vector.shape_cast %4 : vector<1x3x64xf32> to vector<3x64xf32>
    %c0_8 = arith.constant 0 : index
    %c0_9 = arith.constant 0 : index
    %c0_10 = arith.constant 0 : index
    %6 = vector.load %arg4[%c0_8, %c0_9, %c0_10] : memref<1x4x64xf32, #tpu.memory_space<vmem>>, vector<1x4x64xf32>
    %7 = vector.shape_cast %6 : vector<1x4x64xf32> to vector<4x64xf32>
    %c0_11 = arith.constant 0 : index
    %c0_12 = arith.constant 0 : index
    %c0_13 = arith.constant 0 : index
    %8 = vector.load %arg5[%c0_11, %c0_12, %c0_13] : memref<1x4x64xf32, #tpu.memory_space<vmem>>, vector<1x4x64xf32>
    %9 = vector.shape_cast %8 : vector<1x4x64xf32> to vector<4x64xf32>
    %c0_14 = arith.constant 0 : index
    %c0_15 = arith.constant 0 : index
    %10 = vector.load %arg6[%c0_14, %c0_15] : memref<16x3xf32, #tpu.memory_space<vmem>>, vector<16x3xf32>
    %c0_16 = arith.constant 0 : index
    %c0_17 = arith.constant 0 : index
    %11 = vector.load %arg7[%c0_16, %c0_17] : memref<16x4xf32, #tpu.memory_space<vmem>>, vector<16x4xf32>
    %c0_18 = arith.constant 0 : index
    %c0_19 = arith.constant 0 : index
    %12 = vector.load %arg8[%c0_18, %c0_19] : memref<16x4xf32, #tpu.memory_space<vmem>>, vector<16x4xf32>
    %13 = arith.mulf %1, %1 : vector<3x64xf32>
    %cst = arith.constant dense<0.000000e+00> : vector<64xf32>
    %14 = vector.multi_reduction <add>, %13, %cst [0] : vector<3x64xf32> to vector<64xf32>
    %15 = vector.shape_cast %14 : vector<64xf32> to vector<1x64xf32>
    %16 = arith.mulf %3, %3 : vector<64x3xf32>
    %cst_20 = arith.constant dense<0.000000e+00> : vector<64xf32>
    %17 = vector.multi_reduction <add>, %16, %cst_20 [1] : vector<64x3xf32> to vector<64xf32>
    %18 = vector.shape_cast %17 : vector<64xf32> to vector<64x1xf32>
    %19 = vector.extract_strided_slice %3 {offsets = [0, 0], sizes = [64, 1], strides = [1, 1]} : vector<64x3xf32> to vector<64x1xf32>
    %20 = vector.extract_strided_slice %1 {offsets = [0, 0], sizes = [1, 64], strides = [1, 1]} : vector<3x64xf32> to vector<1x64xf32>
    %21 = vector.broadcast %19 : vector<64x1xf32> to vector<64x64xf32>
    %22 = vector.broadcast %20 : vector<1x64xf32> to vector<64x64xf32>
    %23 = arith.mulf %21, %22 : vector<64x64xf32>
    %24 = vector.extract_strided_slice %3 {offsets = [0, 1], sizes = [64, 1], strides = [1, 1]} : vector<64x3xf32> to vector<64x1xf32>
    %25 = vector.extract_strided_slice %1 {offsets = [1, 0], sizes = [1, 64], strides = [1, 1]} : vector<3x64xf32> to vector<1x64xf32>
    %26 = vector.broadcast %24 : vector<64x1xf32> to vector<64x64xf32>
    %27 = vector.broadcast %25 : vector<1x64xf32> to vector<64x64xf32>
    %28 = arith.mulf %26, %27 : vector<64x64xf32>
    %29 = arith.addf %23, %28 : vector<64x64xf32>
    %30 = vector.extract_strided_slice %3 {offsets = [0, 2], sizes = [64, 1], strides = [1, 1]} : vector<64x3xf32> to vector<64x1xf32>
    %31 = vector.extract_strided_slice %1 {offsets = [2, 0], sizes = [1, 64], strides = [1, 1]} : vector<3x64xf32> to vector<1x64xf32>
    %32 = vector.broadcast %30 : vector<64x1xf32> to vector<64x64xf32>
    %33 = vector.broadcast %31 : vector<1x64xf32> to vector<64x64xf32>
    %34 = arith.mulf %32, %33 : vector<64x64xf32>
    %35 = arith.addf %29, %34 : vector<64x64xf32>
    %36 = vector.broadcast %18 : vector<64x1xf32> to vector<64x64xf32>
    %37 = vector.broadcast %15 : vector<1x64xf32> to vector<64x64xf32>
    %38 = arith.addf %36, %37 : vector<64x64xf32>
    %cst_21 = arith.constant 2.000000e+00 : f32
    %39 = vector.broadcast %cst_21 : f32 to vector<64x64xf32>
    %40 = arith.mulf %39, %35 : vector<64x64xf32>
    %41 = arith.subf %38, %40 : vector<64x64xf32>
    %cst_22 = arith.constant dense<0.000000e+00> : vector<16x64xf32>
    %42 = tpu.matmul %10, %5, %cst_22 {dimension_numbers = #tpu.dot_dimension_numbers<[1], [0], [0], [1], [0, 0, 1, 1], [], []>} : vector<16x3xf32>, vector<3x64xf32>, vector<16x64xf32> -> vector<16x64xf32>
    %cst_23 = arith.constant dense<0.000000e+00> : vector<16x64xf32>
    %43 = tpu.matmul %11, %9, %cst_23 {dimension_numbers = #tpu.dot_dimension_numbers<[1], [0], [0], [1], [0, 0, 1, 1], [], []>} : vector<16x4xf32>, vector<4x64xf32>, vector<16x64xf32> -> vector<16x64xf32>
    %44 = arith.addf %42, %43 : vector<16x64xf32>
    %cst_24 = arith.constant dense<0.000000e+00> : vector<16x64xf32>
    %45 = tpu.matmul %12, %7, %cst_24 {dimension_numbers = #tpu.dot_dimension_numbers<[1], [0], [0], [1], [0, 0, 1, 1], [], []>} : vector<16x4xf32>, vector<4x64xf32>, vector<16x64xf32> -> vector<16x64xf32>
    %cst_25 = arith.constant dense<0.000000e+00> : vector<16x64xf32>
    %46 = tpu.matmul %10, %1, %cst_25 {dimension_numbers = #tpu.dot_dimension_numbers<[1], [0], [0], [1], [0, 0, 1, 1], [], []>} : vector<16x3xf32>, vector<3x64xf32>, vector<16x64xf32> -> vector<16x64xf32>
    %47 = arith.subf %45, %46 : vector<16x64xf32>
    %48 = tpu.iota {dimensions = array<i32: 0>} : vector<64x64xi32>
    %49 = arith.sitofp %48 : vector<64x64xi32> to vector<64x64xf32>
    %cst_26 = arith.constant dense<0x7F800000> : vector<64xf32>
    %50 = vector.multi_reduction <minimumf>, %41, %cst_26 [0] : vector<64x64xf32> to vector<64xf32>
    %51 = vector.shape_cast %50 : vector<64xf32> to vector<1x64xf32>
    %52 = vector.broadcast %51 : vector<1x64xf32> to vector<64x64xf32>
    %53 = arith.cmpf oeq, %41, %52 : vector<64x64xf32>
    %cst_27 = arith.constant 6.400000e+01 : f32
    %54 = vector.broadcast %cst_27 : f32 to vector<64x64xf32>
    %55 = arith.select %53, %49, %54 : vector<64x64xi1>, vector<64x64xf32>
    %cst_28 = arith.constant dense<0x7F800000> : vector<64xf32>
    %56 = vector.multi_reduction <minimumf>, %55, %cst_28 [0] : vector<64x64xf32> to vector<64xf32>
    %57 = vector.shape_cast %56 : vector<64xf32> to vector<1x64xf32>
    %58 = vector.broadcast %57 : vector<1x64xf32> to vector<64x64xf32>
    %59 = arith.cmpf oeq, %49, %58 : vector<64x64xf32>
    %cst_29 = arith.constant 1.000000e+00 : f32
    %cst_30 = arith.constant 0.000000e+00 : f32
    %60 = vector.broadcast %cst_29 : f32 to vector<64x64xf32>
    %61 = vector.broadcast %cst_30 : f32 to vector<64x64xf32>
    %62 = arith.select %59, %60, %61 : vector<64x64xi1>, vector<64x64xf32>
    %cst_31 = arith.constant dense<0.000000e+00> : vector<16x64xf32>
    %63 = tpu.matmul %44, %62, %cst_31 {dimension_numbers = #tpu.dot_dimension_numbers<[1], [0], [0], [1], [0, 0, 1, 1], [], []>} : vector<16x64xf32>, vector<64x64xf32>, vector<16x64xf32> -> vector<16x64xf32>
    %64 = arith.addf %63, %47 : vector<16x64xf32>
    %cst_32 = arith.constant 1.000000e+30 : f32
    %65 = vector.broadcast %cst_32 : f32 to vector<64x64xf32>
    %66 = arith.select %59, %65, %41 : vector<64x64xi1>, vector<64x64xf32>
    %cst_33 = arith.constant dense<0x7F800000> : vector<64xf32>
    %67 = vector.multi_reduction <minimumf>, %66, %cst_33 [0] : vector<64x64xf32> to vector<64xf32>
    %68 = vector.shape_cast %67 : vector<64xf32> to vector<1x64xf32>
    %69 = vector.broadcast %68 : vector<1x64xf32> to vector<64x64xf32>
    %70 = arith.cmpf oeq, %66, %69 : vector<64x64xf32>
    %cst_34 = arith.constant 6.400000e+01 : f32
    %71 = vector.broadcast %cst_34 : f32 to vector<64x64xf32>
    %72 = arith.select %70, %49, %71 : vector<64x64xi1>, vector<64x64xf32>
    %cst_35 = arith.constant dense<0x7F800000> : vector<64xf32>
    %73 = vector.multi_reduction <minimumf>, %72, %cst_35 [0] : vector<64x64xf32> to vector<64xf32>
    %74 = vector.shape_cast %73 : vector<64xf32> to vector<1x64xf32>
    %75 = vector.broadcast %74 : vector<1x64xf32> to vector<64x64xf32>
    %76 = arith.cmpf oeq, %49, %75 : vector<64x64xf32>
    %cst_36 = arith.constant 1.000000e+00 : f32
    %cst_37 = arith.constant 0.000000e+00 : f32
    %77 = vector.broadcast %cst_36 : f32 to vector<64x64xf32>
    %78 = vector.broadcast %cst_37 : f32 to vector<64x64xf32>
    %79 = arith.select %76, %77, %78 : vector<64x64xi1>, vector<64x64xf32>
    %cst_38 = arith.constant dense<0.000000e+00> : vector<16x64xf32>
    %80 = tpu.matmul %44, %79, %cst_38 {dimension_numbers = #tpu.dot_dimension_numbers<[1], [0], [0], [1], [0, 0, 1, 1], [], []>} : vector<16x64xf32>, vector<64x64xf32>, vector<16x64xf32> -> vector<16x64xf32>
    %81 = arith.addf %80, %47 : vector<16x64xf32>
    %cst_39 = arith.constant 1.000000e+30 : f32
    %82 = vector.broadcast %cst_39 : f32 to vector<64x64xf32>
    %83 = arith.select %76, %82, %66 : vector<64x64xi1>, vector<64x64xf32>
    %cst_40 = arith.constant dense<0x7F800000> : vector<64xf32>
    %84 = vector.multi_reduction <minimumf>, %83, %cst_40 [0] : vector<64x64xf32> to vector<64xf32>
    %85 = vector.shape_cast %84 : vector<64xf32> to vector<1x64xf32>
    %86 = vector.broadcast %85 : vector<1x64xf32> to vector<64x64xf32>
    %87 = arith.cmpf oeq, %83, %86 : vector<64x64xf32>
    %cst_41 = arith.constant 6.400000e+01 : f32
    %88 = vector.broadcast %cst_41 : f32 to vector<64x64xf32>
    %89 = arith.select %87, %49, %88 : vector<64x64xi1>, vector<64x64xf32>
    %cst_42 = arith.constant dense<0x7F800000> : vector<64xf32>
    %90 = vector.multi_reduction <minimumf>, %89, %cst_42 [0] : vector<64x64xf32> to vector<64xf32>
    %91 = vector.shape_cast %90 : vector<64xf32> to vector<1x64xf32>
    %92 = vector.broadcast %91 : vector<1x64xf32> to vector<64x64xf32>
    %93 = arith.cmpf oeq, %49, %92 : vector<64x64xf32>
    %cst_43 = arith.constant 1.000000e+00 : f32
    %cst_44 = arith.constant 0.000000e+00 : f32
    %94 = vector.broadcast %cst_43 : f32 to vector<64x64xf32>
    %95 = vector.broadcast %cst_44 : f32 to vector<64x64xf32>
    %96 = arith.select %93, %94, %95 : vector<64x64xi1>, vector<64x64xf32>
    %cst_45 = arith.constant dense<0.000000e+00> : vector<16x64xf32>
    %97 = tpu.matmul %44, %96, %cst_45 {dimension_numbers = #tpu.dot_dimension_numbers<[1], [0], [0], [1], [0, 0, 1, 1], [], []>} : vector<16x64xf32>, vector<64x64xf32>, vector<16x64xf32> -> vector<16x64xf32>
    %98 = arith.addf %97, %47 : vector<16x64xf32>
    %cst_46 = arith.constant 1.000000e+30 : f32
    %99 = vector.broadcast %cst_46 : f32 to vector<64x64xf32>
    %100 = arith.select %93, %99, %83 : vector<64x64xi1>, vector<64x64xf32>
    %cst_47 = arith.constant dense<0x7F800000> : vector<64xf32>
    %101 = vector.multi_reduction <minimumf>, %100, %cst_47 [0] : vector<64x64xf32> to vector<64xf32>
    %102 = vector.shape_cast %101 : vector<64xf32> to vector<1x64xf32>
    %103 = vector.broadcast %102 : vector<1x64xf32> to vector<64x64xf32>
    %104 = arith.cmpf oeq, %100, %103 : vector<64x64xf32>
    %cst_48 = arith.constant 6.400000e+01 : f32
    %105 = vector.broadcast %cst_48 : f32 to vector<64x64xf32>
    %106 = arith.select %104, %49, %105 : vector<64x64xi1>, vector<64x64xf32>
    %cst_49 = arith.constant dense<0x7F800000> : vector<64xf32>
    %107 = vector.multi_reduction <minimumf>, %106, %cst_49 [0] : vector<64x64xf32> to vector<64xf32>
    %108 = vector.shape_cast %107 : vector<64xf32> to vector<1x64xf32>
    %109 = vector.broadcast %108 : vector<1x64xf32> to vector<64x64xf32>
    %110 = arith.cmpf oeq, %49, %109 : vector<64x64xf32>
    %cst_50 = arith.constant 1.000000e+00 : f32
    %cst_51 = arith.constant 0.000000e+00 : f32
    %111 = vector.broadcast %cst_50 : f32 to vector<64x64xf32>
    %112 = vector.broadcast %cst_51 : f32 to vector<64x64xf32>
    %113 = arith.select %110, %111, %112 : vector<64x64xi1>, vector<64x64xf32>
    %cst_52 = arith.constant dense<0.000000e+00> : vector<16x64xf32>
    %114 = tpu.matmul %44, %113, %cst_52 {dimension_numbers = #tpu.dot_dimension_numbers<[1], [0], [0], [1], [0, 0, 1, 1], [], []>} : vector<16x64xf32>, vector<64x64xf32>, vector<16x64xf32> -> vector<16x64xf32>
    %115 = arith.addf %114, %47 : vector<16x64xf32>
    %cst_53 = arith.constant 1.000000e+30 : f32
    %116 = vector.broadcast %cst_53 : f32 to vector<64x64xf32>
    %117 = arith.select %110, %116, %100 : vector<64x64xi1>, vector<64x64xf32>
    %cst_54 = arith.constant dense<0x7F800000> : vector<64xf32>
    %118 = vector.multi_reduction <minimumf>, %117, %cst_54 [0] : vector<64x64xf32> to vector<64xf32>
    %119 = vector.shape_cast %118 : vector<64xf32> to vector<1x64xf32>
    %120 = vector.broadcast %119 : vector<1x64xf32> to vector<64x64xf32>
    %121 = arith.cmpf oeq, %117, %120 : vector<64x64xf32>
    %cst_55 = arith.constant 6.400000e+01 : f32
    %122 = vector.broadcast %cst_55 : f32 to vector<64x64xf32>
    %123 = arith.select %121, %49, %122 : vector<64x64xi1>, vector<64x64xf32>
    %cst_56 = arith.constant dense<0x7F800000> : vector<64xf32>
    %124 = vector.multi_reduction <minimumf>, %123, %cst_56 [0] : vector<64x64xf32> to vector<64xf32>
    %125 = vector.shape_cast %124 : vector<64xf32> to vector<1x64xf32>
    %126 = vector.broadcast %125 : vector<1x64xf32> to vector<64x64xf32>
    %127 = arith.cmpf oeq, %49, %126 : vector<64x64xf32>
    %cst_57 = arith.constant 1.000000e+00 : f32
    %cst_58 = arith.constant 0.000000e+00 : f32
    %128 = vector.broadcast %cst_57 : f32 to vector<64x64xf32>
    %129 = vector.broadcast %cst_58 : f32 to vector<64x64xf32>
    %130 = arith.select %127, %128, %129 : vector<64x64xi1>, vector<64x64xf32>
    %cst_59 = arith.constant dense<0.000000e+00> : vector<16x64xf32>
    %131 = tpu.matmul %44, %130, %cst_59 {dimension_numbers = #tpu.dot_dimension_numbers<[1], [0], [0], [1], [0, 0, 1, 1], [], []>} : vector<16x64xf32>, vector<64x64xf32>, vector<16x64xf32> -> vector<16x64xf32>
    %132 = arith.addf %131, %47 : vector<16x64xf32>
    %cst_60 = arith.constant 1.000000e+30 : f32
    %133 = vector.broadcast %cst_60 : f32 to vector<64x64xf32>
    %134 = arith.select %127, %133, %117 : vector<64x64xi1>, vector<64x64xf32>
    %cst_61 = arith.constant dense<0x7F800000> : vector<64xf32>
    %135 = vector.multi_reduction <minimumf>, %134, %cst_61 [0] : vector<64x64xf32> to vector<64xf32>
    %136 = vector.shape_cast %135 : vector<64xf32> to vector<1x64xf32>
    %137 = vector.broadcast %136 : vector<1x64xf32> to vector<64x64xf32>
    %138 = arith.cmpf oeq, %134, %137 : vector<64x64xf32>
    %cst_62 = arith.constant 6.400000e+01 : f32
    %139 = vector.broadcast %cst_62 : f32 to vector<64x64xf32>
    %140 = arith.select %138, %49, %139 : vector<64x64xi1>, vector<64x64xf32>
    %cst_63 = arith.constant dense<0x7F800000> : vector<64xf32>
    %141 = vector.multi_reduction <minimumf>, %140, %cst_63 [0] : vector<64x64xf32> to vector<64xf32>
    %142 = vector.shape_cast %141 : vector<64xf32> to vector<1x64xf32>
    %143 = vector.broadcast %142 : vector<1x64xf32> to vector<64x64xf32>
    %144 = arith.cmpf oeq, %49, %143 : vector<64x64xf32>
    %cst_64 = arith.constant 1.000000e+00 : f32
    %cst_65 = arith.constant 0.000000e+00 : f32
    %145 = vector.broadcast %cst_64 : f32 to vector<64x64xf32>
    %146 = vector.broadcast %cst_65 : f32 to vector<64x64xf32>
    %147 = arith.select %144, %145, %146 : vector<64x64xi1>, vector<64x64xf32>
    %cst_66 = arith.constant dense<0.000000e+00> : vector<16x64xf32>
    %148 = tpu.matmul %44, %147, %cst_66 {dimension_numbers = #tpu.dot_dimension_numbers<[1], [0], [0], [1], [0, 0, 1, 1], [], []>} : vector<16x64xf32>, vector<64x64xf32>, vector<16x64xf32> -> vector<16x64xf32>
    %149 = arith.addf %148, %47 : vector<16x64xf32>
    %cst_67 = arith.constant 1.000000e+30 : f32
    %150 = vector.broadcast %cst_67 : f32 to vector<64x64xf32>
    %151 = arith.select %144, %150, %134 : vector<64x64xi1>, vector<64x64xf32>
    %cst_68 = arith.constant dense<0x7F800000> : vector<64xf32>
    %152 = vector.multi_reduction <minimumf>, %151, %cst_68 [0] : vector<64x64xf32> to vector<64xf32>
    %153 = vector.shape_cast %152 : vector<64xf32> to vector<1x64xf32>
    %154 = vector.broadcast %153 : vector<1x64xf32> to vector<64x64xf32>
    %155 = arith.cmpf oeq, %151, %154 : vector<64x64xf32>
    %cst_69 = arith.constant 6.400000e+01 : f32
    %156 = vector.broadcast %cst_69 : f32 to vector<64x64xf32>
    %157 = arith.select %155, %49, %156 : vector<64x64xi1>, vector<64x64xf32>
    %cst_70 = arith.constant dense<0x7F800000> : vector<64xf32>
    %158 = vector.multi_reduction <minimumf>, %157, %cst_70 [0] : vector<64x64xf32> to vector<64xf32>
    %159 = vector.shape_cast %158 : vector<64xf32> to vector<1x64xf32>
    %160 = vector.broadcast %159 : vector<1x64xf32> to vector<64x64xf32>
    %161 = arith.cmpf oeq, %49, %160 : vector<64x64xf32>
    %cst_71 = arith.constant 1.000000e+00 : f32
    %cst_72 = arith.constant 0.000000e+00 : f32
    %162 = vector.broadcast %cst_71 : f32 to vector<64x64xf32>
    %163 = vector.broadcast %cst_72 : f32 to vector<64x64xf32>
    %164 = arith.select %161, %162, %163 : vector<64x64xi1>, vector<64x64xf32>
    %cst_73 = arith.constant dense<0.000000e+00> : vector<16x64xf32>
    %165 = tpu.matmul %44, %164, %cst_73 {dimension_numbers = #tpu.dot_dimension_numbers<[1], [0], [0], [1], [0, 0, 1, 1], [], []>} : vector<16x64xf32>, vector<64x64xf32>, vector<16x64xf32> -> vector<16x64xf32>
    %166 = arith.addf %165, %47 : vector<16x64xf32>
    %cst_74 = arith.constant 1.000000e+30 : f32
    %167 = vector.broadcast %cst_74 : f32 to vector<64x64xf32>
    %168 = arith.select %161, %167, %151 : vector<64x64xi1>, vector<64x64xf32>
    %cst_75 = arith.constant dense<0x7F800000> : vector<64xf32>
    %169 = vector.multi_reduction <minimumf>, %168, %cst_75 [0] : vector<64x64xf32> to vector<64xf32>
    %170 = vector.shape_cast %169 : vector<64xf32> to vector<1x64xf32>
    %171 = vector.broadcast %170 : vector<1x64xf32> to vector<64x64xf32>
    %172 = arith.cmpf oeq, %168, %171 : vector<64x64xf32>
    %cst_76 = arith.constant 6.400000e+01 : f32
    %173 = vector.broadcast %cst_76 : f32 to vector<64x64xf32>
    %174 = arith.select %172, %49, %173 : vector<64x64xi1>, vector<64x64xf32>
    %cst_77 = arith.constant dense<0x7F800000> : vector<64xf32>
    %175 = vector.multi_reduction <minimumf>, %174, %cst_77 [0] : vector<64x64xf32> to vector<64xf32>
    %176 = vector.shape_cast %175 : vector<64xf32> to vector<1x64xf32>
    %177 = vector.broadcast %176 : vector<1x64xf32> to vector<64x64xf32>
    %178 = arith.cmpf oeq, %49, %177 : vector<64x64xf32>
    %cst_78 = arith.constant 1.000000e+00 : f32
    %cst_79 = arith.constant 0.000000e+00 : f32
    %179 = vector.broadcast %cst_78 : f32 to vector<64x64xf32>
    %180 = vector.broadcast %cst_79 : f32 to vector<64x64xf32>
    %181 = arith.select %178, %179, %180 : vector<64x64xi1>, vector<64x64xf32>
    %cst_80 = arith.constant dense<0.000000e+00> : vector<16x64xf32>
    %182 = tpu.matmul %44, %181, %cst_80 {dimension_numbers = #tpu.dot_dimension_numbers<[1], [0], [0], [1], [0, 0, 1, 1], [], []>} : vector<16x64xf32>, vector<64x64xf32>, vector<16x64xf32> -> vector<16x64xf32>
    %183 = arith.addf %182, %47 : vector<16x64xf32>
    %c0_81 = arith.constant 0 : index
    %c0_82 = arith.constant 0 : index
    %184 = vector.load %arg9[%c0_81, %c0_82] : memref<16x1xf32, #tpu.memory_space<vmem>>, vector<16x1xf32>
    %c0_83 = arith.constant 0 : index
    %c0_84 = arith.constant 0 : index
    %185 = vector.load %arg10[%c0_83, %c0_84] : memref<16x1xf32, #tpu.memory_space<vmem>>, vector<16x1xf32>
    %cst_85 = arith.constant dense<0.000000e+00> : vector<16xf32>
    %186 = vector.multi_reduction <add>, %64, %cst_85 [1] : vector<16x64xf32> to vector<16xf32>
    %187 = vector.shape_cast %186 : vector<16xf32> to vector<16x1xf32>
    %cst_86 = arith.constant 0.000000e+00 : f32
    %188 = vector.broadcast %cst_86 : f32 to vector<16x1xf32>
    %189 = arith.addf %188, %187 : vector<16x1xf32>
    %cst_87 = arith.constant dense<0.000000e+00> : vector<16xf32>
    %190 = vector.multi_reduction <add>, %81, %cst_87 [1] : vector<16x64xf32> to vector<16xf32>
    %191 = vector.shape_cast %190 : vector<16xf32> to vector<16x1xf32>
    %192 = arith.addf %189, %191 : vector<16x1xf32>
    %cst_88 = arith.constant dense<0.000000e+00> : vector<16xf32>
    %193 = vector.multi_reduction <add>, %98, %cst_88 [1] : vector<16x64xf32> to vector<16xf32>
    %194 = vector.shape_cast %193 : vector<16xf32> to vector<16x1xf32>
    %195 = arith.addf %192, %194 : vector<16x1xf32>
    %cst_89 = arith.constant dense<0.000000e+00> : vector<16xf32>
    %196 = vector.multi_reduction <add>, %115, %cst_89 [1] : vector<16x64xf32> to vector<16xf32>
    %197 = vector.shape_cast %196 : vector<16xf32> to vector<16x1xf32>
    %198 = arith.addf %195, %197 : vector<16x1xf32>
    %cst_90 = arith.constant dense<0.000000e+00> : vector<16xf32>
    %199 = vector.multi_reduction <add>, %132, %cst_90 [1] : vector<16x64xf32> to vector<16xf32>
    %200 = vector.shape_cast %199 : vector<16xf32> to vector<16x1xf32>
    %201 = arith.addf %198, %200 : vector<16x1xf32>
    %cst_91 = arith.constant dense<0.000000e+00> : vector<16xf32>
    %202 = vector.multi_reduction <add>, %149, %cst_91 [1] : vector<16x64xf32> to vector<16xf32>
    %203 = vector.shape_cast %202 : vector<16xf32> to vector<16x1xf32>
    %204 = arith.addf %201, %203 : vector<16x1xf32>
    %cst_92 = arith.constant dense<0.000000e+00> : vector<16xf32>
    %205 = vector.multi_reduction <add>, %166, %cst_92 [1] : vector<16x64xf32> to vector<16xf32>
    %206 = vector.shape_cast %205 : vector<16xf32> to vector<16x1xf32>
    %207 = arith.addf %204, %206 : vector<16x1xf32>
    %cst_93 = arith.constant dense<0.000000e+00> : vector<16xf32>
    %208 = vector.multi_reduction <add>, %183, %cst_93 [1] : vector<16x64xf32> to vector<16xf32>
    %209 = vector.shape_cast %208 : vector<16xf32> to vector<16x1xf32>
    %210 = arith.addf %207, %209 : vector<16x1xf32>
    %cst_94 = arith.constant 0.001953125 : f32
    %211 = vector.broadcast %cst_94 : f32 to vector<16x1xf32>
    %212 = arith.mulf %210, %211 : vector<16x1xf32>
    %213 = vector.broadcast %212 : vector<16x1xf32> to vector<16x64xf32>
    %214 = arith.subf %64, %213 : vector<16x64xf32>
    %215 = vector.broadcast %212 : vector<16x1xf32> to vector<16x64xf32>
    %216 = arith.subf %81, %215 : vector<16x64xf32>
    %217 = vector.broadcast %212 : vector<16x1xf32> to vector<16x64xf32>
    %218 = arith.subf %98, %217 : vector<16x64xf32>
    %219 = vector.broadcast %212 : vector<16x1xf32> to vector<16x64xf32>
    %220 = arith.subf %115, %219 : vector<16x64xf32>
    %221 = vector.broadcast %212 : vector<16x1xf32> to vector<16x64xf32>
    %222 = arith.subf %132, %221 : vector<16x64xf32>
    %223 = vector.broadcast %212 : vector<16x1xf32> to vector<16x64xf32>
    %224 = arith.subf %149, %223 : vector<16x64xf32>
    %225 = vector.broadcast %212 : vector<16x1xf32> to vector<16x64xf32>
    %226 = arith.subf %166, %225 : vector<16x64xf32>
    %227 = vector.broadcast %212 : vector<16x1xf32> to vector<16x64xf32>
    %228 = arith.subf %183, %227 : vector<16x64xf32>
    %229 = arith.mulf %214, %214 : vector<16x64xf32>
    %cst_95 = arith.constant dense<0.000000e+00> : vector<16xf32>
    %230 = vector.multi_reduction <add>, %229, %cst_95 [1] : vector<16x64xf32> to vector<16xf32>
    %231 = vector.shape_cast %230 : vector<16xf32> to vector<16x1xf32>
    %cst_96 = arith.constant 0.000000e+00 : f32
    %232 = vector.broadcast %cst_96 : f32 to vector<16x1xf32>
    %233 = arith.addf %232, %231 : vector<16x1xf32>
    %234 = arith.mulf %216, %216 : vector<16x64xf32>
    %cst_97 = arith.constant dense<0.000000e+00> : vector<16xf32>
    %235 = vector.multi_reduction <add>, %234, %cst_97 [1] : vector<16x64xf32> to vector<16xf32>
    %236 = vector.shape_cast %235 : vector<16xf32> to vector<16x1xf32>
    %237 = arith.addf %233, %236 : vector<16x1xf32>
    %238 = arith.mulf %218, %218 : vector<16x64xf32>
    %cst_98 = arith.constant dense<0.000000e+00> : vector<16xf32>
    %239 = vector.multi_reduction <add>, %238, %cst_98 [1] : vector<16x64xf32> to vector<16xf32>
    %240 = vector.shape_cast %239 : vector<16xf32> to vector<16x1xf32>
    %241 = arith.addf %237, %240 : vector<16x1xf32>
    %242 = arith.mulf %220, %220 : vector<16x64xf32>
    %cst_99 = arith.constant dense<0.000000e+00> : vector<16xf32>
    %243 = vector.multi_reduction <add>, %242, %cst_99 [1] : vector<16x64xf32> to vector<16xf32>
    %244 = vector.shape_cast %243 : vector<16xf32> to vector<16x1xf32>
    %245 = arith.addf %241, %244 : vector<16x1xf32>
    %246 = arith.mulf %222, %222 : vector<16x64xf32>
    %cst_100 = arith.constant dense<0.000000e+00> : vector<16xf32>
    %247 = vector.multi_reduction <add>, %246, %cst_100 [1] : vector<16x64xf32> to vector<16xf32>
    %248 = vector.shape_cast %247 : vector<16xf32> to vector<16x1xf32>
    %249 = arith.addf %245, %248 : vector<16x1xf32>
    %250 = arith.mulf %224, %224 : vector<16x64xf32>
    %cst_101 = arith.constant dense<0.000000e+00> : vector<16xf32>
    %251 = vector.multi_reduction <add>, %250, %cst_101 [1] : vector<16x64xf32> to vector<16xf32>
    %252 = vector.shape_cast %251 : vector<16xf32> to vector<16x1xf32>
    %253 = arith.addf %249, %252 : vector<16x1xf32>
    %254 = arith.mulf %226, %226 : vector<16x64xf32>
    %cst_102 = arith.constant dense<0.000000e+00> : vector<16xf32>
    %255 = vector.multi_reduction <add>, %254, %cst_102 [1] : vector<16x64xf32> to vector<16xf32>
    %256 = vector.shape_cast %255 : vector<16xf32> to vector<16x1xf32>
    %257 = arith.addf %253, %256 : vector<16x1xf32>
    %258 = arith.mulf %228, %228 : vector<16x64xf32>
    %cst_103 = arith.constant dense<0.000000e+00> : vector<16xf32>
    %259 = vector.multi_reduction <add>, %258, %cst_103 [1] : vector<16x64xf32> to vector<16xf32>
    %260 = vector.shape_cast %259 : vector<16xf32> to vector<16x1xf32>
    %261 = arith.addf %257, %260 : vector<16x1xf32>
    %cst_104 = arith.constant 0.001953125 : f32
    %262 = vector.broadcast %cst_104 : f32 to vector<16x1xf32>
    %263 = arith.mulf %261, %262 : vector<16x1xf32>
    %cst_105 = arith.constant 9.99999974E-6 : f32
    %264 = vector.broadcast %cst_105 : f32 to vector<16x1xf32>
    %265 = arith.addf %263, %264 : vector<16x1xf32>
    %266 = math.rsqrt %265 : vector<16x1xf32>
    %267 = arith.mulf %266, %184 : vector<16x1xf32>
    %268 = vector.broadcast %267 : vector<16x1xf32> to vector<16x64xf32>
    %269 = arith.mulf %214, %268 : vector<16x64xf32>
    %270 = vector.broadcast %185 : vector<16x1xf32> to vector<16x64xf32>
    %271 = arith.addf %269, %270 : vector<16x64xf32>
    %cst_106 = arith.constant 0.000000e+00 : f32
    %272 = vector.broadcast %cst_106 : f32 to vector<16x64xf32>
    %273 = arith.cmpf oge, %271, %272 : vector<16x64xf32>
    %cst_107 = arith.constant 1.000000e-01 : f32
    %274 = vector.broadcast %cst_107 : f32 to vector<16x64xf32>
    %275 = arith.mulf %274, %271 : vector<16x64xf32>
    %276 = arith.select %273, %271, %275 : vector<16x64xi1>, vector<16x64xf32>
    %277 = vector.broadcast %267 : vector<16x1xf32> to vector<16x64xf32>
    %278 = arith.mulf %216, %277 : vector<16x64xf32>
    %279 = vector.broadcast %185 : vector<16x1xf32> to vector<16x64xf32>
    %280 = arith.addf %278, %279 : vector<16x64xf32>
    %cst_108 = arith.constant 0.000000e+00 : f32
    %281 = vector.broadcast %cst_108 : f32 to vector<16x64xf32>
    %282 = arith.cmpf oge, %280, %281 : vector<16x64xf32>
    %cst_109 = arith.constant 1.000000e-01 : f32
    %283 = vector.broadcast %cst_109 : f32 to vector<16x64xf32>
    %284 = arith.mulf %283, %280 : vector<16x64xf32>
    %285 = arith.select %282, %280, %284 : vector<16x64xi1>, vector<16x64xf32>
    %286 = vector.broadcast %267 : vector<16x1xf32> to vector<16x64xf32>
    %287 = arith.mulf %218, %286 : vector<16x64xf32>
    %288 = vector.broadcast %185 : vector<16x1xf32> to vector<16x64xf32>
    %289 = arith.addf %287, %288 : vector<16x64xf32>
    %cst_110 = arith.constant 0.000000e+00 : f32
    %290 = vector.broadcast %cst_110 : f32 to vector<16x64xf32>
    %291 = arith.cmpf oge, %289, %290 : vector<16x64xf32>
    %cst_111 = arith.constant 1.000000e-01 : f32
    %292 = vector.broadcast %cst_111 : f32 to vector<16x64xf32>
    %293 = arith.mulf %292, %289 : vector<16x64xf32>
    %294 = arith.select %291, %289, %293 : vector<16x64xi1>, vector<16x64xf32>
    %295 = vector.broadcast %267 : vector<16x1xf32> to vector<16x64xf32>
    %296 = arith.mulf %220, %295 : vector<16x64xf32>
    %297 = vector.broadcast %185 : vector<16x1xf32> to vector<16x64xf32>
    %298 = arith.addf %296, %297 : vector<16x64xf32>
    %cst_112 = arith.constant 0.000000e+00 : f32
    %299 = vector.broadcast %cst_112 : f32 to vector<16x64xf32>
    %300 = arith.cmpf oge, %298, %299 : vector<16x64xf32>
    %cst_113 = arith.constant 1.000000e-01 : f32
    %301 = vector.broadcast %cst_113 : f32 to vector<16x64xf32>
    %302 = arith.mulf %301, %298 : vector<16x64xf32>
    %303 = arith.select %300, %298, %302 : vector<16x64xi1>, vector<16x64xf32>
    %304 = vector.broadcast %267 : vector<16x1xf32> to vector<16x64xf32>
    %305 = arith.mulf %222, %304 : vector<16x64xf32>
    %306 = vector.broadcast %185 : vector<16x1xf32> to vector<16x64xf32>
    %307 = arith.addf %305, %306 : vector<16x64xf32>
    %cst_114 = arith.constant 0.000000e+00 : f32
    %308 = vector.broadcast %cst_114 : f32 to vector<16x64xf32>
    %309 = arith.cmpf oge, %307, %308 : vector<16x64xf32>
    %cst_115 = arith.constant 1.000000e-01 : f32
    %310 = vector.broadcast %cst_115 : f32 to vector<16x64xf32>
    %311 = arith.mulf %310, %307 : vector<16x64xf32>
    %312 = arith.select %309, %307, %311 : vector<16x64xi1>, vector<16x64xf32>
    %313 = vector.broadcast %267 : vector<16x1xf32> to vector<16x64xf32>
    %314 = arith.mulf %224, %313 : vector<16x64xf32>
    %315 = vector.broadcast %185 : vector<16x1xf32> to vector<16x64xf32>
    %316 = arith.addf %314, %315 : vector<16x64xf32>
    %cst_116 = arith.constant 0.000000e+00 : f32
    %317 = vector.broadcast %cst_116 : f32 to vector<16x64xf32>
    %318 = arith.cmpf oge, %316, %317 : vector<16x64xf32>
    %cst_117 = arith.constant 1.000000e-01 : f32
    %319 = vector.broadcast %cst_117 : f32 to vector<16x64xf32>
    %320 = arith.mulf %319, %316 : vector<16x64xf32>
    %321 = arith.select %318, %316, %320 : vector<16x64xi1>, vector<16x64xf32>
    %322 = vector.broadcast %267 : vector<16x1xf32> to vector<16x64xf32>
    %323 = arith.mulf %226, %322 : vector<16x64xf32>
    %324 = vector.broadcast %185 : vector<16x1xf32> to vector<16x64xf32>
    %325 = arith.addf %323, %324 : vector<16x64xf32>
    %cst_118 = arith.constant 0.000000e+00 : f32
    %326 = vector.broadcast %cst_118 : f32 to vector<16x64xf32>
    %327 = arith.cmpf oge, %325, %326 : vector<16x64xf32>
    %cst_119 = arith.constant 1.000000e-01 : f32
    %328 = vector.broadcast %cst_119 : f32 to vector<16x64xf32>
    %329 = arith.mulf %328, %325 : vector<16x64xf32>
    %330 = arith.select %327, %325, %329 : vector<16x64xi1>, vector<16x64xf32>
    %331 = vector.broadcast %267 : vector<16x1xf32> to vector<16x64xf32>
    %332 = arith.mulf %228, %331 : vector<16x64xf32>
    %333 = vector.broadcast %185 : vector<16x1xf32> to vector<16x64xf32>
    %334 = arith.addf %332, %333 : vector<16x64xf32>
    %cst_120 = arith.constant 0.000000e+00 : f32
    %335 = vector.broadcast %cst_120 : f32 to vector<16x64xf32>
    %336 = arith.cmpf oge, %334, %335 : vector<16x64xf32>
    %cst_121 = arith.constant 1.000000e-01 : f32
    %337 = vector.broadcast %cst_121 : f32 to vector<16x64xf32>
    %338 = arith.mulf %337, %334 : vector<16x64xf32>
    %339 = arith.select %336, %334, %338 : vector<16x64xi1>, vector<16x64xf32>
    %c0_122 = arith.constant 0 : index
    %c0_123 = arith.constant 0 : index
    %340 = vector.load %arg11[%c0_122, %c0_123] : memref<16x16xf32, #tpu.memory_space<vmem>>, vector<16x16xf32>
    %cst_124 = arith.constant dense<0.000000e+00> : vector<16x64xf32>
    %341 = tpu.matmul %340, %276, %cst_124 {dimension_numbers = #tpu.dot_dimension_numbers<[1], [0], [0], [1], [0, 0, 1, 1], [], []>} : vector<16x16xf32>, vector<16x64xf32>, vector<16x64xf32> -> vector<16x64xf32>
    %cst_125 = arith.constant dense<0.000000e+00> : vector<16x64xf32>
    %342 = tpu.matmul %340, %285, %cst_125 {dimension_numbers = #tpu.dot_dimension_numbers<[1], [0], [0], [1], [0, 0, 1, 1], [], []>} : vector<16x16xf32>, vector<16x64xf32>, vector<16x64xf32> -> vector<16x64xf32>
    %cst_126 = arith.constant dense<0.000000e+00> : vector<16x64xf32>
    %343 = tpu.matmul %340, %294, %cst_126 {dimension_numbers = #tpu.dot_dimension_numbers<[1], [0], [0], [1], [0, 0, 1, 1], [], []>} : vector<16x16xf32>, vector<16x64xf32>, vector<16x64xf32> -> vector<16x64xf32>
    %cst_127 = arith.constant dense<0.000000e+00> : vector<16x64xf32>
    %344 = tpu.matmul %340, %303, %cst_127 {dimension_numbers = #tpu.dot_dimension_numbers<[1], [0], [0], [1], [0, 0, 1, 1], [], []>} : vector<16x16xf32>, vector<16x64xf32>, vector<16x64xf32> -> vector<16x64xf32>
    %cst_128 = arith.constant dense<0.000000e+00> : vector<16x64xf32>
    %345 = tpu.matmul %340, %312, %cst_128 {dimension_numbers = #tpu.dot_dimension_numbers<[1], [0], [0], [1], [0, 0, 1, 1], [], []>} : vector<16x16xf32>, vector<16x64xf32>, vector<16x64xf32> -> vector<16x64xf32>
    %cst_129 = arith.constant dense<0.000000e+00> : vector<16x64xf32>
    %346 = tpu.matmul %340, %321, %cst_129 {dimension_numbers = #tpu.dot_dimension_numbers<[1], [0], [0], [1], [0, 0, 1, 1], [], []>} : vector<16x16xf32>, vector<16x64xf32>, vector<16x64xf32> -> vector<16x64xf32>
    %cst_130 = arith.constant dense<0.000000e+00> : vector<16x64xf32>
    %347 = tpu.matmul %340, %330, %cst_130 {dimension_numbers = #tpu.dot_dimension_numbers<[1], [0], [0], [1], [0, 0, 1, 1], [], []>} : vector<16x16xf32>, vector<16x64xf32>, vector<16x64xf32> -> vector<16x64xf32>
    %cst_131 = arith.constant dense<0.000000e+00> : vector<16x64xf32>
    %348 = tpu.matmul %340, %339, %cst_131 {dimension_numbers = #tpu.dot_dimension_numbers<[1], [0], [0], [1], [0, 0, 1, 1], [], []>} : vector<16x16xf32>, vector<16x64xf32>, vector<16x64xf32> -> vector<16x64xf32>
    %c0_132 = arith.constant 0 : index
    %c0_133 = arith.constant 0 : index
    %349 = vector.load %arg12[%c0_132, %c0_133] : memref<16x1xf32, #tpu.memory_space<vmem>>, vector<16x1xf32>
    %c0_134 = arith.constant 0 : index
    %c0_135 = arith.constant 0 : index
    %350 = vector.load %arg13[%c0_134, %c0_135] : memref<16x1xf32, #tpu.memory_space<vmem>>, vector<16x1xf32>
    %cst_136 = arith.constant dense<0.000000e+00> : vector<16xf32>
    %351 = vector.multi_reduction <add>, %341, %cst_136 [1] : vector<16x64xf32> to vector<16xf32>
    %352 = vector.shape_cast %351 : vector<16xf32> to vector<16x1xf32>
    %cst_137 = arith.constant 0.000000e+00 : f32
    %353 = vector.broadcast %cst_137 : f32 to vector<16x1xf32>
    %354 = arith.addf %353, %352 : vector<16x1xf32>
    %cst_138 = arith.constant dense<0.000000e+00> : vector<16xf32>
    %355 = vector.multi_reduction <add>, %342, %cst_138 [1] : vector<16x64xf32> to vector<16xf32>
    %356 = vector.shape_cast %355 : vector<16xf32> to vector<16x1xf32>
    %357 = arith.addf %354, %356 : vector<16x1xf32>
    %cst_139 = arith.constant dense<0.000000e+00> : vector<16xf32>
    %358 = vector.multi_reduction <add>, %343, %cst_139 [1] : vector<16x64xf32> to vector<16xf32>
    %359 = vector.shape_cast %358 : vector<16xf32> to vector<16x1xf32>
    %360 = arith.addf %357, %359 : vector<16x1xf32>
    %cst_140 = arith.constant dense<0.000000e+00> : vector<16xf32>
    %361 = vector.multi_reduction <add>, %344, %cst_140 [1] : vector<16x64xf32> to vector<16xf32>
    %362 = vector.shape_cast %361 : vector<16xf32> to vector<16x1xf32>
    %363 = arith.addf %360, %362 : vector<16x1xf32>
    %cst_141 = arith.constant dense<0.000000e+00> : vector<16xf32>
    %364 = vector.multi_reduction <add>, %345, %cst_141 [1] : vector<16x64xf32> to vector<16xf32>
    %365 = vector.shape_cast %364 : vector<16xf32> to vector<16x1xf32>
    %366 = arith.addf %363, %365 : vector<16x1xf32>
    %cst_142 = arith.constant dense<0.000000e+00> : vector<16xf32>
    %367 = vector.multi_reduction <add>, %346, %cst_142 [1] : vector<16x64xf32> to vector<16xf32>
    %368 = vector.shape_cast %367 : vector<16xf32> to vector<16x1xf32>
    %369 = arith.addf %366, %368 : vector<16x1xf32>
    %cst_143 = arith.constant dense<0.000000e+00> : vector<16xf32>
    %370 = vector.multi_reduction <add>, %347, %cst_143 [1] : vector<16x64xf32> to vector<16xf32>
    %371 = vector.shape_cast %370 : vector<16xf32> to vector<16x1xf32>
    %372 = arith.addf %369, %371 : vector<16x1xf32>
    %cst_144 = arith.constant dense<0.000000e+00> : vector<16xf32>
    %373 = vector.multi_reduction <add>, %348, %cst_144 [1] : vector<16x64xf32> to vector<16xf32>
    %374 = vector.shape_cast %373 : vector<16xf32> to vector<16x1xf32>
    %375 = arith.addf %372, %374 : vector<16x1xf32>
    %cst_145 = arith.constant 0.001953125 : f32
    %376 = vector.broadcast %cst_145 : f32 to vector<16x1xf32>
    %377 = arith.mulf %375, %376 : vector<16x1xf32>
    %378 = vector.broadcast %377 : vector<16x1xf32> to vector<16x64xf32>
    %379 = arith.subf %341, %378 : vector<16x64xf32>
    %380 = vector.broadcast %377 : vector<16x1xf32> to vector<16x64xf32>
    %381 = arith.subf %342, %380 : vector<16x64xf32>
    %382 = vector.broadcast %377 : vector<16x1xf32> to vector<16x64xf32>
    %383 = arith.subf %343, %382 : vector<16x64xf32>
    %384 = vector.broadcast %377 : vector<16x1xf32> to vector<16x64xf32>
    %385 = arith.subf %344, %384 : vector<16x64xf32>
    %386 = vector.broadcast %377 : vector<16x1xf32> to vector<16x64xf32>
    %387 = arith.subf %345, %386 : vector<16x64xf32>
    %388 = vector.broadcast %377 : vector<16x1xf32> to vector<16x64xf32>
    %389 = arith.subf %346, %388 : vector<16x64xf32>
    %390 = vector.broadcast %377 : vector<16x1xf32> to vector<16x64xf32>
    %391 = arith.subf %347, %390 : vector<16x64xf32>
    %392 = vector.broadcast %377 : vector<16x1xf32> to vector<16x64xf32>
    %393 = arith.subf %348, %392 : vector<16x64xf32>
    %394 = arith.mulf %379, %379 : vector<16x64xf32>
    %cst_146 = arith.constant dense<0.000000e+00> : vector<16xf32>
    %395 = vector.multi_reduction <add>, %394, %cst_146 [1] : vector<16x64xf32> to vector<16xf32>
    %396 = vector.shape_cast %395 : vector<16xf32> to vector<16x1xf32>
    %cst_147 = arith.constant 0.000000e+00 : f32
    %397 = vector.broadcast %cst_147 : f32 to vector<16x1xf32>
    %398 = arith.addf %397, %396 : vector<16x1xf32>
    %399 = arith.mulf %381, %381 : vector<16x64xf32>
    %cst_148 = arith.constant dense<0.000000e+00> : vector<16xf32>
    %400 = vector.multi_reduction <add>, %399, %cst_148 [1] : vector<16x64xf32> to vector<16xf32>
    %401 = vector.shape_cast %400 : vector<16xf32> to vector<16x1xf32>
    %402 = arith.addf %398, %401 : vector<16x1xf32>
    %403 = arith.mulf %383, %383 : vector<16x64xf32>
    %cst_149 = arith.constant dense<0.000000e+00> : vector<16xf32>
    %404 = vector.multi_reduction <add>, %403, %cst_149 [1] : vector<16x64xf32> to vector<16xf32>
    %405 = vector.shape_cast %404 : vector<16xf32> to vector<16x1xf32>
    %406 = arith.addf %402, %405 : vector<16x1xf32>
    %407 = arith.mulf %385, %385 : vector<16x64xf32>
    %cst_150 = arith.constant dense<0.000000e+00> : vector<16xf32>
    %408 = vector.multi_reduction <add>, %407, %cst_150 [1] : vector<16x64xf32> to vector<16xf32>
    %409 = vector.shape_cast %408 : vector<16xf32> to vector<16x1xf32>
    %410 = arith.addf %406, %409 : vector<16x1xf32>
    %411 = arith.mulf %387, %387 : vector<16x64xf32>
    %cst_151 = arith.constant dense<0.000000e+00> : vector<16xf32>
    %412 = vector.multi_reduction <add>, %411, %cst_151 [1] : vector<16x64xf32> to vector<16xf32>
    %413 = vector.shape_cast %412 : vector<16xf32> to vector<16x1xf32>
    %414 = arith.addf %410, %413 : vector<16x1xf32>
    %415 = arith.mulf %389, %389 : vector<16x64xf32>
    %cst_152 = arith.constant dense<0.000000e+00> : vector<16xf32>
    %416 = vector.multi_reduction <add>, %415, %cst_152 [1] : vector<16x64xf32> to vector<16xf32>
    %417 = vector.shape_cast %416 : vector<16xf32> to vector<16x1xf32>
    %418 = arith.addf %414, %417 : vector<16x1xf32>
    %419 = arith.mulf %391, %391 : vector<16x64xf32>
    %cst_153 = arith.constant dense<0.000000e+00> : vector<16xf32>
    %420 = vector.multi_reduction <add>, %419, %cst_153 [1] : vector<16x64xf32> to vector<16xf32>
    %421 = vector.shape_cast %420 : vector<16xf32> to vector<16x1xf32>
    %422 = arith.addf %418, %421 : vector<16x1xf32>
    %423 = arith.mulf %393, %393 : vector<16x64xf32>
    %cst_154 = arith.constant dense<0.000000e+00> : vector<16xf32>
    %424 = vector.multi_reduction <add>, %423, %cst_154 [1] : vector<16x64xf32> to vector<16xf32>
    %425 = vector.shape_cast %424 : vector<16xf32> to vector<16x1xf32>
    %426 = arith.addf %422, %425 : vector<16x1xf32>
    %cst_155 = arith.constant 0.001953125 : f32
    %427 = vector.broadcast %cst_155 : f32 to vector<16x1xf32>
    %428 = arith.mulf %426, %427 : vector<16x1xf32>
    %cst_156 = arith.constant 9.99999974E-6 : f32
    %429 = vector.broadcast %cst_156 : f32 to vector<16x1xf32>
    %430 = arith.addf %428, %429 : vector<16x1xf32>
    %431 = math.rsqrt %430 : vector<16x1xf32>
    %432 = arith.mulf %431, %349 : vector<16x1xf32>
    %433 = vector.broadcast %432 : vector<16x1xf32> to vector<16x64xf32>
    %434 = arith.mulf %379, %433 : vector<16x64xf32>
    %435 = vector.broadcast %350 : vector<16x1xf32> to vector<16x64xf32>
    %436 = arith.addf %434, %435 : vector<16x64xf32>
    %cst_157 = arith.constant 0.000000e+00 : f32
    %437 = vector.broadcast %cst_157 : f32 to vector<16x64xf32>
    %438 = arith.cmpf oge, %436, %437 : vector<16x64xf32>
    %cst_158 = arith.constant 1.000000e-01 : f32
    %439 = vector.broadcast %cst_158 : f32 to vector<16x64xf32>
    %440 = arith.mulf %439, %436 : vector<16x64xf32>
    %441 = arith.select %438, %436, %440 : vector<16x64xi1>, vector<16x64xf32>
    %442 = vector.broadcast %432 : vector<16x1xf32> to vector<16x64xf32>
    %443 = arith.mulf %381, %442 : vector<16x64xf32>
    %444 = vector.broadcast %350 : vector<16x1xf32> to vector<16x64xf32>
    %445 = arith.addf %443, %444 : vector<16x64xf32>
    %cst_159 = arith.constant 0.000000e+00 : f32
    %446 = vector.broadcast %cst_159 : f32 to vector<16x64xf32>
    %447 = arith.cmpf oge, %445, %446 : vector<16x64xf32>
    %cst_160 = arith.constant 1.000000e-01 : f32
    %448 = vector.broadcast %cst_160 : f32 to vector<16x64xf32>
    %449 = arith.mulf %448, %445 : vector<16x64xf32>
    %450 = arith.select %447, %445, %449 : vector<16x64xi1>, vector<16x64xf32>
    %451 = vector.broadcast %432 : vector<16x1xf32> to vector<16x64xf32>
    %452 = arith.mulf %383, %451 : vector<16x64xf32>
    %453 = vector.broadcast %350 : vector<16x1xf32> to vector<16x64xf32>
    %454 = arith.addf %452, %453 : vector<16x64xf32>
    %cst_161 = arith.constant 0.000000e+00 : f32
    %455 = vector.broadcast %cst_161 : f32 to vector<16x64xf32>
    %456 = arith.cmpf oge, %454, %455 : vector<16x64xf32>
    %cst_162 = arith.constant 1.000000e-01 : f32
    %457 = vector.broadcast %cst_162 : f32 to vector<16x64xf32>
    %458 = arith.mulf %457, %454 : vector<16x64xf32>
    %459 = arith.select %456, %454, %458 : vector<16x64xi1>, vector<16x64xf32>
    %460 = vector.broadcast %432 : vector<16x1xf32> to vector<16x64xf32>
    %461 = arith.mulf %385, %460 : vector<16x64xf32>
    %462 = vector.broadcast %350 : vector<16x1xf32> to vector<16x64xf32>
    %463 = arith.addf %461, %462 : vector<16x64xf32>
    %cst_163 = arith.constant 0.000000e+00 : f32
    %464 = vector.broadcast %cst_163 : f32 to vector<16x64xf32>
    %465 = arith.cmpf oge, %463, %464 : vector<16x64xf32>
    %cst_164 = arith.constant 1.000000e-01 : f32
    %466 = vector.broadcast %cst_164 : f32 to vector<16x64xf32>
    %467 = arith.mulf %466, %463 : vector<16x64xf32>
    %468 = arith.select %465, %463, %467 : vector<16x64xi1>, vector<16x64xf32>
    %469 = vector.broadcast %432 : vector<16x1xf32> to vector<16x64xf32>
    %470 = arith.mulf %387, %469 : vector<16x64xf32>
    %471 = vector.broadcast %350 : vector<16x1xf32> to vector<16x64xf32>
    %472 = arith.addf %470, %471 : vector<16x64xf32>
    %cst_165 = arith.constant 0.000000e+00 : f32
    %473 = vector.broadcast %cst_165 : f32 to vector<16x64xf32>
    %474 = arith.cmpf oge, %472, %473 : vector<16x64xf32>
    %cst_166 = arith.constant 1.000000e-01 : f32
    %475 = vector.broadcast %cst_166 : f32 to vector<16x64xf32>
    %476 = arith.mulf %475, %472 : vector<16x64xf32>
    %477 = arith.select %474, %472, %476 : vector<16x64xi1>, vector<16x64xf32>
    %478 = vector.broadcast %432 : vector<16x1xf32> to vector<16x64xf32>
    %479 = arith.mulf %389, %478 : vector<16x64xf32>
    %480 = vector.broadcast %350 : vector<16x1xf32> to vector<16x64xf32>
    %481 = arith.addf %479, %480 : vector<16x64xf32>
    %cst_167 = arith.constant 0.000000e+00 : f32
    %482 = vector.broadcast %cst_167 : f32 to vector<16x64xf32>
    %483 = arith.cmpf oge, %481, %482 : vector<16x64xf32>
    %cst_168 = arith.constant 1.000000e-01 : f32
    %484 = vector.broadcast %cst_168 : f32 to vector<16x64xf32>
    %485 = arith.mulf %484, %481 : vector<16x64xf32>
    %486 = arith.select %483, %481, %485 : vector<16x64xi1>, vector<16x64xf32>
    %487 = vector.broadcast %432 : vector<16x1xf32> to vector<16x64xf32>
    %488 = arith.mulf %391, %487 : vector<16x64xf32>
    %489 = vector.broadcast %350 : vector<16x1xf32> to vector<16x64xf32>
    %490 = arith.addf %488, %489 : vector<16x64xf32>
    %cst_169 = arith.constant 0.000000e+00 : f32
    %491 = vector.broadcast %cst_169 : f32 to vector<16x64xf32>
    %492 = arith.cmpf oge, %490, %491 : vector<16x64xf32>
    %cst_170 = arith.constant 1.000000e-01 : f32
    %493 = vector.broadcast %cst_170 : f32 to vector<16x64xf32>
    %494 = arith.mulf %493, %490 : vector<16x64xf32>
    %495 = arith.select %492, %490, %494 : vector<16x64xi1>, vector<16x64xf32>
    %496 = vector.broadcast %432 : vector<16x1xf32> to vector<16x64xf32>
    %497 = arith.mulf %393, %496 : vector<16x64xf32>
    %498 = vector.broadcast %350 : vector<16x1xf32> to vector<16x64xf32>
    %499 = arith.addf %497, %498 : vector<16x64xf32>
    %cst_171 = arith.constant 0.000000e+00 : f32
    %500 = vector.broadcast %cst_171 : f32 to vector<16x64xf32>
    %501 = arith.cmpf oge, %499, %500 : vector<16x64xf32>
    %cst_172 = arith.constant 1.000000e-01 : f32
    %502 = vector.broadcast %cst_172 : f32 to vector<16x64xf32>
    %503 = arith.mulf %502, %499 : vector<16x64xf32>
    %504 = arith.select %501, %499, %503 : vector<16x64xi1>, vector<16x64xf32>
    %505 = arith.maximumf %441, %450 : vector<16x64xf32>
    %506 = arith.maximumf %505, %459 : vector<16x64xf32>
    %507 = arith.maximumf %506, %468 : vector<16x64xf32>
    %508 = arith.maximumf %507, %477 : vector<16x64xf32>
    %509 = arith.maximumf %508, %486 : vector<16x64xf32>
    %510 = arith.maximumf %509, %495 : vector<16x64xf32>
    %511 = arith.maximumf %510, %504 : vector<16x64xf32>
    %c0_173 = arith.constant 0 : index
    %c0_174 = arith.constant 0 : index
    %c0_175 = arith.constant 0 : index
    %512 = vector.load %arg14[%c0_173, %c0_174, %c0_175] : memref<1x16x64xf32, #tpu.memory_space<vmem>>, vector<1x16x64xf32>
    %513 = vector.shape_cast %512 : vector<1x16x64xf32> to vector<16x64xf32>
    %514 = vector.shape_cast %511 : vector<16x64xf32> to vector<1x16x64xf32>
    tpu.vector_store %arg14[%c0_173, %c0_174, %c0_175], %514 {strides = array<i32>} : memref<1x16x64xf32, #tpu.memory_space<vmem>>, vector<1x16x64xf32>,
    return
  }
  func.func @transform_0(%arg0: i32) -> (i32, i32, i32) {
    %c0_i32 = arith.constant 0 : i32
    %c0_i32_0 = arith.constant 0 : i32
    %c0_i32_1 = arith.constant 0 : i32
    return %arg0, %c0_i32, %c0_i32_0 : i32, i32, i32
  }
  func.func @transform_1(%arg0: i32) -> (i32, i32, i32) {
    %c0_i32 = arith.constant 0 : i32
    %c0_i32_0 = arith.constant 0 : i32
    %c0_i32_1 = arith.constant 0 : i32
    return %arg0, %c0_i32, %c0_i32_0 : i32, i32, i32
  }
  func.func @transform_2(%arg0: i32) -> (i32, i32, i32) {
    %c0_i32 = arith.constant 0 : i32
    %c0_i32_0 = arith.constant 0 : i32
    %c0_i32_1 = arith.constant 0 : i32
    return %arg0, %c0_i32, %c0_i32_0 : i32, i32, i32
  }
  func.func @transform_3(%arg0: i32) -> (i32, i32, i32) {
    %c0_i32 = arith.constant 0 : i32
    %c0_i32_0 = arith.constant 0 : i32
    %c0_i32_1 = arith.constant 0 : i32
    return %arg0, %c0_i32, %c0_i32_0 : i32, i32, i32
  }
  func.func @transform_4(%arg0: i32) -> (i32, i32, i32) {
    %c0_i32 = arith.constant 0 : i32
    %c0_i32_0 = arith.constant 0 : i32
    %c0_i32_1 = arith.constant 0 : i32
    return %arg0, %c0_i32, %c0_i32_0 : i32, i32, i32
  }
  func.func @transform_5(%arg0: i32) -> (i32, i32) {
    %c0_i32 = arith.constant 0 : i32
    %c0_i32_0 = arith.constant 0 : i32
    %c0_i32_1 = arith.constant 0 : i32
    return %c0_i32, %c0_i32_0 : i32, i32
  }
  func.func @transform_6(%arg0: i32) -> (i32, i32) {
    %c0_i32 = arith.constant 0 : i32
    %c0_i32_0 = arith.constant 0 : i32
    %c0_i32_1 = arith.constant 0 : i32
    return %c0_i32, %c0_i32_0 : i32, i32
  }
  func.func @transform_7(%arg0: i32) -> (i32, i32) {
    %c0_i32 = arith.constant 0 : i32
    %c0_i32_0 = arith.constant 0 : i32
    %c0_i32_1 = arith.constant 0 : i32
    return %c0_i32, %c0_i32_0 : i32, i32
  }
  func.func @transform_8(%arg0: i32) -> (i32, i32) {
    %c0_i32 = arith.constant 0 : i32
    %c0_i32_0 = arith.constant 0 : i32
    %c0_i32_1 = arith.constant 0 : i32
    return %c0_i32, %c0_i32_0 : i32, i32
  }
  func.func @transform_9(%arg0: i32) -> (i32, i32) {
    %c0_i32 = arith.constant 0 : i32
    %c0_i32_0 = arith.constant 0 : i32
    %c0_i32_1 = arith.constant 0 : i32
    return %c0_i32, %c0_i32_0 : i32, i32
  }
  func.func @transform_10(%arg0: i32) -> (i32, i32) {
    %c0_i32 = arith.constant 0 : i32
    %c0_i32_0 = arith.constant 0 : i32
    %c0_i32_1 = arith.constant 0 : i32
    return %c0_i32, %c0_i32_0 : i32, i32
  }
  func.func @transform_11(%arg0: i32) -> (i32, i32) {
    %c0_i32 = arith.constant 0 : i32
    %c0_i32_0 = arith.constant 0 : i32
    %c0_i32_1 = arith.constant 0 : i32
    return %c0_i32, %c0_i32_0 : i32, i32
  }
  func.func @transform_12(%arg0: i32) -> (i32, i32) {
    %c0_i32 = arith.constant 0 : i32
    %c0_i32_0 = arith.constant 0 : i32
    %c0_i32_1 = arith.constant 0 : i32
    return %c0_i32, %c0_i32_0 : i32, i32
  }
  func.func @transform_13(%arg0: i32) -> (i32, i32, i32) {
    %c0_i32 = arith.constant 0 : i32
    %c0_i32_0 = arith.constant 0 : i32
    %c0_i32_1 = arith.constant 0 : i32
    return %arg0, %c0_i32, %c0_i32_0 : i32, i32, i32
  }
}

</mosaic_0001>

<bundles_post_ra>
// kernel: tpu_custom_call.1
= control target key start
LH: loop header
LB: loop body
LE: loop exit
PB: predicated region body
PF: predicated region fallthrough
CT: control target
= control target key end

     0   :  { %s6130_s0 = inlined_call_operand.vmem [shape: f32[2,3,64], index: 0, kind: input, shape index: {}]   ;;  %s6131_s1 = inlined_call_operand.vmem [shape: f32[2,64,3], index: 1, kind: input, shape index: {}]   ;;  %s6132_s2 = inlined_call_operand.vmem [shape: f32[2,3,64], index: 2, kind: input, shape index: {}]   ;;  %s6133_s3 = inlined_call_operand.vmem [shape: f32[2,4,64], index: 3, kind: input, shape index: {}]   ;;  %s6134_s4 = inlined_call_operand.vmem [shape: f32[2,4,64], index: 4, kind: input, shape index: {}]   ;;  %s6135_s5 = inlined_call_operand.vmem [shape: f32[16,3], index: 5, kind: input, shape index: {}]   ;;  %s6136_s6 = inlined_call_operand.vmem [shape: f32[16,4], index: 6, kind: input, shape index: {}]   ;;  %s6137_s7 = inlined_call_operand.vmem [shape: f32[16,4], index: 7, kind: input, shape index: {}]   ;;  %s6138_s8 = inlined_call_operand.vmem [shape: f32[16,1], index: 8, kind: input, shape index: {}]   ;;  %s6139_s9 = inlined_call_operand.vmem [shape: f32[16,1], index: 9, kind: input, shape index: {}]   ;;  %s6140_s10 = inlined_call_operand.vmem [shape: f32[16,16], index: 10, kind: input, shape index: {}]   ;;  %s6141_s11 = inlined_call_operand.vmem [shape: f32[16,1], index: 11, kind: input, shape index: {}]   ;;  %s6142_s12 = inlined_call_operand.vmem [shape: f32[16,1], index: 12, kind: input, shape index: {}]   ;;  %s6143_s13 = inlined_call_operand.hbm [shape: f32[2,16,64], index: 13, kind: output, shape index: {}]  }
   0x1   :  { %6144 = sst [smem:[#allocation6_spill]] %s6131_s1 }
   0x2   :  { %6145 = sst [smem:[#allocation7_spill]] %s6134_s4 }
   0x3   :  { %18 = vsyncpa [#allocation3], 0 }
   0x4   :  { %20 = vsyncpa [#allocation3 + $0x1], 0  ;;  %s4329_s25 = smov 0   ;;  %s4331_s26 = smov 0  }
   0x5   :  { %s4333_s27 = smov 0   ;;  %s4335_s28 = smov 0  }
   0x6 LB: > { %s4350_s29 = sadd.s32 4294967295, %s4250_s28   ;;  %s3651_s30 = sadd.s32 4294967294, %s4250_s28   ;;  %s4250_s28 = sphi %s4335_s28, %s6155_s28   ;;  %s4246_s27 = sphi %s4333_s27, %s6154_s27   ;;  %s4242_s26 = sphi %s4331_s26, %s6153_s26   ;;  %s4238_s25 = sphi %s4329_s25, %s6152_s25  }
   0x7   : > { %s4354_s14 = sadd.s32 1, %s4250_s28   ;;  %s331_s15 = sadd.s32 1, %s4246_s27 }
   0x8   : > { %s328_s16 = ssub.s32 %s4250_s28, %s4354_s14  ;;  %p341_p0 = scmp.ne.s32.totalorder %s4246_s27, %s4242_s26 }
   0x9   : > { %p329_p1 = scmp.eq.s32.totalorder %s328_s16, 0  ;;  %p342_p2 = scmp.eq.s32.totalorder %s4350_s29, 1 }
   0xa   : > { %p347_p3 = scmp.ne.s32.totalorder %s4242_s26, %s4238_s25  ;;  %p348_p4 = scmp.eq.s32.totalorder %s3651_s30, 1 }
   0xb   : > { %s4365_s17 = scalar_select %p329_p1, %s4246_s27, %s331_s15  }
   0xc   : > { %p4367_p5 = por %p342_p2, %p341_p0  ;;  %p4371_p6 = por %p348_p4, %p347_p3 }
   0xd   : > { %6146 = sst [smem:[#allocation5_spill]] %s4365_s17  ;;  %p3654_p7 = scmp.ge.s32.totalorder %s4250_s28, 1 }
   0xe   : > { %p426_p8 = scmp.lt.s32.totalorder %s4250_s28, 3 }
  0x10   : > { %p427_p9 = pnand %p3654_p7, %p426_p8 }
  0x11   : > { %p486_p10 = scmp.lt.s32.totalorder (!%p427_p9), %s4350_s29, 1  ;;  %s6149_s1 = sld [smem:[#allocation6_spill]] (!%p427_p9) }
  0x12   : > { %430 = sbr.rel (%p427_p9) target bundleno = 2051 (0x803), region = 72  ;;  %s6150_s4 = sld [smem:[#allocation7_spill]] (!%p427_p9) }
  0x13   : > { %s483_s22 = sand.u32 (!%p427_p9), 1, %s4242_s26   ;;  %s4256_s15 = smov (!%p427_p9), [#allocation2]  }
  0x14   : > { %s4194_s16 = sshll.u32 (!%p427_p9), %s4256_s15, 4  ;;  %s4195_s16 = int_to_ptr.vmem [resolvable:$false] %s4194_s16 }
  0x17   : > { %v4252_v0 = vmov 0   ;;  %s4381_s20 = scalar_select %p486_p10, %s4350_s29, 1  ;;  %vm542_vm0 = vcmask 23552   ;;  %vm754_vm1 = vcmask 1043456   ;;  %vm839_vm2 = vcmask 1042432   ;;  %v521_v27 = vld [vmem:[%s6136_s6] sm:$0xff] }
  0x18   : > { %4175 = vset.pattern.permute.xlu1 %v4252_v0  ;;  %4174 = vset.pattern.permute.xlu0 %v4252_v0  ;;  %vm747_vm3 = vcmask 31744   ;;  %v519_v28 = vld [vmem:[%s6135_s5] sm:$0xff]  ;;  %v522_v29 = vld [vmem:[%s6136_s6 + $0x8] sm:$0xff]  ;;  %v4253_v32 = vmov 1   ;;  %v4254_v33 = vmov 2   ;;  %vm526_vm4 = vcmask 518144  }
  0x19   : > { %s3775_s21 = sshll.u32 %s4381_s20, 6  ;;  %s4428_s30 = sshll.u32 %s4381_s20, 2  ;;  %3903 = vmatprep.mubr.msk.f32.mxu0 %vm747_vm3, %v521_v27  ;;  %3908 = vmatprep.mubr.msk.f32.mxu1 %vm542_vm0, %v519_v28  ;;  %v520_v30 = vld [vmem:[%s6135_s5 + $0x8] sm:$0xff]  ;;  %v523_v35 = vld [vmem:[%s6137_s7] sm:$0xff]  ;;  %v607_v62 = vlaneseq  ;;  %vm1099_vm5 = vcmask 523264  }
  0x1a   : > { %s494_s24 = scalar_lea.vmem %s6149_s1, %s3775_s21  ;;  %s506_s21 = scalar_lea.vmem %s6150_s4, %s4428_s30  ;;  %v524_v37 = vld [vmem:[%s6137_s7 + $0x8] sm:$0xff] }
  0x1b   : > { %v4387_v1 = vld [vmem:[%s494_s24 + $0x10] sm:$0xff]  ;;  %v4389_v2 = vld [vmem:[%s494_s24] sm:$0xff]  ;;  %v4391_v3 = vld [vmem:[%s494_s24 + $0x18] sm:$0xff]  ;;  %s489_s20 = scalar_lea.vmem %s6130_s0, %s4428_s30 }
  0x1c   : > { %v536_v4 = vmul.f32 %v4387_v1, %v4387_v1  ;;  %v534_v5 = vmul.f32 %v4389_v2, %v4389_v2  ;;  %v537_v6 = vmul.f32 %v4391_v3, %v4391_v3  ;;  %v4399_v7 = vld [vmem:[%s494_s24 + $0x8] sm:$0xff]  ;;  %v4405_v10 = vld [vmem:[%s494_s24 + $0x20] sm:$0xff]  ;;  %v4415_v17 = vld [vmem:[%s494_s24 + $0x38] sm:$0xff] }
  0x1d   : > { %v535_v8 = vmul.f32 %v4399_v7, %v4399_v7  ;;  %v4403_v9 = vld [vmem:[%s494_s24 + $0x28] sm:$0xff]  ;;  %v538_v16 = vmul.f32 %v4405_v10, %v4405_v10  ;;  %v4417_v18 = vld [vmem:[%s494_s24 + $0x30] sm:$0xff]  ;;  %v541_v21 = vmul.f32 %v4415_v17, %v4415_v17  ;;  %s498_s24 = scalar_lea.vmem %s6132_s2, %s4428_s30  ;;  %v518_v25 = vld [vmem:[%s506_s21] sm:$0xf]  ;;  %s3655_s21 = sshll.u32 %s483_s22, 4 }
  0x1e   : > { %v549_v11 = vsel %vm542_vm0, %v536_v4, 0.0  ;;  %v543_v12 = vsel %vm542_vm0, %v534_v5, 0.0  ;;  %v552_v13 = vsel %vm542_vm0, %v537_v6, 0.0  ;;  %v539_v15 = vmul.f32 %v4403_v9, %v4403_v9  ;;  %v516_v26 = vld [vmem:[%s498_s24] sm:$0x7]  ;;  %3901 = vmatprep.subr.msk.mxu0 %vm754_vm1, %v518_v25  ;;  %s485_s1 = scalar_lea.vmem [#allocation2], %s3655_s21 }
  0x1f   : > { %550 = vadd.xlane.f32.xlu1 %v549_v11  ;;  %544 = vadd.xlane.f32.xlu0 %v543_v12  ;;  %v546_v14 = vsel %vm542_vm0, %v535_v8, 0.0  ;;  %v555_v20 = vsel %vm542_vm0, %v538_v16, 0.0  ;;  %v540_v22 = vmul.f32 %v4417_v18, %v4417_v18  ;;  %v564_v23 = vsel %vm542_vm0, %v541_v21, 0.0  ;;  %v4460_v31 = vld [vmem:[%s489_s20] sm:$0x7]  ;;  %s502_s20 = scalar_lea.vmem %s6133_s3, %s4428_s30  ;;  %s3776_s30 = sshll.u32 %s4350_s29, 8 }
  0x20   : > { %v558_v19 = vsel %vm542_vm0, %v539_v15, 0.0  ;;  %3906 = vmatprep.subr.msk.mxu1 %vm839_vm2, %v516_v26  ;;  %3902 = vmatpush3.msk.msra.mxu0 %vm754_vm1, %v518_v25  ;;  %v517_v34 = vld [vmem:[%s502_s20] sm:$0xf]  ;;  %v525_v55 = vmul.f32 %v4460_v31, %v4460_v31  ;;  %s3541_s17 = sshll.u32 %s485_s1, 4  ;;  %s6083_s24 = scalar_lea.hbm %s6143_s13, %s3776_s30  ;;  %s6085_s17 = int_to_ptr.vmem [resolvable:$true] %s3541_s17 }
  0x21   : > { %v561_v24 = vsel %vm542_vm0, %v540_v22, 0.0  ;;  %3907 = vmatpush3.msk.msra.mxu1 %vm839_vm2, %v516_v26  ;;  %3904 = vmatmul.mubr.msk.f32.vlgmr.msra.gmra.mxu0 %vm747_vm3, %v522_v29  ;;  %s6090_s29 = scalar_lea.sflag [#allocation3], %s483_s22  ;;  %s4190_s20 = scalar_lea.vmem %s6085_s17, 256 }
  0x22   : > { %3909 = vmatmul.mubr.msk.f32.vlgmr.msra.gmra.mxu1 %vm542_vm0, %v520_v30  ;;  %3916 = vmatprep.subr.msk.mxu1 %vm839_vm2, %v4460_v31  ;;  %v527_v58 = vsel %vm526_vm4, %v525_v55, 0.0  ;;  %p4191_p11 = scmp.ne.s32.totalorder %s6085_s17, %s4190_s20  ;;  %s4196_s21 = scalar_lea.vmem %s4195_s16, 512 }
  0x23   : > { %553 = vadd.xlane.f32.xlu1 %v552_v13  ;;  %547 = vadd.xlane.f32.xlu0 %v546_v14  ;;  %v528_v61 = vrot.slane %v527_v58, 4  ;;  %p4197_p0 = scmp.lt.s32.totalorder %s6085_s17, %s4195_s16  ;;  %p4198_p1 = scmp.lt.s32.totalorder %s4196_s21, %s4190_s20 }
  0x24   : > { %3918 = vmatprep.mubr.msk.f32.mxu1 %vm542_vm0, %v519_v28  ;;  %3917 = vmatpush3.msk.msra.mxu1 %vm839_vm2, %v4460_v31  ;;  %p4192_p12 = pnand %p4191_p11, %p4367_p5 }
  0x25   : > { %3911 = vmatprep.subr.msk.mxu0 %vm754_vm1, %v517_v34  ;;  %3913 = vmatprep.mubr.msk.f32.mxu0 %vm747_vm3, %v523_v35  ;;  %p4199_p2 = por %p4198_p1, %p4197_p0 }
  0x26   : > { %3919 = vmatmul.mubr.msk.f32.vlgmr.msra.gmra.mxu1 %vm542_vm0, %v520_v30  ;;  %3912 = vmatpush3.msk.msra.mxu0 %vm754_vm1, %v517_v34  ;;  %p4193_p13 = pneg %p4192_p12 }
  0x27   : > { %559 = vadd.xlane.f32.xlu1 %v558_v19  ;;  %556 = vadd.xlane.f32.xlu0 %v555_v20 }
  0x28   : > { %3914 = vmatmul.mubr.msk.f32.vlgmr.msra.gmra.mxu0 %vm747_vm3, %v524_v37  ;;  %p4200_p3 = pnand %p4199_p2, %p4193_p13 }
  0x2b   : > { %565 = vadd.xlane.f32.xlu1 %v564_v23  ;;  %562 = vadd.xlane.f32.xlu0 %v561_v24 }
  0x3c   : > { %574 = vperm.xlu1 %4175, %v4399_v7  }
  0x40   : > { %579 = vperm.xlu1 %4175, %v4387_v1  }
  0x41   : > { %569 = vperm.xlu0 %4174, %v4389_v2  }
  0x44   : > { %584 = vperm.xlu1 %4175, %v4391_v3  }
  0x45   : > { %4177 = vset.pattern.permute.xlu0 %v4253_v32 }
  0x46   : > { %624 = vperm.xlu0 %4177, %v4399_v7  }
  0x48   : > { %589 = vperm.xlu1 %4175, %v4405_v10  }
  0x4a   : > { %636 = vperm.xlu0 %4177, %v4405_v10  }
  0x4c   : > { %594 = vperm.xlu1 %4175, %v4403_v9  }
  0x4e   : > { %644 = vperm.xlu0 %4177, %v4417_v18  }
  0x50   : > { %599 = vperm.xlu1 %4175, %v4417_v18  }
  0x52   : > { %4178 = vset.pattern.permute.xlu0 %v4254_v33 }
  0x53   : > { %672 = vperm.xlu0 %4178, %v4389_v2  }
  0x54   : > { %604 = vperm.xlu1 %4175, %v4415_v17  }
  0x57   : > { %684 = vperm.xlu0 %4178, %v4391_v3  }
  0x58   : > { %4176 = vset.pattern.permute.xlu1 %v4253_v32 }
  0x59   : > { %620 = vperm.xlu1 %4176, %v4389_v2   ;;  %v4530_v2 = vshrl.u32 %v607_v62, 7 }
  0x5b   : > { %692 = vperm.xlu0 %4178, %v4403_v9   ;;  %v609_v5 = vsub.s32 0, %v4530_v2  ;;  %v653_v6 = vsub.s32 1, %v4530_v2  ;;  %v705_v8 = vsub.s32 2, %v4530_v2 }
  0x5d   : > { %628 = vperm.xlu1 %4176, %v4387_v1   ;;  %v610_v11 = vrot.slane %v4460_v31, %v609_v5  ;;  %v654_v12 = vrot.slane %v4460_v31, %v653_v6  ;;  %v706_v15 = vrot.slane %v4460_v31, %v705_v8 }
  0x5f   : > { %700 = vperm.xlu0 %4178, %v4415_v17  }
  0x61   : > { %632 = vperm.xlu1 %4176, %v4391_v3  }
  0x63   : > { %4180 = vset.pattern.permute.xlu0 %v4252_v0 }
  0x65   : > { %640 = vperm.xlu1 %4176, %v4403_v9  }
  0x69   : > { %648 = vperm.xlu1 %4176, %v4415_v17  }
  0x6d   : > { %4179 = vset.pattern.permute.xlu1 %v4254_v33 }
  0x6e   : > { %676 = vperm.xlu1 %4179, %v4399_v7  }
  0x72   : > { %680 = vperm.xlu1 %4179, %v4387_v1   ;;  %v529_v1 = vadd.f32 %v528_v61, %v527_v58 }
  0x74   : > { %v530_v4 = vrot.slane %v529_v1, 2 }
  0x76   : > { %688 = vperm.xlu1 %4179, %v4405_v10   ;;  %v531_v10 = vadd.f32 %v530_v4, %v529_v1 }
  0x7a   : > { %696 = vperm.xlu1 %4179, %v4417_v18   ;;  %v532_v18 = vrot.slane %v531_v10, 1 }
  0x7e   : > { %4181 = vset.pattern.permute.xlu1 %v4252_v0 }
  0xa8   : > { %v4503_v36 = vpop.xlane.xlu1 %550  ;;  %v4514_v39 = vpop.xlane.xlu0 %544 }
  0xac   : > { %v4512_v38 = vpop.xlane.xlu1 %553  ;;  %v4518_v41 = vpop.xlane.xlu0 %547 }
  0xb0   : > { %v4516_v40 = vpop.xlane.xlu1 %559  ;;  %v4522_v43 = vpop.xlane.xlu0 %556 }
  0xb4   : > { %v4520_v42 = vpop.xlane.xlu1 %565  ;;  %v4524_v46 = vpop.xlane.xlu0 %562 }
  0xb8   : > { %v575_v44 = vpop.permute.xlu1 %574 }
  0xb9   : > { %v612_v23 = vmul.f32 %v610_v11, %v575_v44  ;;  %v533_v44 = vadd.f32 %v532_v18, %v531_v10 }
  0xbb   : > { %v725_v4 = vadd.f32 %v4503_v36, %v533_v44  ;;  %v723_v6 = vadd.f32 %v4514_v39, %v533_v44  ;;  %v730_v10 = vadd.f32 %v4520_v42, %v533_v44  ;;  %v726_v36 = vadd.f32 %v4512_v38, %v533_v44 }
  0xbc   : > { %v580_v45 = vpop.permute.xlu1 %579  ;;  %v570_v48 = vpop.permute.xlu0 %569  ;;  %v728_v18 = vadd.f32 %v4516_v40, %v533_v44 }
  0xbd   : > { %v611_v13 = vmul.f32 %v610_v11, %v570_v48 }
  0xc0   : > { %v585_v47 = vpop.permute.xlu1 %584 }
  0xc1   : > { %v625_v51 = vpop.permute.xlu0 %624  ;;  %v614_v24 = vmul.f32 %v610_v11, %v585_v47 }
  0xc2   : > { %v656_v25 = vmul.f32 %v654_v12, %v625_v51 }
  0xc4   : > { %v590_v49 = vpop.permute.xlu1 %589  ;;  %v664_v58 = vadd.f32 %v656_v25, %v612_v23  ;;  %v729_v23 = vadd.f32 %v4524_v46, %v533_v44 }
  0xc5   : > { %v637_v53 = vpop.permute.xlu0 %636  ;;  %v615_v32 = vmul.f32 %v610_v11, %v590_v49 }
  0xc6   : > { %v659_v33 = vmul.f32 %v654_v12, %v637_v53 }
  0xc8   : > { %v595_v50 = vpop.permute.xlu1 %594 }
  0xc9   : > { %v645_v56 = vpop.permute.xlu0 %644  ;;  %v616_v26 = vmul.f32 %v610_v11, %v595_v50 }
  0xcc   : > { %v4526_v52 = vpop.permute.xlu1 %599 }
  0xcd   : > { %v617_v53 = vmul.f32 %v610_v11, %v4526_v52 }
  0xce   : > { %v673_v59 = vpop.permute.xlu0 %672 }
  0xcf   : > { %v707_v28 = vmul.f32 %v706_v15, %v673_v59  ;;  %v667_v59 = vadd.f32 %v659_v33, %v615_v32 }
  0xd0   : > { %v605_v54 = vpop.permute.xlu1 %604 }
  0xd1   : > { %v618_v19 = vmul.f32 %v610_v11, %v605_v54 }
  0xd2   : > { %v685_v0 = vpop.permute.xlu0 %684 }
  0xd3   : > { %v710_v37 = vmul.f32 %v706_v15, %v685_v0 }
  0xd4   : > { %v621_v57 = vpop.permute.xlu1 %620 }
  0xd5   : > { %v655_v14 = vmul.f32 %v654_v12, %v621_v57  ;;  %v613_v57 = vmul.f32 %v610_v11, %v580_v45 }
  0xd6   : > { %v693_v7 = vpop.permute.xlu0 %692 }
  0xd7   : > { %v663_v27 = vadd.f32 %v655_v14, %v611_v13  ;;  %v712_v55 = vmul.f32 %v706_v15, %v693_v7  ;;  %v724_v7 = vadd.f32 %v4518_v41, %v533_v44  ;;  %v727_v13 = vadd.f32 %v4522_v43, %v533_v44 }
  0xd8   : > { %v629_v60 = vpop.permute.xlu1 %628 }
  0xd9   : > { %v657_v34 = vmul.f32 %v654_v12, %v629_v60  ;;  %v715_v47 = vadd.f32 %v707_v28, %v663_v27  ;;  %v661_v60 = vmul.f32 %v654_v12, %v645_v56 }
  0xda   : > { %v701_v17 = vpop.permute.xlu0 %700 }
  0xdb   : > { %v714_v30 = vmul.f32 %v706_v15, %v701_v17  ;;  %v665_v50 = vadd.f32 %v657_v34, %v613_v57  ;;  %v731_v5 = vmul.f32 2.0, %v715_v47  ;;  %v669_v56 = vadd.f32 %v661_v60, %v617_v53 }
  0xdc   : > { %v633_v63 = vpop.permute.xlu1 %632  ;;  %v1089_v53 = vadd.s32 48, %v4530_v2  ;;  %v1090_v60 = vadd.s32 56, %v4530_v2 }
  0xdd   : > { %v658_v20 = vmul.f32 %v654_v12, %v633_v63  ;;  %v4546_v39 = vsub.f32 %v723_v6, %v731_v5 }
  0xdf   : > { %v666_v31 = vadd.f32 %v658_v20, %v614_v24 }
  0xe0   : > { %v641_v3 = vpop.permute.xlu1 %640 }
  0xe1   : > { %v660_v21 = vmul.f32 %v654_v12, %v641_v3  ;;  %v718_v63 = vadd.f32 %v710_v37, %v666_v31 }
  0xe2   : > { %v3910_v20 = vpop.f32.mrf.mxu1 }
  0xe3   : > { %v668_v48 = vadd.f32 %v660_v21, %v616_v26  ;;  %v734_v14 = vmul.f32 2.0, %v718_v63 }
  0xe4   : > { %v649_v9 = vpop.permute.xlu1 %648  ;;  %v909_v24 = vpop.f32.mrf.mxu1 }
  0xe5   : > { %v662_v16 = vmul.f32 %v654_v12, %v649_v9  ;;  %v720_v1 = vadd.f32 %v712_v55, %v668_v48 }
  0xe7   : > { %v670_v29 = vadd.f32 %v662_v16, %v618_v19  ;;  %v736_v16 = vmul.f32 2.0, %v720_v1  ;;  %v3905_v19 = vpop.f32.mrf.mxu0  ;;  %v1087_v1 = vadd.s32 32, %v4530_v2 }
  0xe9   : > { %v677_v22 = vpop.permute.xlu1 %676  ;;  %v722_v51 = vadd.f32 %v714_v30, %v670_v29  ;;  %v4559_v38 = vsub.f32 %v728_v18, %v736_v16  ;;  %v824_v40 = vpop.f32.mrf.mxu0  ;;  %v1100_v29 = vsel %vm1099_vm5, %v4546_v39, inf }
  0xea   : > { %v708_v35 = vmul.f32 %v706_v15, %v677_v22  ;;  %v4554_v22 = vadd.f32 %v3910_v20, %v3905_v19  ;;  %v4565_v28 = vadd.f32 %v909_v24, %v824_v40 }
  0xeb   : > { %v738_v45 = vmul.f32 2.0, %v722_v51 }
  0xec   : > { %v716_v62 = vadd.f32 %v708_v35, %v664_v58  ;;  %3937 = vmatprep.mubr.msk.f32.mxu0 %vm1099_vm5, %v4565_v28  ;;  %3956 = vmatprep.mubr.msk.f32.mxu1 %vm1099_vm5, %v4565_v28  ;;  %v1106_v35 = vsel %vm1099_vm5, %v4559_v38, inf }
  0xed   : > { %v681_v54 = vpop.permute.xlu1 %680  ;;  %v4548_v41 = vsub.f32 %v730_v10, %v738_v45  ;;  %v4609_v10 = vcvt.s32.f32 %v1090_v60 }
  0xee   : > { %v709_v61 = vmul.f32 %v706_v15, %v681_v54  ;;  %v732_v8 = vmul.f32 2.0, %v716_v62  ;;  %v1085_v62 = vadd.s32 16, %v4530_v2 }
  0xef   : > { %v1110_v46 = vsel %vm1099_vm5, %v4548_v41, inf }
  0xf0   : > { %v717_v3 = vadd.f32 %v709_v61, %v665_v50  ;;  %v4550_v42 = vsub.f32 %v724_v7, %v732_v8  ;;  %v1084_v50 = vadd.s32 8, %v4530_v2  ;;  %v4599_v5 = vcvt.s32.f32 %v1085_v62 }
  0xf1   : > { %v689_v49 = vpop.permute.xlu1 %688  ;;  %v4603_v7 = vcvt.s32.f32 %v1087_v1 }
  0xf2   : > { %v711_v0 = vmul.f32 %v706_v15, %v689_v49  ;;  %v733_v11 = vmul.f32 2.0, %v717_v3  ;;  %v1101_v30 = vsel %vm1099_vm5, %v4550_v42, inf  ;;  %v1088_v49 = vadd.s32 40, %v4530_v2 }
  0xf3   : > { %v1107_v55 = vmin.f32 %v1101_v30, %v1106_v35 }
  0xf4   : > { %v719_v9 = vadd.f32 %v711_v0, %v667_v59  ;;  %v4561_v25 = vsub.f32 %v725_v4, %v733_v11  ;;  %v1086_v59 = vadd.s32 24, %v4530_v2  ;;  %v4595_v0 = vcvt.s32.f32 %v4530_v2 }
  0xf5   : > { %v697_v52 = vpop.permute.xlu1 %696  ;;  %v4597_v4 = vcvt.s32.f32 %v1084_v50  ;;  %v4605_v8 = vcvt.s32.f32 %v1088_v49 }
  0xf6   : > { %v735_v12 = vmul.f32 2.0, %v719_v9  ;;  %v713_v17 = vmul.f32 %v706_v15, %v697_v52  ;;  %v4557_v15 = vsub.f32 %v726_v36, %v734_v14  ;;  %v1102_v31 = vsel %vm1099_vm5, %v4561_v25, inf }
  0xf7   : > { %v4601_v45 = vcvt.s32.f32 %v1086_v59  ;;  %v4607_v9 = vcvt.s32.f32 %v1089_v53 }
  0xf8   : > { %v4552_v43 = vsub.f32 %v727_v13, %v735_v12  ;;  %v721_v21 = vadd.f32 %v713_v17, %v669_v56  ;;  %v1103_v34 = vsel %vm1099_vm5, %v4557_v15, inf }
  0xf9   : > { %v1111_v48 = vmin.f32 %v1103_v34, %v1110_v46 }
  0xfa   : > { %v1104_v26 = vsel %vm1099_vm5, %v4552_v43, inf  ;;  %v737_v27 = vmul.f32 2.0, %v721_v21 }
  0xfb   : > { %v1105_v33 = vmin.f32 %v1100_v29, %v1104_v26 }
  0xfc   : > { %v4573_v32 = vsub.f32 %v729_v23, %v737_v27 }
  0xfd   : > { %v1112_v57 = vmin.f32 %v1105_v33, %v1107_v55 }
  0xfe   : > { %v1108_v37 = vsel %vm1099_vm5, %v4573_v32, inf }
  0xff   : > { %v1109_v54 = vmin.f32 %v1102_v31, %v1108_v37 }
 0x101   : > { %v1113_v58 = vmin.f32 %v1109_v54, %v1111_v48  ;;  %v4255_v54 = vmov 1.0  }
 0x103   : > { %v1114_v61 = vmin.f32 %v1112_v57, %v1113_v58 }
 0x105   : > { %v1115_v44 = vrot.slane %v1114_v61, 4 }
 0x107   : > { %v1116_v47 = vmin.f32 %v1114_v61, %v1115_v44 }
 0x109   : > { %v1117_v51 = vrot.slane %v1116_v47, 2 }
 0x10b   : > { %v1118_v63 = vmin.f32 %v1116_v47, %v1117_v51 }
 0x10d   : > { %v1119_v3 = vrot.slane %v1118_v63, 1 }
 0x10f   : > { %v1120_v6 = vmin.f32 %v1118_v63, %v1119_v3 }
 0x111   : > { %vm1121_vm6 = vcmp.eq.f32.partialorder %v4546_v39, %v1120_v6  ;;  %vm1122_vm7 = vcmp.eq.f32.partialorder %v4550_v42, %v1120_v6  ;;  %vm1123_vm8 = vcmp.eq.f32.partialorder %v4561_v25, %v1120_v6  ;;  %vm1124_vm9 = vcmp.eq.f32.partialorder %v4557_v15, %v1120_v6 }
 0x112   : > { %vm1125_vm10 = vcmp.eq.f32.partialorder %v4552_v43, %v1120_v6  ;;  %vm1126_vm11 = vcmp.eq.f32.partialorder %v4559_v38, %v1120_v6  ;;  %vm1127_vm12 = vcmp.eq.f32.partialorder %v4573_v32, %v1120_v6  ;;  %vm1128_vm13 = vcmp.eq.f32.partialorder %v4548_v41, %v1120_v6 }
 0x113   : > { %v1129_v2 = vsel %vm1121_vm6, %v4595_v0, 64.0  ;;  %v1130_v13 = vsel %vm1122_vm7, %v4597_v4, 64.0  ;;  %v1131_v14 = vsel %vm1123_vm8, %v4599_v5, 64.0  ;;  %v1132_v16 = vsel %vm1124_vm9, %v4601_v45, 64.0 }
 0x114   : > { %v1133_v52 = vsel %vm1125_vm10, %v4603_v7, 64.0  ;;  %v1134_v56 = vsel %vm1126_vm11, %v4605_v8, 64.0  ;;  %v1135_v11 = vsel %vm1127_vm12, %v4607_v9, 64.0  ;;  %v1136_v12 = vsel %vm1128_vm13, %v4609_v10, 64.0 }
 0x115   : > { %v1137_v17 = vsel %vm1099_vm5, %v1129_v2, inf  ;;  %v1138_v36 = vsel %vm1099_vm5, %v1130_v13, inf  ;;  %v1139_v18 = vsel %vm1099_vm5, %v1131_v14, inf  ;;  %v1140_v19 = vsel %vm1099_vm5, %v1132_v16, inf }
 0x116   : > { %v1141_v20 = vsel %vm1099_vm5, %v1133_v52, inf  ;;  %v1143_v21 = vsel %vm1099_vm5, %v1134_v56, inf  ;;  %v1145_v23 = vsel %vm1099_vm5, %v1135_v11, inf  ;;  %v1147_v40 = vsel %vm1099_vm5, %v1136_v12, inf }
 0x117   : > { %v1142_v24 = vmin.f32 %v1137_v17, %v1141_v20  ;;  %v1144_v26 = vmin.f32 %v1138_v36, %v1143_v21  ;;  %v1146_v27 = vmin.f32 %v1139_v18, %v1145_v23  ;;  %v1148_v29 = vmin.f32 %v1140_v19, %v1147_v40 }
 0x119   : > { %v1149_v46 = vmin.f32 %v1142_v24, %v1144_v26  ;;  %v1150_v30 = vmin.f32 %v1146_v27, %v1148_v29 }
 0x11b   : > { %v1151_v33 = vmin.f32 %v1149_v46, %v1150_v30 }
 0x11d   : > { %v1152_v34 = vrot.slane %v1151_v33, 4 }
 0x11f   : > { %v1153_v35 = vmin.f32 %v1151_v33, %v1152_v34 }
 0x121   : > { %v1154_v31 = vrot.slane %v1153_v35, 2 }
 0x123   : > { %v1155_v37 = vmin.f32 %v1153_v35, %v1154_v31 }
 0x125   : > { %v1156_v48 = vrot.slane %v1155_v37, 1 }
 0x127   : > { %v1157_v55 = vmin.f32 %v1155_v37, %v1156_v48 }
 0x129   : > { %vm1165_vm14 = vcmp.eq.f32.partialorder %v4609_v10, %v1157_v55  ;;  %vm1164_vm15 = vcmp.eq.f32.partialorder %v4607_v9, %v1157_v55  ;;  %vm1163_vm0 = vcmp.eq.f32.partialorder %v4605_v8, %v1157_v55  ;;  %vm1162_vm1 = vcmp.eq.f32.partialorder %v4603_v7, %v1157_v55 }
 0x12a   : > { %3921 = vmatprep.subr.msk.mxu0 %vm1165_vm14, %v4255_v54  ;;  %v4641_v57 = vsel %vm1165_vm14, 1e+30, %v4548_v41  ;;  %v4646_v58 = vsel %vm1164_vm15, 1e+30, %v4573_v32  ;;  %v4651_v61 = vsel %vm1163_vm0, 1e+30, %v4559_v38  ;;  %vm1161_vm2 = vcmp.eq.f32.partialorder %v4601_v45, %v1157_v55 }
 0x12b   : > { %v1273_v44 = vsel %vm1099_vm5, %v4641_v57, inf  ;;  %3922 = vmatpush3.msk.msra.mxu0 %vm1165_vm14, %v4255_v54  ;;  %v1271_v41 = vsel %vm1099_vm5, %v4646_v58, inf  ;;  %v1269_v47 = vsel %vm1099_vm5, %v4651_v61, inf  ;;  %v4664_v32 = vsel %vm1162_vm1, 1e+30, %v4552_v43 }
 0x12c   : > { %3923 = vmatprep.subr.msk.mxu0 %vm1164_vm15, %v4255_v54  ;;  %v1267_v38 = vsel %vm1099_vm5, %v4664_v32, inf  ;;  %v4674_v51 = vsel %vm1161_vm2, 1e+30, %v4557_v15  ;;  %vm1160_vm3 = vcmp.eq.f32.partialorder %v4599_v5, %v1157_v55  ;;  %vm1159_vm4 = vcmp.eq.f32.partialorder %v4597_v4, %v1157_v55 }
 0x12d   : > { %3924 = vmatpush3.msk.msra.mxu0 %vm1164_vm15, %v4255_v54  ;;  %v1266_v43 = vsel %vm1099_vm5, %v4674_v51, inf  ;;  %v4686_v50 = vsel %vm1160_vm3, 1e+30, %v4561_v25  ;;  %v4691_v15 = vsel %vm1159_vm4, 1e+30, %v4550_v42  ;;  %vm1158_vm6 = vcmp.eq.f32.partialorder %v4595_v0, %v1157_v55 }
 0x12e   : > { %3925 = vmatprep.subr.msk.mxu0 %vm1163_vm0, %v4255_v54  ;;  %v1274_v62 = vmin.f32 %v1266_v43, %v1273_v44  ;;  %v1265_v59 = vsel %vm1099_vm5, %v4686_v50, inf  ;;  %v1264_v63 = vsel %vm1099_vm5, %v4691_v15, inf  ;;  %v4704_v25 = vsel %vm1158_vm6, 1e+30, %v4546_v39 }
 0x12f   : > { %3926 = vmatpush3.msk.msra.mxu0 %vm1163_vm0, %v4255_v54  ;;  %v1272_v42 = vmin.f32 %v1265_v59, %v1271_v41  ;;  %v1270_v1 = vmin.f32 %v1264_v63, %v1269_v47  ;;  %v1263_v49 = vsel %vm1099_vm5, %v4704_v25, inf }
 0x130   : > { %3927 = vmatprep.subr.msk.mxu0 %vm1162_vm1, %v4255_v54  ;;  %v1268_v53 = vmin.f32 %v1263_v49, %v1267_v38 }
 0x131   : > { %3928 = vmatpush3.msk.msra.mxu0 %vm1162_vm1, %v4255_v54  ;;  %v1276_v39 = vmin.f32 %v1272_v42, %v1274_v62 }
 0x132   : > { %3929 = vmatprep.subr.msk.mxu0 %vm1161_vm2, %v4255_v54  ;;  %v1275_v60 = vmin.f32 %v1268_v53, %v1270_v1 }
 0x133   : > { %3930 = vmatpush3.msk.msra.mxu0 %vm1161_vm2, %v4255_v54 }
 0x134   : > { %3931 = vmatprep.subr.msk.mxu0 %vm1160_vm3, %v4255_v54  ;;  %v1277_v3 = vmin.f32 %v1275_v60, %v1276_v39 }
 0x135   : > { %3932 = vmatpush3.msk.msra.mxu0 %vm1160_vm3, %v4255_v54 }
 0x136   : > { %3933 = vmatprep.subr.msk.mxu0 %vm1159_vm4, %v4255_v54  ;;  %v1278_v6 = vrot.slane %v1277_v3, 4 }
 0x137   : > { %3934 = vmatpush3.msk.msra.mxu0 %vm1159_vm4, %v4255_v54 }
 0x138   : > { %3935 = vmatprep.subr.msk.mxu0 %vm1158_vm6, %v4255_v54  ;;  %v1279_v2 = vmin.f32 %v1277_v3, %v1278_v6 }
 0x139   : > { %3936 = vmatpush3.msk.msra.mxu0 %vm1158_vm6, %v4255_v54 }
 0x13a   : > { %v1280_v13 = vrot.slane %v1279_v2, 2  ;;  %3938 = vmatmul.mubr.msk.f32.vlgmr.msra.gmra.mxu0 %vm1099_vm5, %v4554_v22 }
 0x13b   : > { %3975 = vmatprep.mubr.msk.f32.mxu0 %vm1099_vm5, %v4565_v28 }
 0x13c   : > { %v1281_v14 = vmin.f32 %v1279_v2, %v1280_v13 }
 0x13e   : > { %v1282_v16 = vrot.slane %v1281_v14, 1 }
 0x140   : > { %v1283_v52 = vmin.f32 %v1281_v14, %v1282_v16 }
 0x142   : > { %vm1284_vm7 = vcmp.eq.f32.partialorder %v4704_v25, %v1283_v52  ;;  %vm1285_vm8 = vcmp.eq.f32.partialorder %v4691_v15, %v1283_v52  ;;  %vm1286_vm9 = vcmp.eq.f32.partialorder %v4686_v50, %v1283_v52  ;;  %vm1287_vm10 = vcmp.eq.f32.partialorder %v4674_v51, %v1283_v52 }
 0x143   : > { %v1292_v56 = vsel %vm1284_vm7, %v4595_v0, 64.0  ;;  %vm1288_vm11 = vcmp.eq.f32.partialorder %v4664_v32, %v1283_v52  ;;  %vm1289_vm12 = vcmp.eq.f32.partialorder %v4651_v61, %v1283_v52  ;;  %vm1290_vm13 = vcmp.eq.f32.partialorder %v4646_v58, %v1283_v52 }
 0x144   : > { %v1300_v11 = vsel %vm1099_vm5, %v1292_v56, inf  ;;  %vm1291_vm14 = vcmp.eq.f32.partialorder %v4641_v57, %v1283_v52  ;;  %v1293_v12 = vsel %vm1285_vm8, %v4597_v4, 64.0  ;;  %v1294_v17 = vsel %vm1286_vm9, %v4599_v5, 64.0 }
 0x145   : > { %v1295_v36 = vsel %vm1287_vm10, %v4601_v45, 64.0  ;;  %v1296_v18 = vsel %vm1288_vm11, %v4603_v7, 64.0  ;;  %v1297_v19 = vsel %vm1289_vm12, %v4605_v8, 64.0  ;;  %v1298_v20 = vsel %vm1290_vm13, %v4607_v9, 64.0 }
 0x146   : > { %v1299_v21 = vsel %vm1291_vm14, %v4609_v10, 64.0  ;;  %v1301_v23 = vsel %vm1099_vm5, %v1293_v12, inf  ;;  %v1302_v40 = vsel %vm1099_vm5, %v1294_v17, inf  ;;  %v1303_v24 = vsel %vm1099_vm5, %v1295_v36, inf }
 0x147   : > { %v1304_v26 = vsel %vm1099_vm5, %v1296_v18, inf  ;;  %v1306_v27 = vsel %vm1099_vm5, %v1297_v19, inf  ;;  %v1308_v29 = vsel %vm1099_vm5, %v1298_v20, inf  ;;  %v1310_v46 = vsel %vm1099_vm5, %v1299_v21, inf }
 0x148   : > { %v1305_v30 = vmin.f32 %v1300_v11, %v1304_v26  ;;  %v1307_v33 = vmin.f32 %v1301_v23, %v1306_v27  ;;  %v1309_v34 = vmin.f32 %v1302_v40, %v1308_v29  ;;  %v1311_v35 = vmin.f32 %v1303_v24, %v1310_v46 }
 0x14a   : > { %v1312_v31 = vmin.f32 %v1305_v30, %v1307_v33  ;;  %v1313_v37 = vmin.f32 %v1309_v34, %v1311_v35 }
 0x14c   : > { %v1314_v48 = vmin.f32 %v1312_v31, %v1313_v37 }
 0x14e   : > { %v1315_v55 = vrot.slane %v1314_v48, 4 }
 0x150   : > { %v1316_v44 = vmin.f32 %v1314_v48, %v1315_v55 }
 0x152   : > { %v1317_v41 = vrot.slane %v1316_v44, 2 }
 0x154   : > { %v1318_v47 = vmin.f32 %v1316_v44, %v1317_v41 }
 0x156   : > { %v1319_v38 = vrot.slane %v1318_v47, 1 }
 0x158   : > { %v1320_v43 = vmin.f32 %v1318_v47, %v1319_v38 }
 0x15a   : > { %vm1328_vm15 = vcmp.eq.f32.partialorder %v4609_v10, %v1320_v43  ;;  %vm1327_vm0 = vcmp.eq.f32.partialorder %v4607_v9, %v1320_v43  ;;  %vm1326_vm1 = vcmp.eq.f32.partialorder %v4605_v8, %v1320_v43  ;;  %vm1325_vm2 = vcmp.eq.f32.partialorder %v4603_v7, %v1320_v43 }
 0x15b   : > { %3940 = vmatprep.subr.msk.mxu1 %vm1328_vm15, %v4255_v54  ;;  %v4775_v62 = vsel %vm1328_vm15, 1e+30, %v4641_v57  ;;  %v4780_v59 = vsel %vm1327_vm0, 1e+30, %v4646_v58  ;;  %v4785_v63 = vsel %vm1326_vm1, 1e+30, %v4651_v61  ;;  %vm1324_vm3 = vcmp.eq.f32.partialorder %v4601_v45, %v1320_v43 }
 0x15c   : > { %v1430_v42 = vsel %vm1099_vm5, %v4775_v62, inf  ;;  %3941 = vmatpush3.msk.msra.mxu1 %vm1328_vm15, %v4255_v54  ;;  %v1428_v57 = vsel %vm1099_vm5, %v4780_v59, inf  ;;  %v1426_v1 = vsel %vm1099_vm5, %v4785_v63, inf  ;;  %v4798_v58 = vsel %vm1325_vm2, 1e+30, %v4664_v32 }
 0x15d   : > { %3942 = vmatprep.subr.msk.mxu1 %vm1327_vm0, %v4255_v54  ;;  %v1424_v61 = vsel %vm1099_vm5, %v4798_v58, inf  ;;  %v4808_v49 = vsel %vm1324_vm3, 1e+30, %v4674_v51  ;;  %vm1323_vm4 = vcmp.eq.f32.partialorder %v4599_v5, %v1320_v43  ;;  %vm1322_vm6 = vcmp.eq.f32.partialorder %v4597_v4, %v1320_v43 }
 0x15e   : > { %3943 = vmatpush3.msk.msra.mxu1 %vm1327_vm0, %v4255_v54  ;;  %v1423_v32 = vsel %vm1099_vm5, %v4808_v49, inf  ;;  %v4820_v53 = vsel %vm1323_vm4, 1e+30, %v4686_v50  ;;  %v4825_v51 = vsel %vm1322_vm6, 1e+30, %v4691_v15  ;;  %vm1321_vm7 = vcmp.eq.f32.partialorder %v4595_v0, %v1320_v43 }
 0x15f   : > { %3944 = vmatprep.subr.msk.mxu1 %vm1326_vm1, %v4255_v54  ;;  %v1431_v39 = vmin.f32 %v1423_v32, %v1430_v42  ;;  %v1422_v60 = vsel %vm1099_vm5, %v4820_v53, inf  ;;  %v1421_v3 = vsel %vm1099_vm5, %v4825_v51, inf  ;;  %v4838_v50 = vsel %vm1321_vm7, 1e+30, %v4704_v25 }
 0x160   : > { %3945 = vmatpush3.msk.msra.mxu1 %vm1326_vm1, %v4255_v54  ;;  %v1429_v15 = vmin.f32 %v1422_v60, %v1428_v57  ;;  %v1427_v6 = vmin.f32 %v1421_v3, %v1426_v1  ;;  %v1420_v2 = vsel %vm1099_vm5, %v4838_v50, inf }
 0x161   : > { %3946 = vmatprep.subr.msk.mxu1 %vm1325_vm2, %v4255_v54  ;;  %v1425_v13 = vmin.f32 %v1420_v2, %v1424_v61 }
 0x162   : > { %3947 = vmatpush3.msk.msra.mxu1 %vm1325_vm2, %v4255_v54  ;;  %v1433_v25 = vmin.f32 %v1429_v15, %v1431_v39 }
 0x163   : > { %3948 = vmatprep.subr.msk.mxu1 %vm1324_vm3, %v4255_v54  ;;  %v1432_v14 = vmin.f32 %v1425_v13, %v1427_v6 }
 0x164   : > { %3949 = vmatpush3.msk.msra.mxu1 %vm1324_vm3, %v4255_v54 }
 0x165   : > { %3950 = vmatprep.subr.msk.mxu1 %vm1323_vm4, %v4255_v54  ;;  %v1434_v16 = vmin.f32 %v1432_v14, %v1433_v25 }
 0x166   : > { %3951 = vmatpush3.msk.msra.mxu1 %vm1323_vm4, %v4255_v54 }
 0x167   : > { %3952 = vmatprep.subr.msk.mxu1 %vm1322_vm6, %v4255_v54  ;;  %v1435_v52 = vrot.slane %v1434_v16, 4 }
 0x168   : > { %3953 = vmatpush3.msk.msra.mxu1 %vm1322_vm6, %v4255_v54 }
 0x169   : > { %3954 = vmatprep.subr.msk.mxu1 %vm1321_vm7, %v4255_v54  ;;  %v1436_v56 = vmin.f32 %v1434_v16, %v1435_v52 }
 0x16a   : > { %3955 = vmatpush3.msk.msra.mxu1 %vm1321_vm7, %v4255_v54 }
 0x16b   : > { %v1437_v11 = vrot.slane %v1436_v56, 2  ;;  %3957 = vmatmul.mubr.msk.f32.vlgmr.msra.gmra.mxu1 %vm1099_vm5, %v4554_v22 }
 0x16c   : > { %3994 = vmatprep.mubr.msk.f32.mxu1 %vm1099_vm5, %v4565_v28 }
 0x16d   : > { %v1438_v12 = vmin.f32 %v1436_v56, %v1437_v11 }
 0x16f   : > { %v1439_v17 = vrot.slane %v1438_v12, 1 }
 0x171   : > { %v1440_v36 = vmin.f32 %v1438_v12, %v1439_v17 }
 0x173   : > { %vm1441_vm8 = vcmp.eq.f32.partialorder %v4838_v50, %v1440_v36  ;;  %vm1442_vm9 = vcmp.eq.f32.partialorder %v4825_v51, %v1440_v36  ;;  %vm1443_vm10 = vcmp.eq.f32.partialorder %v4820_v53, %v1440_v36  ;;  %vm1444_vm11 = vcmp.eq.f32.partialorder %v4808_v49, %v1440_v36 }
 0x174   : > { %v1449_v18 = vsel %vm1441_vm8, %v4595_v0, 64.0  ;;  %vm1445_vm12 = vcmp.eq.f32.partialorder %v4798_v58, %v1440_v36  ;;  %vm1446_vm13 = vcmp.eq.f32.partialorder %v4785_v63, %v1440_v36  ;;  %vm1447_vm14 = vcmp.eq.f32.partialorder %v4780_v59, %v1440_v36 }
 0x175   : > { %v1457_v19 = vsel %vm1099_vm5, %v1449_v18, inf  ;;  %vm1448_vm15 = vcmp.eq.f32.partialorder %v4775_v62, %v1440_v36  ;;  %v1450_v20 = vsel %vm1442_vm9, %v4597_v4, 64.0  ;;  %v1451_v21 = vsel %vm1443_vm10, %v4599_v5, 64.0 }
 0x176   : > { %v1452_v23 = vsel %vm1444_vm11, %v4601_v45, 64.0  ;;  %v1453_v40 = vsel %vm1445_vm12, %v4603_v7, 64.0  ;;  %v1454_v24 = vsel %vm1446_vm13, %v4605_v8, 64.0  ;;  %v1455_v26 = vsel %vm1447_vm14, %v4607_v9, 64.0 }
 0x177   : > { %v1456_v27 = vsel %vm1448_vm15, %v4609_v10, 64.0  ;;  %v1458_v29 = vsel %vm1099_vm5, %v1450_v20, inf  ;;  %v1459_v46 = vsel %vm1099_vm5, %v1451_v21, inf  ;;  %v1460_v30 = vsel %vm1099_vm5, %v1452_v23, inf }
 0x178   : > { %v1461_v33 = vsel %vm1099_vm5, %v1453_v40, inf  ;;  %v1463_v34 = vsel %vm1099_vm5, %v1454_v24, inf  ;;  %v1465_v35 = vsel %vm1099_vm5, %v1455_v26, inf  ;;  %v1467_v31 = vsel %vm1099_vm5, %v1456_v27, inf }
 0x179   : > { %v1462_v37 = vmin.f32 %v1457_v19, %v1461_v33  ;;  %v1464_v48 = vmin.f32 %v1458_v29, %v1463_v34  ;;  %v1466_v55 = vmin.f32 %v1459_v46, %v1465_v35  ;;  %v1468_v44 = vmin.f32 %v1460_v30, %v1467_v31 }
 0x17b   : > { %v1469_v41 = vmin.f32 %v1462_v37, %v1464_v48  ;;  %v1470_v47 = vmin.f32 %v1466_v55, %v1468_v44 }
 0x17d   : > { %v1471_v38 = vmin.f32 %v1469_v41, %v1470_v47 }
 0x17f   : > { %v1472_v43 = vrot.slane %v1471_v38, 4 }
 0x181   : > { %v1473_v42 = vmin.f32 %v1471_v38, %v1472_v43 }
 0x183   : > { %v1474_v57 = vrot.slane %v1473_v42, 2 }
 0x185   : > { %v1475_v1 = vmin.f32 %v1473_v42, %v1474_v57 }
 0x187   : > { %v1476_v61 = vrot.slane %v1475_v1, 1 }
 0x189   : > { %v1477_v32 = vmin.f32 %v1475_v1, %v1476_v61 }
 0x18b   : > { %vm1485_vm0 = vcmp.eq.f32.partialorder %v4609_v10, %v1477_v32  ;;  %vm1484_vm1 = vcmp.eq.f32.partialorder %v4607_v9, %v1477_v32  ;;  %vm1483_vm2 = vcmp.eq.f32.partialorder %v4605_v8, %v1477_v32  ;;  %vm1482_vm3 = vcmp.eq.f32.partialorder %v4603_v7, %v1477_v32 }
 0x18c   : > { %3959 = vmatprep.subr.msk.mxu0 %vm1485_vm0, %v4255_v54  ;;  %v4909_v39 = vsel %vm1485_vm0, 1e+30, %v4775_v62  ;;  %v4914_v60 = vsel %vm1484_vm1, 1e+30, %v4780_v59  ;;  %v4919_v3 = vsel %vm1483_vm2, 1e+30, %v4785_v63  ;;  %vm1481_vm4 = vcmp.eq.f32.partialorder %v4601_v45, %v1477_v32 }
 0x18d   : > { %v1587_v15 = vsel %vm1099_vm5, %v4909_v39, inf  ;;  %3960 = vmatpush3.msk.msra.mxu0 %vm1485_vm0, %v4255_v54  ;;  %v1585_v62 = vsel %vm1099_vm5, %v4914_v60, inf  ;;  %v1583_v6 = vsel %vm1099_vm5, %v4919_v3, inf  ;;  %v4932_v59 = vsel %vm1482_vm3, 1e+30, %v4798_v58 }
 0x18e   : > { %3961 = vmatprep.subr.msk.mxu0 %vm1484_vm1, %v4255_v54  ;;  %v1581_v63 = vsel %vm1099_vm5, %v4932_v59, inf  ;;  %v4942_v2 = vsel %vm1481_vm4, 1e+30, %v4808_v49  ;;  %vm1480_vm6 = vcmp.eq.f32.partialorder %v4599_v5, %v1477_v32  ;;  %vm1479_vm7 = vcmp.eq.f32.partialorder %v4597_v4, %v1477_v32 }
 0x18f   : > { %3962 = vmatpush3.msk.msra.mxu0 %vm1484_vm1, %v4255_v54  ;;  %v1580_v58 = vsel %vm1099_vm5, %v4942_v2, inf  ;;  %v4954_v13 = vsel %vm1480_vm6, 1e+30, %v4820_v53  ;;  %v4959_v49 = vsel %vm1479_vm7, 1e+30, %v4825_v51  ;;  %vm1478_vm8 = vcmp.eq.f32.partialorder %v4595_v0, %v1477_v32 }
 0x190   : > { %3963 = vmatprep.subr.msk.mxu0 %vm1483_vm2, %v4255_v54  ;;  %v1588_v25 = vmin.f32 %v1580_v58, %v1587_v15  ;;  %v1579_v14 = vsel %vm1099_vm5, %v4954_v13, inf  ;;  %v1578_v16 = vsel %vm1099_vm5, %v4959_v49, inf  ;;  %v4972_v53 = vsel %vm1478_vm8, 1e+30, %v4838_v50 }
 0x191   : > { %3964 = vmatpush3.msk.msra.mxu0 %vm1483_vm2, %v4255_v54  ;;  %v1586_v51 = vmin.f32 %v1579_v14, %v1585_v62  ;;  %v1584_v52 = vmin.f32 %v1578_v16, %v1583_v6  ;;  %v1577_v56 = vsel %vm1099_vm5, %v4972_v53, inf }
 0x192   : > { %3965 = vmatprep.subr.msk.mxu0 %vm1482_vm3, %v4255_v54  ;;  %v1582_v11 = vmin.f32 %v1577_v56, %v1581_v63 }
 0x193   : > { %3966 = vmatpush3.msk.msra.mxu0 %vm1482_vm3, %v4255_v54  ;;  %v1590_v50 = vmin.f32 %v1586_v51, %v1588_v25 }
 0x194   : > { %3967 = vmatprep.subr.msk.mxu0 %vm1481_vm4, %v4255_v54  ;;  %v1589_v12 = vmin.f32 %v1582_v11, %v1584_v52 }
 0x195   : > { %3968 = vmatpush3.msk.msra.mxu0 %vm1481_vm4, %v4255_v54 }
 0x196   : > { %3969 = vmatprep.subr.msk.mxu0 %vm1480_vm6, %v4255_v54  ;;  %v1591_v17 = vmin.f32 %v1589_v12, %v1590_v50 }
 0x197   : > { %3970 = vmatpush3.msk.msra.mxu0 %vm1480_vm6, %v4255_v54 }
 0x198   : > { %3971 = vmatprep.subr.msk.mxu0 %vm1479_vm7, %v4255_v54  ;;  %v1592_v36 = vrot.slane %v1591_v17, 4 }
 0x199   : > { %3972 = vmatpush3.msk.msra.mxu0 %vm1479_vm7, %v4255_v54 }
 0x19a   : > { %3973 = vmatprep.subr.msk.mxu0 %vm1478_vm8, %v4255_v54  ;;  %v1593_v18 = vmin.f32 %v1591_v17, %v1592_v36 }
 0x19b   : > { %3974 = vmatpush3.msk.msra.mxu0 %vm1478_vm8, %v4255_v54 }
 0x19c   : > { %v1594_v19 = vrot.slane %v1593_v18, 2  ;;  %3976 = vmatmul.mubr.msk.f32.vlgmr.msra.gmra.mxu0 %vm1099_vm5, %v4554_v22 }
 0x19d   : > { %4013 = vmatprep.mubr.msk.f32.mxu0 %vm1099_vm5, %v4565_v28 }
 0x19e   : > { %v1595_v20 = vmin.f32 %v1593_v18, %v1594_v19 }
 0x1a0   : > { %v1596_v21 = vrot.slane %v1595_v20, 1 }
 0x1a2   : > { %v1597_v23 = vmin.f32 %v1595_v20, %v1596_v21 }
 0x1a4   : > { %vm1598_vm9 = vcmp.eq.f32.partialorder %v4972_v53, %v1597_v23  ;;  %vm1599_vm10 = vcmp.eq.f32.partialorder %v4959_v49, %v1597_v23  ;;  %vm1600_vm11 = vcmp.eq.f32.partialorder %v4954_v13, %v1597_v23  ;;  %vm1601_vm12 = vcmp.eq.f32.partialorder %v4942_v2, %v1597_v23 }
 0x1a5   : > { %v1606_v40 = vsel %vm1598_vm9, %v4595_v0, 64.0  ;;  %vm1602_vm13 = vcmp.eq.f32.partialorder %v4932_v59, %v1597_v23  ;;  %vm1603_vm14 = vcmp.eq.f32.partialorder %v4919_v3, %v1597_v23  ;;  %vm1604_vm15 = vcmp.eq.f32.partialorder %v4914_v60, %v1597_v23 }
 0x1a6   : > { %v1614_v24 = vsel %vm1099_vm5, %v1606_v40, inf  ;;  %vm1605_vm0 = vcmp.eq.f32.partialorder %v4909_v39, %v1597_v23  ;;  %v1607_v26 = vsel %vm1599_vm10, %v4597_v4, 64.0  ;;  %v1608_v27 = vsel %vm1600_vm11, %v4599_v5, 64.0 }
 0x1a7   : > { %v1609_v29 = vsel %vm1601_vm12, %v4601_v45, 64.0  ;;  %v1610_v46 = vsel %vm1602_vm13, %v4603_v7, 64.0  ;;  %v1611_v30 = vsel %vm1603_vm14, %v4605_v8, 64.0  ;;  %v1612_v33 = vsel %vm1604_vm15, %v4607_v9, 64.0 }
 0x1a8   : > { %v1613_v34 = vsel %vm1605_vm0, %v4609_v10, 64.0  ;;  %v1615_v35 = vsel %vm1099_vm5, %v1607_v26, inf  ;;  %v1616_v31 = vsel %vm1099_vm5, %v1608_v27, inf  ;;  %v1617_v37 = vsel %vm1099_vm5, %v1609_v29, inf }
 0x1a9   : > { %v1618_v48 = vsel %vm1099_vm5, %v1610_v46, inf  ;;  %v1620_v55 = vsel %vm1099_vm5, %v1611_v30, inf  ;;  %v1622_v44 = vsel %vm1099_vm5, %v1612_v33, inf  ;;  %v1624_v41 = vsel %vm1099_vm5, %v1613_v34, inf }
 0x1aa   : > { %v1619_v47 = vmin.f32 %v1614_v24, %v1618_v48  ;;  %v1621_v38 = vmin.f32 %v1615_v35, %v1620_v55  ;;  %v1623_v43 = vmin.f32 %v1616_v31, %v1622_v44  ;;  %v1625_v42 = vmin.f32 %v1617_v37, %v1624_v41 }
 0x1ac   : > { %v1626_v57 = vmin.f32 %v1619_v47, %v1621_v38  ;;  %v1627_v1 = vmin.f32 %v1623_v43, %v1625_v42 }
 0x1ae   : > { %v1628_v61 = vmin.f32 %v1626_v57, %v1627_v1 }
 0x1b0   : > { %v1629_v32 = vrot.slane %v1628_v61, 4 }
 0x1b2   : > { %v1630_v15 = vmin.f32 %v1628_v61, %v1629_v32 }
 0x1b4   : > { %v1631_v62 = vrot.slane %v1630_v15, 2 }
 0x1b6   : > { %v1632_v6 = vmin.f32 %v1630_v15, %v1631_v62 }
 0x1b8   : > { %v1633_v63 = vrot.slane %v1632_v6, 1 }
 0x1ba   : > { %v1634_v58 = vmin.f32 %v1632_v6, %v1633_v63 }
 0x1bc   : > { %vm1642_vm1 = vcmp.eq.f32.partialorder %v4609_v10, %v1634_v58  ;;  %vm1641_vm2 = vcmp.eq.f32.partialorder %v4607_v9, %v1634_v58  ;;  %vm1640_vm3 = vcmp.eq.f32.partialorder %v4605_v8, %v1634_v58  ;;  %vm1639_vm4 = vcmp.eq.f32.partialorder %v4603_v7, %v1634_v58 }
 0x1bd   : > { %3978 = vmatprep.subr.msk.mxu1 %vm1642_vm1, %v4255_v54  ;;  %v5043_v25 = vsel %vm1642_vm1, 1e+30, %v4909_v39  ;;  %v5048_v14 = vsel %vm1641_vm2, 1e+30, %v4914_v60  ;;  %v5053_v16 = vsel %vm1640_vm3, 1e+30, %v4919_v3  ;;  %vm1638_vm6 = vcmp.eq.f32.partialorder %v4601_v45, %v1634_v58 }
 0x1be   : > { %v1744_v51 = vsel %vm1099_vm5, %v5043_v25, inf  ;;  %3979 = vmatpush3.msk.msra.mxu1 %vm1642_vm1, %v4255_v54  ;;  %v1742_v39 = vsel %vm1099_vm5, %v5048_v14, inf  ;;  %v1740_v52 = vsel %vm1099_vm5, %v5053_v16, inf  ;;  %v5066_v60 = vsel %vm1639_vm4, 1e+30, %v4932_v59 }
 0x1bf   : > { %3980 = vmatprep.subr.msk.mxu1 %vm1641_vm2, %v4255_v54  ;;  %v1738_v3 = vsel %vm1099_vm5, %v5066_v60, inf  ;;  %v5076_v56 = vsel %vm1638_vm6, 1e+30, %v4942_v2  ;;  %vm1637_vm7 = vcmp.eq.f32.partialorder %v4599_v5, %v1634_v58  ;;  %vm1636_vm8 = vcmp.eq.f32.partialorder %v4597_v4, %v1634_v58 }
 0x1c0   : > { %3981 = vmatpush3.msk.msra.mxu1 %vm1641_vm2, %v4255_v54  ;;  %v1737_v59 = vsel %vm1099_vm5, %v5076_v56, inf  ;;  %v5088_v11 = vsel %vm1637_vm7, 1e+30, %v4954_v13  ;;  %v5093_v2 = vsel %vm1636_vm8, 1e+30, %v4959_v49  ;;  %vm1635_vm9 = vcmp.eq.f32.partialorder %v4595_v0, %v1634_v58 }
 0x1c1   : > { %3982 = vmatprep.subr.msk.mxu1 %vm1640_vm3, %v4255_v54  ;;  %v1745_v50 = vmin.f32 %v1737_v59, %v1744_v51  ;;  %v1736_v12 = vsel %vm1099_vm5, %v5088_v11, inf  ;;  %v1735_v17 = vsel %vm1099_vm5, %v5093_v2, inf  ;;  %v5106_v13 = vsel %vm1635_vm9, 1e+30, %v4972_v53 }
 0x1c2   : > { %3983 = vmatpush3.msk.msra.mxu1 %vm1640_vm3, %v4255_v54  ;;  %v1743_v49 = vmin.f32 %v1736_v12, %v1742_v39  ;;  %v1741_v36 = vmin.f32 %v1735_v17, %v1740_v52  ;;  %v1734_v18 = vsel %vm1099_vm5, %v5106_v13, inf }
 0x1c3   : > { %3984 = vmatprep.subr.msk.mxu1 %vm1639_vm4, %v4255_v54  ;;  %v1739_v19 = vmin.f32 %v1734_v18, %v1738_v3 }
 0x1c4   : > { %3985 = vmatpush3.msk.msra.mxu1 %vm1639_vm4, %v4255_v54  ;;  %v1747_v53 = vmin.f32 %v1743_v49, %v1745_v50 }
 0x1c5   : > { %3986 = vmatprep.subr.msk.mxu1 %vm1638_vm6, %v4255_v54  ;;  %v1746_v20 = vmin.f32 %v1739_v19, %v1741_v36 }
 0x1c6   : > { %3987 = vmatpush3.msk.msra.mxu1 %vm1638_vm6, %v4255_v54 }
 0x1c7   : > { %3988 = vmatprep.subr.msk.mxu1 %vm1637_vm7, %v4255_v54  ;;  %v1748_v21 = vmin.f32 %v1746_v20, %v1747_v53 }
 0x1c8   : > { %3989 = vmatpush3.msk.msra.mxu1 %vm1637_vm7, %v4255_v54 }
 0x1c9   : > { %3990 = vmatprep.subr.msk.mxu1 %vm1636_vm8, %v4255_v54  ;;  %v1749_v23 = vrot.slane %v1748_v21, 4 }
 0x1ca   : > { %3991 = vmatpush3.msk.msra.mxu1 %vm1636_vm8, %v4255_v54 }
 0x1cb   : > { %3992 = vmatprep.subr.msk.mxu1 %vm1635_vm9, %v4255_v54  ;;  %v1750_v40 = vmin.f32 %v1748_v21, %v1749_v23 }
 0x1cc   : > { %3993 = vmatpush3.msk.msra.mxu1 %vm1635_vm9, %v4255_v54 }
 0x1cd   : > { %v1751_v24 = vrot.slane %v1750_v40, 2  ;;  %3995 = vmatmul.mubr.msk.f32.vlgmr.msra.gmra.mxu1 %vm1099_vm5, %v4554_v22 }
 0x1ce   : > { %4032 = vmatprep.mubr.msk.f32.mxu1 %vm1099_vm5, %v4565_v28 }
 0x1cf   : > { %v1752_v26 = vmin.f32 %v1750_v40, %v1751_v24 }
 0x1d1   : > { %v1753_v27 = vrot.slane %v1752_v26, 1 }
 0x1d3   : > { %v1754_v29 = vmin.f32 %v1752_v26, %v1753_v27 }
 0x1d5   : > { %vm1755_vm10 = vcmp.eq.f32.partialorder %v5106_v13, %v1754_v29  ;;  %vm1756_vm11 = vcmp.eq.f32.partialorder %v5093_v2, %v1754_v29  ;;  %vm1757_vm12 = vcmp.eq.f32.partialorder %v5088_v11, %v1754_v29  ;;  %vm1758_vm13 = vcmp.eq.f32.partialorder %v5076_v56, %v1754_v29 }
 0x1d6   : > { %v1763_v46 = vsel %vm1755_vm10, %v4595_v0, 64.0  ;;  %vm1759_vm14 = vcmp.eq.f32.partialorder %v5066_v60, %v1754_v29  ;;  %vm1760_vm15 = vcmp.eq.f32.partialorder %v5053_v16, %v1754_v29  ;;  %vm1761_vm0 = vcmp.eq.f32.partialorder %v5048_v14, %v1754_v29 }
 0x1d7   : > { %v1771_v30 = vsel %vm1099_vm5, %v1763_v46, inf  ;;  %vm1762_vm1 = vcmp.eq.f32.partialorder %v5043_v25, %v1754_v29  ;;  %v1764_v33 = vsel %vm1756_vm11, %v4597_v4, 64.0  ;;  %v1765_v34 = vsel %vm1757_vm12, %v4599_v5, 64.0 }
 0x1d8   : > { %v1766_v35 = vsel %vm1758_vm13, %v4601_v45, 64.0  ;;  %v1767_v31 = vsel %vm1759_vm14, %v4603_v7, 64.0  ;;  %v1768_v37 = vsel %vm1760_vm15, %v4605_v8, 64.0  ;;  %v1769_v48 = vsel %vm1761_vm0, %v4607_v9, 64.0 }
 0x1d9   : > { %v1770_v55 = vsel %vm1762_vm1, %v4609_v10, 64.0  ;;  %v1772_v44 = vsel %vm1099_vm5, %v1764_v33, inf  ;;  %v1773_v41 = vsel %vm1099_vm5, %v1765_v34, inf  ;;  %v1774_v47 = vsel %vm1099_vm5, %v1766_v35, inf }
 0x1da   : > { %v1775_v38 = vsel %vm1099_vm5, %v1767_v31, inf  ;;  %v1777_v43 = vsel %vm1099_vm5, %v1768_v37, inf  ;;  %v1779_v42 = vsel %vm1099_vm5, %v1769_v48, inf  ;;  %v1781_v57 = vsel %vm1099_vm5, %v1770_v55, inf }
 0x1db   : > { %v1776_v1 = vmin.f32 %v1771_v30, %v1775_v38  ;;  %v1778_v61 = vmin.f32 %v1772_v44, %v1777_v43  ;;  %v1780_v32 = vmin.f32 %v1773_v41, %v1779_v42  ;;  %v1782_v15 = vmin.f32 %v1774_v47, %v1781_v57 }
 0x1dd   : > { %v1783_v62 = vmin.f32 %v1776_v1, %v1778_v61  ;;  %v1784_v6 = vmin.f32 %v1780_v32, %v1782_v15 }
 0x1df   : > { %v1785_v63 = vmin.f32 %v1783_v62, %v1784_v6 }
 0x1e1   : > { %v1786_v58 = vrot.slane %v1785_v63, 4 }
 0x1e3   : > { %v1787_v51 = vmin.f32 %v1785_v63, %v1786_v58 }
 0x1e5   : > { %v1788_v39 = vrot.slane %v1787_v51, 2 }
 0x1e7   : > { %v1789_v52 = vmin.f32 %v1787_v51, %v1788_v39 }
 0x1e9   : > { %v1790_v3 = vrot.slane %v1789_v52, 1 }
 0x1eb   : > { %v1791_v59 = vmin.f32 %v1789_v52, %v1790_v3 }
 0x1ed   : > { %vm1799_vm2 = vcmp.eq.f32.partialorder %v4609_v10, %v1791_v59  ;;  %vm1798_vm3 = vcmp.eq.f32.partialorder %v4607_v9, %v1791_v59  ;;  %vm1797_vm4 = vcmp.eq.f32.partialorder %v4605_v8, %v1791_v59  ;;  %vm1796_vm6 = vcmp.eq.f32.partialorder %v4603_v7, %v1791_v59 }
 0x1ee   : > { %3997 = vmatprep.subr.msk.mxu0 %vm1799_vm2, %v4255_v54  ;;  %v5177_v50 = vsel %vm1799_vm2, 1e+30, %v5043_v25  ;;  %v5182_v12 = vsel %vm1798_vm3, 1e+30, %v5048_v14  ;;  %v5187_v17 = vsel %vm1797_vm4, 1e+30, %v5053_v16  ;;  %vm1795_vm7 = vcmp.eq.f32.partialorder %v4601_v45, %v1791_v59 }
 0x1ef   : > { %v1901_v49 = vsel %vm1099_vm5, %v5177_v50, inf  ;;  %3998 = vmatpush3.msk.msra.mxu0 %vm1799_vm2, %v4255_v54  ;;  %v1899_v25 = vsel %vm1099_vm5, %v5182_v12, inf  ;;  %v1897_v36 = vsel %vm1099_vm5, %v5187_v17, inf  ;;  %v5200_v14 = vsel %vm1796_vm6, 1e+30, %v5066_v60 }
 0x1f0   : > { %3999 = vmatprep.subr.msk.mxu0 %vm1798_vm3, %v4255_v54  ;;  %v1895_v16 = vsel %vm1099_vm5, %v5200_v14, inf  ;;  %v5210_v18 = vsel %vm1795_vm7, 1e+30, %v5076_v56  ;;  %vm1794_vm8 = vcmp.eq.f32.partialorder %v4599_v5, %v1791_v59  ;;  %vm1793_vm9 = vcmp.eq.f32.partialorder %v4597_v4, %v1791_v59 }
 0x1f1   : > { %4000 = vmatpush3.msk.msra.mxu0 %vm1798_vm3, %v4255_v54  ;;  %v1894_v60 = vsel %vm1099_vm5, %v5210_v18, inf  ;;  %v5222_v19 = vsel %vm1794_vm8, 1e+30, %v5088_v11  ;;  %v5227_v56 = vsel %vm1793_vm9, 1e+30, %v5093_v2  ;;  %vm1792_vm10 = vcmp.eq.f32.partialorder %v4595_v0, %v1791_v59  ;;  %v3915_v59 = vpop.f32.mrf.mxu0 }
 0x1f2   : > { %4001 = vmatprep.subr.msk.mxu0 %vm1797_vm4, %v4255_v54  ;;  %v1902_v53 = vmin.f32 %v1894_v60, %v1901_v49  ;;  %v1893_v20 = vsel %vm1099_vm5, %v5222_v19, inf  ;;  %v1892_v21 = vsel %vm1099_vm5, %v5227_v56, inf  ;;  %v5240_v11 = vsel %vm1792_vm10, 1e+30, %v5106_v13  ;;  %v3920_v49 = vpop.f32.mrf.mxu1 }
 0x1f3   : > { %4002 = vmatpush3.msk.msra.mxu0 %vm1797_vm4, %v4255_v54  ;;  %v1900_v2 = vmin.f32 %v1893_v20, %v1899_v25  ;;  %v1898_v23 = vmin.f32 %v1892_v21, %v1897_v36  ;;  %v1891_v40 = vsel %vm1099_vm5, %v5240_v11, inf  ;;  %v5305_v36 = vsub.f32 %v3915_v59, %v3920_v49 }
 0x1f4   : > { %4003 = vmatprep.subr.msk.mxu0 %vm1796_vm6, %v4255_v54  ;;  %v1896_v24 = vmin.f32 %v1891_v40, %v1895_v16  ;;  %v993_v16 = vpop.f32.mrf.mxu0  ;;  %v1071_v60 = vpop.f32.mrf.mxu1 }
 0x1f5   : > { %4004 = vmatpush3.msk.msra.mxu0 %vm1796_vm6, %v4255_v54  ;;  %v1904_v13 = vmin.f32 %v1900_v2, %v1902_v53  ;;  %v5307_v20 = vsub.f32 %v993_v16, %v1071_v60 }
 0x1f6   : > { %4005 = vmatprep.subr.msk.mxu0 %vm1795_vm7, %v4255_v54  ;;  %v1903_v26 = vmin.f32 %v1896_v24, %v1898_v23 }
 0x1f7   : > { %4006 = vmatpush3.msk.msra.mxu0 %vm1795_vm7, %v4255_v54 }
 0x1f8   : > { %4007 = vmatprep.subr.msk.mxu0 %vm1794_vm8, %v4255_v54  ;;  %v1905_v27 = vmin.f32 %v1903_v26, %v1904_v13 }
 0x1f9   : > { %4008 = vmatpush3.msk.msra.mxu0 %vm1794_vm8, %v4255_v54 }
 0x1fa   : > { %4009 = vmatprep.subr.msk.mxu0 %vm1793_vm9, %v4255_v54  ;;  %v1906_v29 = vrot.slane %v1905_v27, 4  ;;  %v3939_v21 = vpop.f32.mrf.mxu0 }
 0x1fb   : > { %4010 = vmatpush3.msk.msra.mxu0 %vm1793_vm9, %v4255_v54  ;;  %v5310_v23 = vadd.f32 %v3939_v21, %v5305_v36 }
 0x1fc   : > { %4011 = vmatprep.subr.msk.mxu0 %vm1792_vm10, %v4255_v54  ;;  %v1907_v46 = vmin.f32 %v1905_v27, %v1906_v29  ;;  %v1246_v40 = vpop.f32.mrf.mxu0 }
 0x1fd   : > { %4012 = vmatpush3.msk.msra.mxu0 %vm1792_vm10, %v4255_v54  ;;  %v5313_v13 = vadd.f32 %v1246_v40, %v5307_v20  ;;  %v2361_v26 = vsel %vm1099_vm5, %v5310_v23, 0.0 }
 0x1fe   : > { %v1908_v30 = vrot.slane %v1907_v46, 2  ;;  %4014 = vmatmul.mubr.msk.f32.vlgmr.msra.gmra.mxu0 %vm1099_vm5, %v4554_v22  ;;  %2362 = vadd.xlane.f32.xlu1 %v2361_v26 }
 0x1ff   : > { %4051 = vmatprep.mubr.msk.f32.mxu0 %vm1099_vm5, %v4565_v28  ;;  %v2358_v29 = vsel %vm1099_vm5, %v5313_v13, 0.0 }
 0x200   : > { %v1909_v33 = vmin.f32 %v1907_v46, %v1908_v30  ;;  %2359 = vadd.xlane.f32.xlu0 %v2358_v29 }
 0x202   : > { %v1910_v34 = vrot.slane %v1909_v33, 1 }
 0x204   : > { %v1911_v35 = vmin.f32 %v1909_v33, %v1910_v34 }
 0x206   : > { %vm1912_vm11 = vcmp.eq.f32.partialorder %v5240_v11, %v1911_v35  ;;  %vm1913_vm12 = vcmp.eq.f32.partialorder %v5227_v56, %v1911_v35  ;;  %vm1914_vm13 = vcmp.eq.f32.partialorder %v5222_v19, %v1911_v35  ;;  %vm1915_vm14 = vcmp.eq.f32.partialorder %v5210_v18, %v1911_v35 }
 0x207   : > { %v1920_v31 = vsel %vm1912_vm11, %v4595_v0, 64.0  ;;  %vm1916_vm15 = vcmp.eq.f32.partialorder %v5200_v14, %v1911_v35  ;;  %vm1917_vm0 = vcmp.eq.f32.partialorder %v5187_v17, %v1911_v35  ;;  %vm1918_vm1 = vcmp.eq.f32.partialorder %v5182_v12, %v1911_v35 }
 0x208   : > { %v1928_v37 = vsel %vm1099_vm5, %v1920_v31, inf  ;;  %vm1919_vm2 = vcmp.eq.f32.partialorder %v5177_v50, %v1911_v35  ;;  %v1921_v48 = vsel %vm1913_vm12, %v4597_v4, 64.0  ;;  %v1922_v55 = vsel %vm1914_vm13, %v4599_v5, 64.0 }
 0x209   : > { %v1923_v44 = vsel %vm1915_vm14, %v4601_v45, 64.0  ;;  %v1924_v41 = vsel %vm1916_vm15, %v4603_v7, 64.0  ;;  %v1925_v47 = vsel %vm1917_vm0, %v4605_v8, 64.0  ;;  %v1926_v38 = vsel %vm1918_vm1, %v4607_v9, 64.0 }
 0x20a   : > { %v1927_v43 = vsel %vm1919_vm2, %v4609_v10, 64.0  ;;  %v1929_v42 = vsel %vm1099_vm5, %v1921_v48, inf  ;;  %v1930_v57 = vsel %vm1099_vm5, %v1922_v55, inf  ;;  %v1931_v1 = vsel %vm1099_vm5, %v1923_v44, inf }
 0x20b   : > { %v1932_v61 = vsel %vm1099_vm5, %v1924_v41, inf  ;;  %v1934_v32 = vsel %vm1099_vm5, %v1925_v47, inf  ;;  %v1936_v15 = vsel %vm1099_vm5, %v1926_v38, inf  ;;  %v1938_v62 = vsel %vm1099_vm5, %v1927_v43, inf }
 0x20c   : > { %v1933_v6 = vmin.f32 %v1928_v37, %v1932_v61  ;;  %v1935_v63 = vmin.f32 %v1929_v42, %v1934_v32  ;;  %v1937_v58 = vmin.f32 %v1930_v57, %v1936_v15  ;;  %v1939_v51 = vmin.f32 %v1931_v1, %v1938_v62 }
 0x20e   : > { %v1940_v39 = vmin.f32 %v1933_v6, %v1935_v63  ;;  %v1941_v52 = vmin.f32 %v1937_v58, %v1939_v51 }
 0x210   : > { %v1942_v3 = vmin.f32 %v1940_v39, %v1941_v52 }
 0x212   : > { %v1943_v25 = vrot.slane %v1942_v3, 4 }
 0x214   : > { %v1944_v53 = vmin.f32 %v1942_v3, %v1943_v25 }
 0x216   : > { %v1945_v2 = vrot.slane %v1944_v53, 2 }
 0x218   : > { %v1946_v24 = vmin.f32 %v1944_v53, %v1945_v2 }
 0x21a   : > { %v1947_v27 = vrot.slane %v1946_v24, 1 }
 0x21c   : > { %v1948_v46 = vmin.f32 %v1946_v24, %v1947_v27 }
 0x21e   : > { %vm1956_vm3 = vcmp.eq.f32.partialorder %v4609_v10, %v1948_v46  ;;  %vm1955_vm4 = vcmp.eq.f32.partialorder %v4607_v9, %v1948_v46  ;;  %vm1954_vm6 = vcmp.eq.f32.partialorder %v4605_v8, %v1948_v46  ;;  %vm1953_vm7 = vcmp.eq.f32.partialorder %v4603_v7, %v1948_v46 }
 0x21f   : > { %4016 = vmatprep.subr.msk.mxu1 %vm1956_vm3, %v4255_v54  ;;  %v5325_v30 = vsel %vm1956_vm3, 1e+30, %v5177_v50  ;;  %v5330_v33 = vsel %vm1955_vm4, 1e+30, %v5182_v12  ;;  %v5335_v34 = vsel %vm1954_vm6, 1e+30, %v5187_v17  ;;  %vm1952_vm8 = vcmp.eq.f32.partialorder %v4601_v45, %v1948_v46 }
 0x220   : > { %v2058_v35 = vsel %vm1099_vm5, %v5325_v30, inf  ;;  %4017 = vmatpush3.msk.msra.mxu1 %vm1956_vm3, %v4255_v54  ;;  %v2056_v50 = vsel %vm1099_vm5, %v5330_v33, inf  ;;  %v2054_v31 = vsel %vm1099_vm5, %v5335_v34, inf  ;;  %v5348_v12 = vsel %vm1953_vm7, 1e+30, %v5200_v14 }
 0x221   : > { %4018 = vmatprep.subr.msk.mxu1 %vm1955_vm4, %v4255_v54  ;;  %v2052_v17 = vsel %vm1099_vm5, %v5348_v12, inf  ;;  %v5358_v37 = vsel %vm1952_vm8, 1e+30, %v5210_v18  ;;  %vm1951_vm9 = vcmp.eq.f32.partialorder %v4599_v5, %v1948_v46  ;;  %vm1950_vm10 = vcmp.eq.f32.partialorder %v4597_v4, %v1948_v46 }
 0x222   : > { %4019 = vmatpush3.msk.msra.mxu1 %vm1955_vm4, %v4255_v54  ;;  %v2051_v14 = vsel %vm1099_vm5, %v5358_v37, inf  ;;  %v5370_v48 = vsel %vm1951_vm9, 1e+30, %v5222_v19  ;;  %v5375_v18 = vsel %vm1950_vm10, 1e+30, %v5227_v56  ;;  %vm1949_vm11 = vcmp.eq.f32.partialorder %v4595_v0, %v1948_v46 }
 0x223   : > { %4020 = vmatprep.subr.msk.mxu1 %vm1954_vm6, %v4255_v54  ;;  %v2059_v55 = vmin.f32 %v2051_v14, %v2058_v35  ;;  %v2050_v44 = vsel %vm1099_vm5, %v5370_v48, inf  ;;  %v2049_v41 = vsel %vm1099_vm5, %v5375_v18, inf  ;;  %v5388_v19 = vsel %vm1949_vm11, 1e+30, %v5240_v11 }
 0x224   : > { %4021 = vmatpush3.msk.msra.mxu1 %vm1954_vm6, %v4255_v54  ;;  %v2057_v56 = vmin.f32 %v2050_v44, %v2056_v50  ;;  %v2055_v47 = vmin.f32 %v2049_v41, %v2054_v31  ;;  %v2048_v38 = vsel %vm1099_vm5, %v5388_v19, inf }
 0x225   : > { %4022 = vmatprep.subr.msk.mxu1 %vm1953_vm7, %v4255_v54  ;;  %v2053_v43 = vmin.f32 %v2048_v38, %v2052_v17 }
 0x226   : > { %4023 = vmatpush3.msk.msra.mxu1 %vm1953_vm7, %v4255_v54  ;;  %v2061_v11 = vmin.f32 %v2057_v56, %v2059_v55 }
 0x227   : > { %4024 = vmatprep.subr.msk.mxu1 %vm1952_vm8, %v4255_v54  ;;  %v2060_v42 = vmin.f32 %v2053_v43, %v2055_v47 }
 0x228   : > { %4025 = vmatpush3.msk.msra.mxu1 %vm1952_vm8, %v4255_v54 }
 0x229   : > { %4026 = vmatprep.subr.msk.mxu1 %vm1951_vm9, %v4255_v54  ;;  %v2062_v57 = vmin.f32 %v2060_v42, %v2061_v11 }
 0x22a   : > { %4027 = vmatpush3.msk.msra.mxu1 %vm1951_vm9, %v4255_v54 }
 0x22b   : > { %4028 = vmatprep.subr.msk.mxu1 %vm1950_vm10, %v4255_v54  ;;  %v2063_v1 = vrot.slane %v2062_v57, 4  ;;  %v3958_v61 = vpop.f32.mrf.mxu1 }
 0x22c   : > { %4029 = vmatpush3.msk.msra.mxu1 %vm1950_vm10, %v4255_v54  ;;  %v5420_v32 = vadd.f32 %v3958_v61, %v5305_v36 }
 0x22d   : > { %4030 = vmatprep.subr.msk.mxu1 %vm1949_vm11, %v4255_v54  ;;  %v2064_v15 = vmin.f32 %v2062_v57, %v2063_v1  ;;  %v1403_v62 = vpop.f32.mrf.mxu1 }
 0x22e   : > { %4031 = vmatpush3.msk.msra.mxu1 %vm1949_vm11, %v4255_v54  ;;  %v5429_v6 = vadd.f32 %v1403_v62, %v5307_v20  ;;  %v2369_v63 = vsel %vm1099_vm5, %v5420_v32, 0.0 }
 0x22f   : > { %v2065_v58 = vrot.slane %v2064_v15, 2  ;;  %4033 = vmatmul.mubr.msk.f32.vlgmr.msra.gmra.mxu1 %vm1099_vm5, %v4554_v22  ;;  %2370 = vadd.xlane.f32.xlu0 %v2369_v63 }
 0x230   : > { %4070 = vmatprep.mubr.msk.f32.mxu1 %vm1099_vm5, %v4565_v28  ;;  %v2366_v51 = vsel %vm1099_vm5, %v5429_v6, 0.0 }
 0x231   : > { %v2066_v39 = vmin.f32 %v2064_v15, %v2065_v58  ;;  %2367 = vadd.xlane.f32.xlu1 %v2366_v51 }
 0x233   : > { %v2067_v52 = vrot.slane %v2066_v39, 1 }
 0x235   : > { %v2068_v3 = vmin.f32 %v2066_v39, %v2067_v52 }
 0x237   : > { %vm2069_vm12 = vcmp.eq.f32.partialorder %v5388_v19, %v2068_v3  ;;  %vm2070_vm13 = vcmp.eq.f32.partialorder %v5375_v18, %v2068_v3  ;;  %vm2071_vm14 = vcmp.eq.f32.partialorder %v5370_v48, %v2068_v3  ;;  %vm2072_vm15 = vcmp.eq.f32.partialorder %v5358_v37, %v2068_v3 }
 0x238   : > { %v2077_v59 = vsel %vm2069_vm12, %v4595_v0, 64.0  ;;  %vm2073_vm0 = vcmp.eq.f32.partialorder %v5348_v12, %v2068_v3  ;;  %vm2074_vm1 = vcmp.eq.f32.partialorder %v5335_v34, %v2068_v3  ;;  %vm2075_vm2 = vcmp.eq.f32.partialorder %v5330_v33, %v2068_v3 }
 0x239   : > { %v2085_v28 = vsel %vm1099_vm5, %v2077_v59, inf  ;;  %vm2076_vm3 = vcmp.eq.f32.partialorder %v5325_v30, %v2068_v3  ;;  %v2078_v49 = vsel %vm2070_vm13, %v4597_v4, 64.0  ;;  %v2079_v25 = vsel %vm2071_vm14, %v4599_v5, 64.0 }
 0x23a   : > { %v2080_v16 = vsel %vm2072_vm15, %v4601_v45, 64.0  ;;  %v2081_v60 = vsel %vm2073_vm0, %v4603_v7, 64.0  ;;  %v2082_v53 = vsel %vm2074_vm1, %v4605_v8, 64.0  ;;  %v2083_v21 = vsel %vm2075_vm2, %v4607_v9, 64.0 }
 0x23b   : > { %v2084_v2 = vsel %vm2076_vm3, %v4609_v10, 64.0  ;;  %v2086_v40 = vsel %vm1099_vm5, %v2078_v49, inf  ;;  %v2087_v24 = vsel %vm1099_vm5, %v2079_v25, inf  ;;  %v2088_v26 = vsel %vm1099_vm5, %v2080_v16, inf }
 0x23c   : > { %v2089_v27 = vsel %vm1099_vm5, %v2081_v60, inf  ;;  %v2091_v29 = vsel %vm1099_vm5, %v2082_v53, inf  ;;  %v2093_v46 = vsel %vm1099_vm5, %v2083_v21, inf  ;;  %v2095_v35 = vsel %vm1099_vm5, %v2084_v2, inf }
 0x23d   : > { %v2090_v50 = vmin.f32 %v2085_v28, %v2089_v27  ;;  %v2092_v31 = vmin.f32 %v2086_v40, %v2091_v29  ;;  %v2094_v17 = vmin.f32 %v2087_v24, %v2093_v46  ;;  %v2096_v14 = vmin.f32 %v2088_v26, %v2095_v35 }
 0x23f   : > { %v2097_v55 = vmin.f32 %v2090_v50, %v2092_v31  ;;  %v2098_v44 = vmin.f32 %v2094_v17, %v2096_v14 }
 0x241   : > { %v2099_v41 = vmin.f32 %v2097_v55, %v2098_v44 }
 0x243   : > { %v2100_v56 = vrot.slane %v2099_v41, 4 }
 0x245   : > { %v2101_v47 = vmin.f32 %v2099_v41, %v2100_v56 }
 0x247   : > { %v2102_v38 = vrot.slane %v2101_v47, 2 }
 0x249   : > { %v2103_v43 = vmin.f32 %v2101_v47, %v2102_v38 }
 0x24b   : > { %v2104_v11 = vrot.slane %v2103_v43, 1 }
 0x24d   : > { %v2105_v42 = vmin.f32 %v2103_v43, %v2104_v11 }
 0x24f   : > { %vm2113_vm4 = vcmp.eq.f32.partialorder %v4609_v10, %v2105_v42  ;;  %vm2112_vm6 = vcmp.eq.f32.partialorder %v4607_v9, %v2105_v42  ;;  %vm2111_vm7 = vcmp.eq.f32.partialorder %v4605_v8, %v2105_v42  ;;  %vm2110_vm8 = vcmp.eq.f32.partialorder %v4603_v7, %v2105_v42 }
 0x250   : > { %4035 = vmatprep.subr.msk.mxu0 %vm2113_vm4, %v4255_v54  ;;  %v5469_v57 = vsel %vm2113_vm4, 1e+30, %v5325_v30  ;;  %v5474_v1 = vsel %vm2112_vm6, 1e+30, %v5330_v33  ;;  %v5479_v61 = vsel %vm2111_vm7, 1e+30, %v5335_v34  ;;  %vm2109_vm9 = vcmp.eq.f32.partialorder %v4601_v45, %v2105_v42 }
 0x251   : > { %v2215_v15 = vsel %vm1099_vm5, %v5469_v57, inf  ;;  %4036 = vmatpush3.msk.msra.mxu0 %vm2113_vm4, %v4255_v54  ;;  %v2213_v30 = vsel %vm1099_vm5, %v5474_v1, inf  ;;  %v2211_v62 = vsel %vm1099_vm5, %v5479_v61, inf  ;;  %v5492_v33 = vsel %vm2110_vm8, 1e+30, %v5348_v12 }
 0x252   : > { %4037 = vmatprep.subr.msk.mxu0 %vm2112_vm6, %v4255_v54  ;;  %v2209_v34 = vsel %vm1099_vm5, %v5492_v33, inf  ;;  %v2200_v63 = vsel %vm2109_vm9, 1e+30, %v5358_v37  ;;  %vm2108_vm10 = vcmp.eq.f32.partialorder %v4599_v5, %v2105_v42  ;;  %vm2107_vm11 = vcmp.eq.f32.partialorder %v4597_v4, %v2105_v42 }
 0x253   : > { %4038 = vmatpush3.msk.msra.mxu0 %vm2112_vm6, %v4255_v54  ;;  %v2208_v12 = vsel %vm1099_vm5, %v2200_v63, inf  ;;  %v2199_v58 = vsel %vm2108_vm10, 1e+30, %v5370_v48  ;;  %v2198_v51 = vsel %vm2107_vm11, 1e+30, %v5375_v18  ;;  %vm2106_vm12 = vcmp.eq.f32.partialorder %v4595_v0, %v2105_v42 }
 0x254   : > { %4039 = vmatprep.subr.msk.mxu0 %vm2111_vm7, %v4255_v54  ;;  %v2216_v37 = vmin.f32 %v2208_v12, %v2215_v15  ;;  %v2207_v39 = vsel %vm1099_vm5, %v2199_v58, inf  ;;  %v2206_v52 = vsel %vm1099_vm5, %v2198_v51, inf  ;;  %v2197_v3 = vsel %vm2106_vm12, 1e+30, %v5388_v19 }
 0x255   : > { %4040 = vmatpush3.msk.msra.mxu0 %vm2111_vm7, %v4255_v54  ;;  %v2214_v48 = vmin.f32 %v2207_v39, %v2213_v30  ;;  %v2212_v18 = vmin.f32 %v2206_v52, %v2211_v62  ;;  %v2205_v59 = vsel %vm1099_vm5, %v2197_v3, inf }
 0x256   : > { %4041 = vmatprep.subr.msk.mxu0 %vm2110_vm8, %v4255_v54  ;;  %v2210_v28 = vmin.f32 %v2205_v59, %v2209_v34 }
 0x257   : > { %4042 = vmatpush3.msk.msra.mxu0 %vm2110_vm8, %v4255_v54  ;;  %v2218_v49 = vmin.f32 %v2214_v48, %v2216_v37 }
 0x258   : > { %4043 = vmatprep.subr.msk.mxu0 %vm2109_vm9, %v4255_v54  ;;  %v2217_v19 = vmin.f32 %v2210_v28, %v2212_v18 }
 0x259   : > { %4044 = vmatpush3.msk.msra.mxu0 %vm2109_vm9, %v4255_v54 }
 0x25a   : > { %4045 = vmatprep.subr.msk.mxu0 %vm2108_vm10, %v4255_v54  ;;  %v2219_v25 = vmin.f32 %v2217_v19, %v2218_v49 }
 0x25b   : > { %4046 = vmatpush3.msk.msra.mxu0 %vm2108_vm10, %v4255_v54 }
 0x25c   : > { %4047 = vmatprep.subr.msk.mxu0 %vm2107_vm11, %v4255_v54  ;;  %v2220_v16 = vrot.slane %v2219_v25, 4  ;;  %v3977_v60 = vpop.f32.mrf.mxu0 }
 0x25d   : > { %4048 = vmatpush3.msk.msra.mxu0 %vm2107_vm11, %v4255_v54  ;;  %v5552_v53 = vadd.f32 %v3977_v60, %v5305_v36 }
 0x25e   : > { %4049 = vmatprep.subr.msk.mxu0 %vm2106_vm12, %v4255_v54  ;;  %v2221_v21 = vmin.f32 %v2219_v25, %v2220_v16  ;;  %v1560_v2 = vpop.f32.mrf.mxu0 }
 0x25f   : > { %4050 = vmatpush3.msk.msra.mxu0 %vm2106_vm12, %v4255_v54  ;;  %v5561_v40 = vadd.f32 %v1560_v2, %v5307_v20  ;;  %v2377_v24 = vsel %vm1099_vm5, %v5552_v53, 0.0 }
 0x260   : > { %v2222_v26 = vrot.slane %v2221_v21, 2  ;;  %4052 = vmatmul.mubr.msk.f32.vlgmr.msra.gmra.mxu0 %vm1099_vm5, %v4554_v22  ;;  %2378 = vadd.xlane.f32.xlu0 %v2377_v24 }
 0x261   : > { %v2374_v27 = vsel %vm1099_vm5, %v5561_v40, 0.0 }
 0x262   : > { %v2223_v29 = vmin.f32 %v2221_v21, %v2222_v26  ;;  %2375 = vadd.xlane.f32.xlu1 %v2374_v27 }
 0x264   : > { %v2224_v46 = vrot.slane %v2223_v29, 1 }
 0x266   : > { %v2225_v35 = vmin.f32 %v2223_v29, %v2224_v46 }
 0x268   : > { %vm2226_vm13 = vcmp.eq.f32.partialorder %v2197_v3, %v2225_v35  ;;  %vm2227_vm14 = vcmp.eq.f32.partialorder %v2198_v51, %v2225_v35  ;;  %vm2228_vm15 = vcmp.eq.f32.partialorder %v2199_v58, %v2225_v35  ;;  %vm2229_vm0 = vcmp.eq.f32.partialorder %v2200_v63, %v2225_v35 }
 0x269   : > { %v2234_v50 = vsel %vm2226_vm13, %v4595_v0, 64.0  ;;  %vm2230_vm1 = vcmp.eq.f32.partialorder %v5492_v33, %v2225_v35  ;;  %vm2231_vm2 = vcmp.eq.f32.partialorder %v5479_v61, %v2225_v35  ;;  %vm2232_vm3 = vcmp.eq.f32.partialorder %v5474_v1, %v2225_v35 }
 0x26a   : > { %v2242_v31 = vsel %vm1099_vm5, %v2234_v50, inf  ;;  %vm2233_vm4 = vcmp.eq.f32.partialorder %v5469_v57, %v2225_v35  ;;  %v2235_v17 = vsel %vm2227_vm14, %v4597_v4, 64.0  ;;  %v2236_v14 = vsel %vm2228_vm15, %v4599_v5, 64.0 }
 0x26b   : > { %v2237_v55 = vsel %vm2229_vm0, %v4601_v45, 64.0  ;;  %v2238_v44 = vsel %vm2230_vm1, %v4603_v7, 64.0  ;;  %v2239_v41 = vsel %vm2231_vm2, %v4605_v8, 64.0  ;;  %v2240_v56 = vsel %vm2232_vm3, %v4607_v9, 64.0 }
 0x26c   : > { %v2241_v47 = vsel %vm2233_vm4, %v4609_v10, 64.0  ;;  %v2243_v38 = vsel %vm1099_vm5, %v2235_v17, inf  ;;  %v2244_v43 = vsel %vm1099_vm5, %v2236_v14, inf  ;;  %v2245_v11 = vsel %vm1099_vm5, %v2237_v55, inf }
 0x26d   : > { %v2246_v42 = vsel %vm1099_vm5, %v2238_v44, inf  ;;  %v2248_v57 = vsel %vm1099_vm5, %v2239_v41, inf  ;;  %v2250_v1 = vsel %vm1099_vm5, %v2240_v56, inf  ;;  %v2252_v61 = vsel %vm1099_vm5, %v2241_v47, inf }
 0x26e   : > { %v2247_v15 = vmin.f32 %v2242_v31, %v2246_v42  ;;  %v2249_v30 = vmin.f32 %v2243_v38, %v2248_v57  ;;  %v2251_v62 = vmin.f32 %v2244_v43, %v2250_v1  ;;  %v2253_v33 = vmin.f32 %v2245_v11, %v2252_v61 }
 0x26f   : > { %vm2630_vm14 = vcmask 130048  }
 0x270   : > { %v2254_v34 = vmin.f32 %v2247_v15, %v2249_v30  ;;  %v2255_v63 = vmin.f32 %v2251_v62, %v2253_v33 }
 0x272   : > { %v2256_v12 = vmin.f32 %v2254_v34, %v2255_v63 }
 0x274   : > { %v2257_v58 = vrot.slane %v2256_v12, 4 }
 0x276   : > { %v2258_v51 = vmin.f32 %v2256_v12, %v2257_v58 }
 0x278   : > { %v2259_v37 = vrot.slane %v2258_v51, 2 }
 0x27a   : > { %v2260_v39 = vmin.f32 %v2258_v51, %v2259_v37 }
 0x27c   : > { %v2261_v52 = vrot.slane %v2260_v39, 1 }
 0x27e   : > { %v2262_v3 = vmin.f32 %v2260_v39, %v2261_v52 }
 0x280   : > { %vm2270_vm6 = vcmp.eq.f32.partialorder %v4609_v10, %v2262_v3  ;;  %vm2269_vm7 = vcmp.eq.f32.partialorder %v4607_v9, %v2262_v3  ;;  %vm2268_vm8 = vcmp.eq.f32.partialorder %v4605_v8, %v2262_v3  ;;  %vm2267_vm9 = vcmp.eq.f32.partialorder %v4603_v7, %v2262_v3 }
 0x281   : > { %4054 = vmatprep.subr.msk.mxu1 %vm2270_vm6, %v4255_v54  ;;  %vm2266_vm10 = vcmp.eq.f32.partialorder %v4601_v45, %v2262_v3  ;;  %vm2265_vm11 = vcmp.eq.f32.partialorder %v4599_v5, %v2262_v3  ;;  %vm2264_vm12 = vcmp.eq.f32.partialorder %v4597_v4, %v2262_v3  ;;  %vm2263_vm13 = vcmp.eq.f32.partialorder %v4595_v0, %v2262_v3 }
 0x282   : > { %4055 = vmatpush3.msk.msra.mxu1 %vm2270_vm6, %v4255_v54 }
 0x283   : > { %4056 = vmatprep.subr.msk.mxu1 %vm2269_vm7, %v4255_v54 }
 0x284   : > { %4057 = vmatpush3.msk.msra.mxu1 %vm2269_vm7, %v4255_v54 }
 0x285   : > { %4058 = vmatprep.subr.msk.mxu1 %vm2268_vm8, %v4255_v54 }
 0x286   : > { %4059 = vmatpush3.msk.msra.mxu1 %vm2268_vm8, %v4255_v54 }
 0x287   : > { %4060 = vmatprep.subr.msk.mxu1 %vm2267_vm9, %v4255_v54  ;;  %v2363_v55 = vpop.xlane.xlu1 %2362 }
 0x288   : > { %4061 = vmatpush3.msk.msra.mxu1 %vm2267_vm9, %v4255_v54 }
 0x289   : > { %4062 = vmatprep.subr.msk.mxu1 %vm2266_vm10, %v4255_v54  ;;  %v2360_v14 = vpop.xlane.xlu0 %2359 }
 0x28a   : > { %4063 = vmatpush3.msk.msra.mxu1 %vm2266_vm10, %v4255_v54 }
 0x28b   : > { %4064 = vmatprep.subr.msk.mxu1 %vm2265_vm11, %v4255_v54 }
 0x28c   : > { %4065 = vmatpush3.msk.msra.mxu1 %vm2265_vm11, %v4255_v54 }
 0x28d   : > { %4066 = vmatprep.subr.msk.mxu1 %vm2264_vm12, %v4255_v54  ;;  %v3996_v7 = vpop.f32.mrf.mxu1 }
 0x28e   : > { %4067 = vmatpush3.msk.msra.mxu1 %vm2264_vm12, %v4255_v54  ;;  %v5612_v45 = vadd.f32 %v3996_v7, %v5305_v36 }
 0x28f   : > { %4068 = vmatprep.subr.msk.mxu1 %vm2263_vm13, %v4255_v54  ;;  %v1717_v8 = vpop.f32.mrf.mxu1 }
 0x290   : > { %4069 = vmatpush3.msk.msra.mxu1 %vm2263_vm13, %v4255_v54  ;;  %v5617_v5 = vadd.f32 %v1717_v8, %v5307_v20  ;;  %v2385_v4 = vsel %vm1099_vm5, %v5612_v45, 0.0 }
 0x291   : > { %4071 = vmatmul.mubr.msk.f32.vlgmr.msra.gmra.mxu1 %vm1099_vm5, %v4554_v22  ;;  %2386 = vadd.xlane.f32.xlu0 %v2385_v4 }
 0x292   : > { %v2382_v0 = vsel %vm1099_vm5, %v5617_v5, 0.0 }
 0x293   : > { %2383 = vadd.xlane.f32.xlu1 %v2382_v0 }
 0x2b8   : > { %v2371_v44 = vpop.xlane.xlu0 %2370 }
 0x2b9   : > { %v2373_v38 = vadd.f32 %v2371_v44, %v2363_v55 }
 0x2ba   : > { %v2368_v41 = vpop.xlane.xlu1 %2367 }
 0x2bb   : > { %v2372_v11 = vadd.f32 %v2368_v41, %v2360_v14 }
 0x2be   : > { %v4015_v9 = vpop.f32.mrf.mxu0 }
 0x2bf   : > { %v5626_v10 = vadd.f32 %v4015_v9, %v5305_v36 }
 0x2c0   : > { %v1874_v48 = vpop.f32.mrf.mxu0 }
 0x2c1   : > { %v5629_v54 = vadd.f32 %v1874_v48, %v5307_v20  ;;  %v2393_v18 = vsel %vm1099_vm5, %v5626_v10, 0.0 }
 0x2c2   : > { %2394 = vadd.xlane.f32.xlu0 %v2393_v18 }
 0x2c3   : > { %v2390_v22 = vsel %vm1099_vm5, %v5629_v54, 0.0 }
 0x2c4   : > { %2391 = vadd.xlane.f32.xlu1 %v2390_v22 }
 0x2e9   : > { %v2379_v56 = vpop.xlane.xlu0 %2378 }
 0x2eb   : > { %v2376_v47 = vpop.xlane.xlu1 %2375 }
 0x2ec   : > { %v2380_v57 = vadd.f32 %v2376_v47, %v2372_v11 }
 0x2ef   : > { %v4034_v59 = vpop.f32.mrf.mxu1 }
 0x2f0   : > { %v5636_v28 = vadd.f32 %v4034_v59, %v5305_v36 }
 0x2f1   : > { %v2031_v49 = vpop.f32.mrf.mxu1 }
 0x2f2   : > { %v5639_v19 = vadd.f32 %v2031_v49, %v5307_v20  ;;  %v2401_v25 = vsel %vm1099_vm5, %v5636_v28, 0.0 }
 0x2f3   : > { %2402 = vadd.xlane.f32.xlu0 %v2401_v25 }
 0x2f4   : > { %v2398_v16 = vsel %vm1099_vm5, %v5639_v19, 0.0 }
 0x2f5   : > { %2399 = vadd.xlane.f32.xlu1 %v2398_v16 }
 0x31c   : > { %v2384_v43 = vpop.xlane.xlu1 %2383 }
 0x31d   : > { %v2388_v15 = vadd.f32 %v2384_v43, %v2380_v57 }
 0x320   : > { %v4053_v60 = vpop.f32.mrf.mxu0 }
 0x321   : > { %v5646_v21 = vadd.f32 %v4053_v60, %v5305_v36 }
 0x322   : > { %v2188_v2 = vpop.f32.mrf.mxu0 }
 0x323   : > { %v5649_v24 = vadd.f32 %v2188_v2, %v5307_v20  ;;  %v2409_v26 = vsel %vm1099_vm5, %v5646_v21, 0.0 }
 0x324   : > { %2410 = vadd.xlane.f32.xlu0 %v2409_v26 }
 0x325   : > { %v2406_v27 = vsel %vm1099_vm5, %v5649_v24, 0.0 }
 0x326   : > { %2407 = vadd.xlane.f32.xlu1 %v2406_v27 }
 0x34d   : > { %v2392_v1 = vpop.xlane.xlu1 %2391 }
 0x34e   : > { %v2396_v34 = vadd.f32 %v2392_v1, %v2388_v15 }
 0x351   : > { %v4072_v29 = vpop.f32.mrf.mxu1 }
 0x352   : > { %v5656_v46 = vadd.f32 %v4072_v29, %v5305_v36  ;;  %v2387_v36 = vpop.xlane.xlu0 %2386 }
 0x353   : > { %v2345_v35 = vpop.f32.mrf.mxu1 }
 0x354   : > { %v5659_v50 = vadd.f32 %v2345_v35, %v5307_v20  ;;  %v2417_v31 = vsel %vm1099_vm5, %v5656_v46, 0.0  ;;  %v2381_v20 = vadd.f32 %v2379_v56, %v2373_v38 }
 0x355   : > { %2418 = vadd.xlane.f32.xlu0 %v2417_v31 }
 0x356   : > { %v2414_v17 = vsel %vm1099_vm5, %v5659_v50, 0.0  ;;  %v2395_v42 = vpop.xlane.xlu0 %2394  ;;  %v2389_v61 = vadd.f32 %v2387_v36, %v2381_v20 }
 0x357   : > { %2415 = vadd.xlane.f32.xlu1 %v2414_v17 }
 0x358   : > { %v2397_v62 = vadd.f32 %v2395_v42, %v2389_v61 }
 0x37c   : > { %v2403_v30 = vpop.xlane.xlu0 %2402 }
 0x37d   : > { %v2405_v12 = vadd.f32 %v2403_v30, %v2397_v62 }
 0x37e   : > { %v2400_v33 = vpop.xlane.xlu1 %2399 }
 0x37f   : > { %v2404_v51 = vadd.f32 %v2400_v33, %v2396_v34 }
 0x3ad   : > { %v2411_v63 = vpop.xlane.xlu0 %2410 }
 0x3ae   : > { %v2413_v37 = vadd.f32 %v2411_v63, %v2405_v12 }
 0x3af   : > { %v2408_v58 = vpop.xlane.xlu1 %2407 }
 0x3b0   : > { %v2412_v52 = vadd.f32 %v2408_v58, %v2404_v51 }
 0x3de   : > { %v2419_v39 = vpop.xlane.xlu0 %2418 }
 0x3df   : > { %v2421_v3 = vadd.f32 %v2419_v39, %v2413_v37 }
 0x3e0   : > { %v2416_v7 = vpop.xlane.xlu1 %2415 }
 0x3e1   : > { %v2423_v8 = vmul.f32 0.001953125, %v2421_v3  ;;  %v2420_v4 = vadd.f32 %v2416_v7, %v2412_v52 }
 0x3e3   : > { %v2422_v0 = vmul.f32 0.001953125, %v2420_v4  ;;  %v5666_v9 = vsub.f32 %v5420_v32, %v2423_v8  ;;  %v5669_v48 = vsub.f32 %v5310_v23, %v2423_v8  ;;  %v5672_v18 = vsub.f32 %v5552_v53, %v2423_v8 }
 0x3e4   : > { %v5684_v32 = vsub.f32 %v5612_v45, %v2423_v8  ;;  %v5696_v2 = vsub.f32 %v5626_v10, %v2423_v8  ;;  %v5719_v55 = vsub.f32 %v5636_v28, %v2423_v8  ;;  %v5732_v47 = vsub.f32 %v5646_v21, %v2423_v8 }
 0x3e5   : > { %v2451_v22 = vmul.f32 %v5666_v9, %v5666_v9  ;;  %v2441_v59 = vmul.f32 %v5669_v48, %v5669_v48  ;;  %v5679_v49 = vsub.f32 %v5429_v6, %v2422_v0  ;;  %v2461_v25 = vmul.f32 %v5672_v18, %v5672_v18 }
 0x3e6   : > { %v5691_v60 = vsub.f32 %v5561_v40, %v2422_v0  ;;  %v2471_v6 = vmul.f32 %v5684_v32, %v5684_v32  ;;  %v5703_v29 = vsub.f32 %v5617_v5, %v2422_v0  ;;  %v2481_v35 = vmul.f32 %v5696_v2, %v5696_v2 }
 0x3e7   : > { %v2455_v23 = vsel %vm1099_vm5, %v2451_v22, 0.0  ;;  %v2445_v53 = vsel %vm1099_vm5, %v2441_v59, 0.0  ;;  %v2450_v16 = vmul.f32 %v5679_v49, %v5679_v49  ;;  %v2465_v26 = vsel %vm1099_vm5, %v2461_v25, 0.0 }
 0x3e8   : > { %2456 = vadd.xlane.f32.xlu1 %v2455_v23  ;;  %2446 = vadd.xlane.f32.xlu0 %v2445_v53  ;;  %v2460_v27 = vmul.f32 %v5691_v60, %v5691_v60  ;;  %v2475_v40 = vsel %vm1099_vm5, %v2471_v6, 0.0  ;;  %v2470_v31 = vmul.f32 %v5703_v29, %v5703_v29  ;;  %v5712_v17 = vsub.f32 %v5629_v54, %v2422_v0 }
 0x3e9   : > { %v2452_v45 = vsel %vm1099_vm5, %v2450_v16, 0.0  ;;  %v5715_v14 = vsub.f32 %v5313_v13, %v2422_v0  ;;  %v2485_v5 = vsel %vm1099_vm5, %v2481_v35, 0.0  ;;  %v5727_v54 = vsub.f32 %v5639_v19, %v2422_v0 }
 0x3ea   : > { %v2462_v10 = vsel %vm1099_vm5, %v2460_v27, 0.0  ;;  %v2472_v44 = vsel %vm1099_vm5, %v2470_v31, 0.0  ;;  %v2480_v41 = vmul.f32 %v5712_v17, %v5712_v17  ;;  %v2491_v13 = vmul.f32 %v5719_v55, %v5719_v55 }
 0x3eb   : > { %v2440_v56 = vmul.f32 %v5715_v14, %v5715_v14  ;;  %v2490_v38 = vmul.f32 %v5727_v54, %v5727_v54  ;;  %v5739_v43 = vsub.f32 %v5649_v24, %v2422_v0  ;;  %v2501_v11 = vmul.f32 %v5732_v47, %v5732_v47 }
 0x3ec   : > { %2453 = vadd.xlane.f32.xlu1 %v2452_v45  ;;  %2466 = vadd.xlane.f32.xlu0 %v2465_v26  ;;  %v2482_v28 = vsel %vm1099_vm5, %v2480_v41, 0.0  ;;  %v2495_v19 = vsel %vm1099_vm5, %v2491_v13, 0.0  ;;  %v5748_v42 = vsub.f32 %v5659_v50, %v2422_v0  ;;  %v5751_v57 = vsub.f32 %v5656_v46, %v2423_v8  ;;  %v2357_v46 = vld [vmem:[%s6139_s9 + $0x8] sm:$0xff] }
 0x3ed   : > { %v2442_v36 = vsel %vm1099_vm5, %v2440_v56, 0.0  ;;  %v2492_v21 = vsel %vm1099_vm5, %v2490_v38, 0.0  ;;  %v2500_v20 = vmul.f32 %v5739_v43, %v5739_v43  ;;  %v2505_v1 = vsel %vm1099_vm5, %v2501_v11, 0.0 }
 0x3ee   : > { %v2510_v61 = vmul.f32 %v5748_v42, %v5748_v42  ;;  %v2511_v15 = vmul.f32 %v5751_v57, %v5751_v57 }
 0x3ef   : > { %v2502_v24 = vsel %vm1099_vm5, %v2500_v20, 0.0  ;;  %v2356_v20 = vld [vmem:[%s6139_s9] sm:$0xff] }
 0x3f0   : > { %2463 = vadd.xlane.f32.xlu1 %v2462_v10  ;;  %2476 = vadd.xlane.f32.xlu0 %v2475_v40  ;;  %v2512_v50 = vsel %vm1099_vm5, %v2510_v61, 0.0  ;;  %v2515_v30 = vsel %vm1099_vm5, %v2511_v15, 0.0 }
 0x3f4   : > { %2473 = vadd.xlane.f32.xlu1 %v2472_v44  ;;  %2486 = vadd.xlane.f32.xlu0 %v2485_v5 }
 0x3f8   : > { %2483 = vadd.xlane.f32.xlu1 %v2482_v28  ;;  %2443 = vadd.xlane.f32.xlu0 %v2442_v36  ;;  %v2354_v28 = vld [vmem:[%s6138_s8] sm:$0xff]  ;;  %v2355_v36 = vld [vmem:[%s6138_s8 + $0x8] sm:$0xff] }
 0x3fc   : > { %2493 = vadd.xlane.f32.xlu1 %v2492_v21  ;;  %2496 = vadd.xlane.f32.xlu0 %v2495_v19 }
 0x400   : > { %2503 = vadd.xlane.f32.xlu1 %v2502_v24  ;;  %2506 = vadd.xlane.f32.xlu0 %v2505_v1  ;;  %v5776_v24 = vld [vmem:[%s6140_s10] sm:$0xff] }
 0x401   : > { %4077 = vmatprep.mubr.msk.f32.mxu0 %vm2630_vm14, %v5776_v24  ;;  %4084 = vmatprep.mubr.msk.f32.mxu1 %vm2630_vm14, %v5776_v24 }
 0x404   : > { %2513 = vadd.xlane.f32.xlu1 %v2512_v50  ;;  %2516 = vadd.xlane.f32.xlu0 %v2515_v30 }
 0x415   : > { %2547 = vperm.xlu1 %4181, %v2357_v46  }
 0x471   : > { %v2457_v62 = vpop.xlane.xlu1 %2456  ;;  %v2447_v33 = vpop.xlane.xlu0 %2446 }
 0x472   : > { %v2459_v3 = vadd.f32 %v2457_v62, %v2447_v33 }
 0x475   : > { %v2454_v34 = vpop.xlane.xlu1 %2453  ;;  %v2467_v63 = vpop.xlane.xlu0 %2466 }
 0x476   : > { %v2469_v8 = vadd.f32 %v2467_v63, %v2459_v3 }
 0x479   : > { %v2464_v12 = vpop.xlane.xlu1 %2463  ;;  %v2477_v58 = vpop.xlane.xlu0 %2476 }
 0x47a   : > { %v2479_v59 = vadd.f32 %v2477_v58, %v2469_v8 }
 0x47d   : > { %v2474_v51 = vpop.xlane.xlu1 %2473  ;;  %v2487_v37 = vpop.xlane.xlu0 %2486 }
 0x47e   : > { %v2489_v23 = vadd.f32 %v2487_v37, %v2479_v59 }
 0x481   : > { %v2484_v39 = vpop.xlane.xlu1 %2483  ;;  %v2444_v52 = vpop.xlane.xlu0 %2443 }
 0x482   : > { %v2458_v7 = vadd.f32 %v2454_v34, %v2444_v52 }
 0x484   : > { %v2468_v4 = vadd.f32 %v2464_v12, %v2458_v7 }
 0x485   : > { %v2494_v0 = vpop.xlane.xlu1 %2493  ;;  %v2497_v22 = vpop.xlane.xlu0 %2496 }
 0x486   : > { %v2478_v25 = vadd.f32 %v2474_v51, %v2468_v4  ;;  %v2499_v26 = vadd.f32 %v2497_v22, %v2489_v23  ;;  %v5825_v23 = vld [vmem:[%s6140_s10 + $0x8] sm:$0xff] }
 0x488   : > { %v2488_v53 = vadd.f32 %v2484_v39, %v2478_v25 }
 0x489   : > { %v2504_v16 = vpop.xlane.xlu1 %2503  ;;  %v2507_v6 = vpop.xlane.xlu0 %2506 }
 0x48a   : > { %v2498_v45 = vadd.f32 %v2494_v0, %v2488_v53  ;;  %v2509_v40 = vadd.f32 %v2507_v6, %v2499_v26 }
 0x48c   : > { %v2508_v27 = vadd.f32 %v2504_v16, %v2498_v45 }
 0x48d   : > { %v2514_v35 = vpop.xlane.xlu1 %2513  ;;  %v2517_v10 = vpop.xlane.xlu0 %2516 }
 0x48e   : > { %v2518_v31 = vadd.f32 %v2514_v35, %v2508_v27  ;;  %v2519_v5 = vadd.f32 %v2517_v10, %v2509_v40 }
 0x490   : > { %v2520_v44 = vmul.f32 0.001953125, %v2518_v31  ;;  %v2521_v41 = vmul.f32 0.001953125, %v2519_v5 }
 0x491   : > { %v5782_v1 = vpop.permute.xlu1 %2547 }
 0x492   : > { %v2522_v56 = vadd.f32 1e-05, %v2520_v44  ;;  %v2523_v13 = vadd.f32 1e-05, %v2521_v41 }
 0x494   : > { %4182 = vrsqrt.f32 %v2522_v56 }
 0x495   : > { %4184 = vrsqrt.f32 %v2523_v13 }
 0x4a1   : > { %v4183_v38 = vpop.eup %4182 }
 0x4a2   : > { %v4185_v19 = vpop.eup %4184  ;;  %v2526_v11 = vmul.f32 %v4183_v38, %v2354_v28 }
 0x4a3   : > { %v2527_v21 = vmul.f32 %v4185_v19, %v2355_v36 }
 0x4a4   : > { %2530 = vperm.xlu1 %4181, %v2526_v11  }
 0x4a5   : > { %2535 = vperm.xlu0 %4180, %v2527_v21  }
 0x4a8   : > { %2542 = vperm.xlu1 %4181, %v2356_v20  }
 0x51f   : > { %v5784_v61 = vpop.permute.xlu1 %2530 }
 0x520   : > { %v5786_v15 = vpop.permute.xlu0 %2535  ;;  %v2538_v50 = vmul.f32 %v5784_v61, %v5715_v14  ;;  %v2558_v30 = vmul.f32 %v5784_v61, %v5679_v49  ;;  %v2568_v63 = vmul.f32 %v5784_v61, %v5691_v60  ;;  %v2578_v14 = vmul.f32 %v5784_v61, %v5703_v29 }
 0x521   : > { %v2539_v46 = vmul.f32 %v5786_v15, %v5669_v48  ;;  %v2559_v62 = vmul.f32 %v5786_v15, %v5666_v9  ;;  %v2569_v33 = vmul.f32 %v5786_v15, %v5672_v18  ;;  %v2579_v34 = vmul.f32 %v5786_v15, %v5684_v32 }
 0x522   : > { %v2589_v49 = vmul.f32 %v5786_v15, %v5696_v2  ;;  %v2599_v48 = vmul.f32 %v5786_v15, %v5719_v55  ;;  %v2588_v8 = vmul.f32 %v5784_v61, %v5712_v17  ;;  %v2598_v4 = vmul.f32 %v5784_v61, %v5727_v54 }
 0x523   : > { %v5808_v12 = vpop.permute.xlu1 %2542  ;;  %v2551_v9 = vadd.f32 %v5782_v1, %v2539_v46  ;;  %v2561_v18 = vadd.f32 %v2559_v62, %v5782_v1  ;;  %v2571_v32 = vadd.f32 %v2569_v33, %v5782_v1  ;;  %v2581_v58 = vadd.f32 %v2579_v34, %v5782_v1 }
 0x524   : > { %v2550_v60 = vadd.f32 %v5808_v12, %v2538_v50  ;;  %v2560_v29 = vadd.f32 %v2558_v30, %v5808_v12  ;;  %v2570_v51 = vadd.f32 %v2568_v63, %v5808_v12  ;;  %v2580_v2 = vadd.f32 %v2578_v14, %v5808_v12 }
 0x525   : > { %vm2553_vm15 = vcmp.ge.f32.partialorder %v2551_v9, 0.0  ;;  %v2555_v55 = vmul.f32 0.1, %v2551_v9  ;;  %vm2563_vm0 = vcmp.ge.f32.partialorder %v2561_v18, 0.0  ;;  %v2565_v37 = vmul.f32 0.1, %v2561_v18 }
 0x526   : > { %vm2552_vm1 = vcmp.ge.f32.partialorder %v2550_v60, 0.0  ;;  %v2554_v39 = vmul.f32 0.1, %v2550_v60  ;;  %vm2562_vm2 = vcmp.ge.f32.partialorder %v2560_v29, 0.0  ;;  %v2564_v52 = vmul.f32 0.1, %v2560_v29 }
 0x527   : > { %v2557_v3 = vsel %vm2553_vm15, %v2551_v9, %v2555_v55  ;;  %v2567_v7 = vsel %vm2563_vm0, %v2561_v18, %v2565_v37  ;;  %v2575_v59 = vmul.f32 0.1, %v2571_v32  ;;  %v2585_v25 = vmul.f32 0.1, %v2581_v58 }
 0x528   : > { %4073 = vmatprep.subr.mxu0 %v2557_v3  ;;  %4080 = vmatprep.subr.mxu1 %v2567_v7  ;;  %v2556_v0 = vsel %vm2552_vm1, %v2550_v60, %v2554_v39  ;;  %v2566_v22 = vsel %vm2562_vm2, %v2560_v29, %v2564_v52  ;;  %vm2573_vm3 = vcmp.ge.f32.partialorder %v2571_v32, 0.0  ;;  %vm2583_vm4 = vcmp.ge.f32.partialorder %v2581_v58, 0.0 }
 0x529   : > { %4074 = vmatpush3.msra.mxu0 %v2557_v3  ;;  %4081 = vmatpush3.msra.mxu1 %v2567_v7  ;;  %vm2572_vm6 = vcmp.ge.f32.partialorder %v2570_v51, 0.0  ;;  %v2574_v17 = vmul.f32 0.1, %v2570_v51  ;;  %vm2582_vm7 = vcmp.ge.f32.partialorder %v2580_v2, 0.0  ;;  %v2584_v54 = vmul.f32 0.1, %v2580_v2 }
 0x52a   : > { %4075 = vmatprep.subr.mxu0 %v2556_v0  ;;  %4082 = vmatprep.subr.mxu1 %v2566_v22  ;;  %v2591_v53 = vadd.f32 %v2589_v49, %v5782_v1  ;;  %v2601_v16 = vadd.f32 %v2599_v48, %v5782_v1  ;;  %v2590_v6 = vadd.f32 %v2588_v8, %v5808_v12 }
 0x52b   : > { %4076 = vmatpush3.msra.mxu0 %v2556_v0  ;;  %4083 = vmatpush3.msra.mxu1 %v2566_v22  ;;  %v2577_v45 = vsel %vm2573_vm3, %v2571_v32, %v2575_v59  ;;  %v2587_v26 = vsel %vm2583_vm4, %v2581_v58, %v2585_v25  ;;  %v2600_v27 = vadd.f32 %v2598_v4, %v5808_v12 }
 0x52c   : > { %4078 = vmatmul.mubr.msk.f32.vlgmr.msra.gmra.mxu0 %vm2630_vm14, %v5825_v23  ;;  %4085 = vmatmul.mubr.msk.f32.vlgmr.msra.gmra.mxu1 %vm2630_vm14, %v5825_v23  ;;  %v2576_v40 = vsel %vm2572_vm6, %v2570_v51, %v2574_v17  ;;  %v2586_v35 = vsel %vm2582_vm7, %v2580_v2, %v2584_v54  ;;  %v2595_v10 = vmul.f32 0.1, %v2591_v53  ;;  %vm2593_vm8 = vcmp.ge.f32.partialorder %v2591_v53, 0.0 }
 0x52d   : > { %4087 = vmatprep.subr.mxu0 %v2577_v45  ;;  %4094 = vmatprep.subr.mxu1 %v2587_v26  ;;  %v2605_v31 = vmul.f32 0.1, %v2601_v16  ;;  %v2609_v5 = vmul.f32 %v5786_v15, %v5732_v47  ;;  %v2619_v44 = vmul.f32 %v5786_v15, %v5751_v57  ;;  %vm2603_vm9 = vcmp.ge.f32.partialorder %v2601_v16, 0.0 }
 0x52e   : > { %4088 = vmatpush3.msra.mxu0 %v2577_v45  ;;  %4095 = vmatpush3.msra.mxu1 %v2587_v26  ;;  %v2594_v41 = vmul.f32 0.1, %v2590_v6  ;;  %v2604_v56 = vmul.f32 0.1, %v2600_v27  ;;  %v2608_v36 = vmul.f32 %v5784_v61, %v5739_v43  ;;  %v2597_v47 = vsel %vm2593_vm8, %v2591_v53, %v2595_v10 }
 0x52f   : > { %4089 = vmatprep.subr.mxu0 %v2576_v40  ;;  %4096 = vmatprep.subr.mxu1 %v2586_v35  ;;  %v2611_v13 = vadd.f32 %v2609_v5, %v5782_v1  ;;  %v2621_v28 = vadd.f32 %v2619_v44, %v5782_v1  ;;  %vm2592_vm10 = vcmp.ge.f32.partialorder %v2590_v6, 0.0  ;;  %vm2602_vm11 = vcmp.ge.f32.partialorder %v2600_v27, 0.0 }
 0x530   : > { %4090 = vmatpush3.msra.mxu0 %v2576_v40  ;;  %4091 = vmatprep.mubr.msk.f32.mxu0 %vm2630_vm14, %v5776_v24  ;;  %v2618_v57 = vmul.f32 %v5784_v61, %v5748_v42  ;;  %v2607_v38 = vsel %vm2603_vm9, %v2601_v16, %v2605_v31  ;;  %v2610_v19 = vadd.f32 %v2608_v36, %v5808_v12 }
 0x531   : > { %4097 = vmatpush3.msra.mxu1 %v2586_v35  ;;  %4092 = vmatmul.mubr.msk.f32.vlgmr.msra.gmra.mxu0 %vm2630_vm14, %v5825_v23  ;;  %v2615_v43 = vmul.f32 0.1, %v2611_v13  ;;  %v2625_v11 = vmul.f32 0.1, %v2621_v28  ;;  %v2596_v20 = vsel %vm2592_vm10, %v2590_v6, %v2594_v41  ;;  %v2606_v42 = vsel %vm2602_vm11, %v2600_v27, %v2604_v56 }
 0x532   : > { %4098 = vmatprep.mubr.msk.f32.mxu1 %vm2630_vm14, %v5776_v24  ;;  %4101 = vmatprep.subr.mxu0 %v2597_v47  ;;  %v2620_v21 = vadd.f32 %v2618_v57, %v5808_v12  ;;  %vm2613_vm12 = vcmp.ge.f32.partialorder %v2611_v13, 0.0  ;;  %vm2623_vm13 = vcmp.ge.f32.partialorder %v2621_v28, 0.0  ;;  %v2614_v1 = vmul.f32 0.1, %v2610_v19 }
 0x533   : > { %4108 = vmatprep.subr.mxu1 %v2607_v38  ;;  %4099 = vmatmul.mubr.msk.f32.vlgmr.msra.gmra.mxu1 %vm2630_vm14, %v5825_v23  ;;  %v2617_v15 = vsel %vm2613_vm12, %v2611_v13, %v2615_v43  ;;  %v2627_v50 = vsel %vm2623_vm13, %v2621_v28, %v2625_v11  ;;  %vm2612_vm15 = vcmp.ge.f32.partialorder %v2610_v19, 0.0 }
 0x534   : > { %4102 = vmatpush3.msra.mxu0 %v2597_v47  ;;  %4109 = vmatpush3.msra.mxu1 %v2607_v38  ;;  %v2624_v61 = vmul.f32 0.1, %v2620_v21  ;;  %vm2622_vm0 = vcmp.ge.f32.partialorder %v2620_v21, 0.0  ;;  %v2616_v30 = vsel %vm2612_vm15, %v2610_v19, %v2614_v1 }
 0x535   : > { %4103 = vmatprep.subr.mxu0 %v2596_v20  ;;  %4110 = vmatprep.subr.mxu1 %v2606_v42 }
 0x536   : > { %4104 = vmatpush3.msra.mxu0 %v2596_v20  ;;  %4111 = vmatpush3.msra.mxu1 %v2606_v42  ;;  %v2626_v46 = vsel %vm2622_vm0, %v2620_v21, %v2624_v61 }
 0x537   : > { %4105 = vmatprep.mubr.msk.f32.mxu0 %vm2630_vm14, %v5776_v24  ;;  %4112 = vmatprep.mubr.msk.f32.mxu1 %vm2630_vm14, %v5776_v24 }
 0x538   : > { %4115 = vmatprep.subr.mxu0 %v2617_v15  ;;  %4122 = vmatprep.subr.mxu1 %v2627_v50 }
 0x539   : > { %4106 = vmatmul.mubr.msk.f32.vlgmr.msra.gmra.mxu0 %vm2630_vm14, %v5825_v23  ;;  %4113 = vmatmul.mubr.msk.f32.vlgmr.msra.gmra.mxu1 %vm2630_vm14, %v5825_v23 }
 0x53a   : > { %4116 = vmatpush3.msra.mxu0 %v2617_v15  ;;  %4123 = vmatpush3.msra.mxu1 %v2627_v50 }
 0x53b   : > { %4117 = vmatprep.subr.mxu0 %v2616_v30  ;;  %4124 = vmatprep.subr.mxu1 %v2626_v46 }
 0x53c   : > { %4118 = vmatpush3.msra.mxu0 %v2616_v30  ;;  %4125 = vmatpush3.msra.mxu1 %v2626_v46 }
 0x53d   : > { %4119 = vmatprep.mubr.msk.f32.mxu0 %vm2630_vm14, %v5776_v24  ;;  %4126 = vmatprep.mubr.msk.f32.mxu1 %vm2630_vm14, %v5776_v24 }
 0x53e   : > { %4120 = vmatmul.mubr.msk.f32.vlgmr.msra.gmra.mxu0 %vm2630_vm14, %v5825_v23  ;;  %4127 = vmatmul.mubr.msk.f32.vlgmr.msra.gmra.mxu1 %vm2630_vm14, %v5825_v23 }
 0x5ec   : > { %v5874_v62 = vpop.f32.mrf.mxu0  ;;  %v5876_v33 = vpop.f32.mrf.mxu1 }
 0x5ed   : > { %v3252_v34 = vsel %vm1099_vm5, %v5876_v33, 0.0  ;;  %v3244_v63 = vsel %vm1099_vm5, %v5874_v62, 0.0 }
 0x5ee   : > { %3253 = vadd.xlane.f32.xlu1 %v3252_v34  ;;  %3245 = vadd.xlane.f32.xlu0 %v3244_v63  ;;  %v5882_v14 = vpop.f32.mrf.mxu0  ;;  %v5884_v24 = vpop.f32.mrf.mxu1 }
 0x5ef   : > { %v3241_v48 = vsel %vm1099_vm5, %v5882_v14, 0.0  ;;  %v3249_v32 = vsel %vm1099_vm5, %v5884_v24, 0.0 }
 0x5f1   : > { %v5886_v49 = vpop.f32.mrf.mxu0 }
 0x5f2   : > { %3242 = vadd.xlane.f32.xlu1 %v3241_v48  ;;  %v3260_v12 = vsel %vm1099_vm5, %v5886_v49, 0.0 }
 0x5f3   : > { %3261 = vadd.xlane.f32.xlu0 %v3260_v12  ;;  %v5892_v9 = vpop.f32.mrf.mxu1  ;;  %v5898_v58 = vpop.f32.mrf.mxu0 }
 0x5f4   : > { %v3268_v18 = vsel %vm1099_vm5, %v5892_v9, 0.0  ;;  %v3257_v51 = vsel %vm1099_vm5, %v5898_v58, 0.0 }
 0x5f5   : > { %v5900_v60 = vpop.f32.mrf.mxu1 }
 0x5f6   : > { %3250 = vadd.xlane.f32.xlu1 %v3249_v32  ;;  %v3265_v52 = vsel %vm1099_vm5, %v5900_v60, 0.0 }
 0x5f7   : > { %3269 = vadd.xlane.f32.xlu0 %v3268_v18 }
 0x5f9   : > { %v5902_v29 = vpop.f32.mrf.mxu0  ;;  %v5906_v2 = vpop.f32.mrf.mxu1 }
 0x5fa   : > { %3258 = vadd.xlane.f32.xlu1 %v3257_v51  ;;  %v3276_v55 = vsel %vm1099_vm5, %v5902_v29, 0.0  ;;  %v3284_v39 = vsel %vm1099_vm5, %v5906_v2, 0.0 }
 0x5fb   : > { %3277 = vadd.xlane.f32.xlu0 %v3276_v55  ;;  %v5910_v37 = vpop.f32.mrf.mxu0  ;;  %v5916_v3 = vpop.f32.mrf.mxu1 }
 0x5fc   : > { %v3273_v4 = vsel %vm1099_vm5, %v5910_v37, 0.0  ;;  %v3281_v59 = vsel %vm1099_vm5, %v5916_v3, 0.0 }
 0x5fe   : > { %3266 = vadd.xlane.f32.xlu1 %v3265_v52  ;;  %v5918_v7 = vpop.f32.mrf.mxu0  ;;  %v5924_v0 = vpop.f32.mrf.mxu1 }
 0x5ff   : > { %3285 = vadd.xlane.f32.xlu0 %v3284_v39  ;;  %v3292_v8 = vsel %vm1099_vm5, %v5918_v7, 0.0  ;;  %v3300_v22 = vsel %vm1099_vm5, %v5924_v0, 0.0 }
 0x600   : > { %v5930_v25 = vpop.f32.mrf.mxu0  ;;  %v5934_v17 = vpop.f32.mrf.mxu1 }
 0x601   : > { %v3289_v23 = vsel %vm1099_vm5, %v5930_v25, 0.0  ;;  %v3297_v54 = vsel %vm1099_vm5, %v5934_v17, 0.0 }
 0x602   : > { %3274 = vadd.xlane.f32.xlu1 %v3273_v4 }
 0x603   : > { %3293 = vadd.xlane.f32.xlu0 %v3292_v8 }
 0x606   : > { %3282 = vadd.xlane.f32.xlu1 %v3281_v59 }
 0x607   : > { %3301 = vadd.xlane.f32.xlu0 %v3300_v22 }
 0x60a   : > { %3290 = vadd.xlane.f32.xlu1 %v3289_v23 }
 0x60e   : > { %3298 = vadd.xlane.f32.xlu1 %v3297_v54 }
 0x677   : > { %v3254_v53 = vpop.xlane.xlu1 %3253  ;;  %v3246_v16 = vpop.xlane.xlu0 %3245 }
 0x678   : > { %v3256_v10 = vadd.f32 %v3254_v53, %v3246_v16 }
 0x67b   : > { %v3243_v6 = vpop.xlane.xlu1 %3242 }
 0x67c   : > { %v3262_v45 = vpop.xlane.xlu0 %3261 }
 0x67d   : > { %v3264_v31 = vadd.f32 %v3262_v45, %v3256_v10 }
 0x67f   : > { %v3251_v26 = vpop.xlane.xlu1 %3250 }
 0x680   : > { %v3270_v27 = vpop.xlane.xlu0 %3269  ;;  %v3255_v28 = vadd.f32 %v3251_v26, %v3243_v6 }
 0x681   : > { %v3272_v41 = vadd.f32 %v3270_v27, %v3264_v31 }
 0x683   : > { %v3259_v40 = vpop.xlane.xlu1 %3258 }
 0x684   : > { %v3278_v35 = vpop.xlane.xlu0 %3277  ;;  %v3263_v57 = vadd.f32 %v3259_v40, %v3255_v28 }
 0x685   : > { %v3280_v56 = vadd.f32 %v3278_v35, %v3272_v41 }
 0x687   : > { %v3267_v5 = vpop.xlane.xlu1 %3266 }
 0x688   : > { %v3286_v44 = vpop.xlane.xlu0 %3285  ;;  %v3271_v43 = vadd.f32 %v3267_v5, %v3263_v57 }
 0x689   : > { %v3288_v47 = vadd.f32 %v3286_v44, %v3280_v56 }
 0x68b   : > { %v3275_v13 = vpop.xlane.xlu1 %3274 }
 0x68c   : > { %v3294_v36 = vpop.xlane.xlu0 %3293  ;;  %v3279_v20 = vadd.f32 %v3275_v13, %v3271_v43 }
 0x68d   : > { %v3296_v38 = vadd.f32 %v3294_v36, %v3288_v47  ;;  %v3239_v47 = vld [vmem:[%s6142_s12] sm:$0xff] }
 0x68f   : > { %v3283_v19 = vpop.xlane.xlu1 %3282 }
 0x690   : > { %v3302_v11 = vpop.xlane.xlu0 %3301  ;;  %v3287_v61 = vadd.f32 %v3283_v19, %v3279_v20 }
 0x691   : > { %v3304_v21 = vadd.f32 %v3302_v11, %v3296_v38 }
 0x693   : > { %v3306_v42 = vmul.f32 0.001953125, %v3304_v21  ;;  %v3291_v1 = vpop.xlane.xlu1 %3290 }
 0x694   : > { %v3295_v30 = vadd.f32 %v3291_v1, %v3287_v61 }
 0x695   : > { %v5939_v15 = vsub.f32 %v5874_v62, %v3306_v42  ;;  %v5942_v50 = vsub.f32 %v5876_v33, %v3306_v42  ;;  %v5950_v18 = vsub.f32 %v5886_v49, %v3306_v42  ;;  %v5962_v39 = vsub.f32 %v5892_v9, %v3306_v42 }
 0x696   : > { %v5976_v9 = vsub.f32 %v5902_v29, %v3306_v42  ;;  %v5988_v53 = vsub.f32 %v5906_v2, %v3306_v42  ;;  %v6000_v26 = vsub.f32 %v5918_v7, %v3306_v42  ;;  %v6012_v10 = vsub.f32 %v5924_v0, %v3306_v42 }
 0x697   : > { %v3299_v46 = vpop.xlane.xlu1 %3298  ;;  %v3324_v34 = vmul.f32 %v5939_v15, %v5939_v15  ;;  %v3334_v12 = vmul.f32 %v5942_v50, %v5942_v50  ;;  %v3344_v55 = vmul.f32 %v5950_v18, %v5950_v18  ;;  %v3354_v4 = vmul.f32 %v5962_v39, %v5962_v39 }
 0x698   : > { %v3303_v63 = vadd.f32 %v3299_v46, %v3295_v30  ;;  %v3364_v54 = vmul.f32 %v5976_v9, %v5976_v9  ;;  %v3374_v45 = vmul.f32 %v5988_v53, %v5988_v53  ;;  %v3384_v35 = vmul.f32 %v6000_v26, %v6000_v26 }
 0x699   : > { %v3328_v48 = vsel %vm1099_vm5, %v3324_v34, 0.0  ;;  %v3338_v51 = vsel %vm1099_vm5, %v3334_v12, 0.0  ;;  %v3348_v8 = vsel %vm1099_vm5, %v3344_v55, 0.0  ;;  %v3394_v44 = vmul.f32 %v6012_v10, %v6012_v10 }
 0x69a   : > { %v3305_v32 = vmul.f32 0.001953125, %v3303_v63  ;;  %3329 = vadd.xlane.f32.xlu0 %v3328_v48 }
 0x69b   : > { %v3398_v13 = vsel %vm1099_vm5, %v3394_v44, 0.0  ;;  %v3240_v44 = vld [vmem:[%s6142_s12 + $0x8] sm:$0xff] }
 0x69c   : > { %v5953_v62 = vsub.f32 %v5882_v14, %v3305_v32  ;;  %v5956_v33 = vsub.f32 %v5884_v24, %v3305_v32  ;;  %v5970_v24 = vsub.f32 %v5898_v58, %v3305_v32  ;;  %v5982_v23 = vsub.f32 %v5900_v60, %v3305_v32 }
 0x69d   : > { %v3358_v58 = vsel %vm1099_vm5, %v3354_v4, 0.0  ;;  %v5994_v6 = vsub.f32 %v5910_v37, %v3305_v32  ;;  %v3368_v60 = vsel %vm1099_vm5, %v3364_v54, 0.0  ;;  %v6006_v40 = vsub.f32 %v5916_v3, %v3305_v32 }
 0x69e   : > { %3339 = vadd.xlane.f32.xlu0 %v3338_v51  ;;  %v3323_v49 = vmul.f32 %v5953_v62, %v5953_v62  ;;  %v3333_v14 = vmul.f32 %v5956_v33, %v5956_v33  ;;  %v3343_v59 = vmul.f32 %v5970_v24, %v5970_v24  ;;  %v3353_v16 = vmul.f32 %v5982_v23, %v5982_v23 }
 0x69f   : > { %v3363_v27 = vmul.f32 %v5994_v6, %v5994_v6  ;;  %v3378_v37 = vsel %vm1099_vm5, %v3374_v45, 0.0  ;;  %v3373_v31 = vmul.f32 %v6006_v40, %v6006_v40  ;;  %v6018_v5 = vsub.f32 %v5930_v25, %v3305_v32 }
 0x6a0   : > { %v3325_v52 = vsel %vm1099_vm5, %v3323_v49, 0.0  ;;  %v3335_v22 = vsel %vm1099_vm5, %v3333_v14, 0.0  ;;  %v3345_v29 = vsel %vm1099_vm5, %v3343_v59, 0.0  ;;  %v3355_v2 = vsel %vm1099_vm5, %v3353_v16, 0.0 }
 0x6a1   : > { %3326 = vadd.xlane.f32.xlu1 %v3325_v52  ;;  %v3365_v7 = vsel %vm1099_vm5, %v3363_v27, 0.0  ;;  %v3388_v3 = vsel %vm1099_vm5, %v3384_v35, 0.0  ;;  %v3375_v41 = vsel %vm1099_vm5, %v3373_v31, 0.0  ;;  %v3383_v0 = vmul.f32 %v6018_v5, %v6018_v5  ;;  %v3238_v27 = vld [vmem:[%s6141_s11 + $0x8] sm:$0xff] }
 0x6a2   : > { %3349 = vadd.xlane.f32.xlu0 %v3348_v8  ;;  %v6027_v56 = vsub.f32 %v5934_v17, %v3305_v32 }
 0x6a3   : > { %v3385_v25 = vsel %vm1099_vm5, %v3383_v0, 0.0 }
 0x6a4   : > { %v3393_v28 = vmul.f32 %v6027_v56, %v6027_v56 }
 0x6a5   : > { %3336 = vadd.xlane.f32.xlu1 %v3335_v22 }
 0x6a6   : > { %3359 = vadd.xlane.f32.xlu0 %v3358_v58  ;;  %v3395_v36 = vsel %vm1099_vm5, %v3393_v28, 0.0 }
 0x6a9   : > { %3346 = vadd.xlane.f32.xlu1 %v3345_v29 }
 0x6aa   : > { %3369 = vadd.xlane.f32.xlu0 %v3368_v60 }
 0x6ad   : > { %3356 = vadd.xlane.f32.xlu1 %v3355_v2 }
 0x6ae   : > { %3379 = vadd.xlane.f32.xlu0 %v3378_v37 }
 0x6b1   : > { %3366 = vadd.xlane.f32.xlu1 %v3365_v7  ;;  %v3237_v7 = vld [vmem:[%s6141_s11] sm:$0xff] }
 0x6b2   : > { %3389 = vadd.xlane.f32.xlu0 %v3388_v3 }
 0x6b5   : > { %3376 = vadd.xlane.f32.xlu1 %v3375_v41 }
 0x6b6   : > { %3399 = vadd.xlane.f32.xlu0 %v3398_v13 }
 0x6b9   : > { %3386 = vadd.xlane.f32.xlu1 %v3385_v25 }
 0x6bd   : > { %3396 = vadd.xlane.f32.xlu1 %v3395_v36 }
 0x6ce   : > { %3425 = vperm.xlu1 %4181, %v3239_v47  }
 0x723   : > { %v3330_v17 = vpop.xlane.xlu0 %3329 }
 0x727   : > { %v3340_v57 = vpop.xlane.xlu0 %3339 }
 0x728   : > { %v3342_v42 = vadd.f32 %v3340_v57, %v3330_v17 }
 0x72a   : > { %v3327_v38 = vpop.xlane.xlu1 %3326 }
 0x72b   : > { %v3350_v19 = vpop.xlane.xlu0 %3349 }
 0x72c   : > { %v3352_v1 = vadd.f32 %v3350_v19, %v3342_v42 }
 0x72e   : > { %v3337_v43 = vpop.xlane.xlu1 %3336 }
 0x72f   : > { %v3360_v11 = vpop.xlane.xlu0 %3359  ;;  %v3341_v48 = vadd.f32 %v3337_v43, %v3327_v38 }
 0x730   : > { %v3362_v46 = vadd.f32 %v3360_v11, %v3352_v1 }
 0x732   : > { %v3347_v21 = vpop.xlane.xlu1 %3346 }
 0x733   : > { %v3370_v20 = vpop.xlane.xlu0 %3369  ;;  %v3351_v51 = vadd.f32 %v3347_v21, %v3341_v48 }
 0x734   : > { %v3372_v34 = vadd.f32 %v3370_v20, %v3362_v46 }
 0x736   : > { %v3357_v61 = vpop.xlane.xlu1 %3356 }
 0x737   : > { %v3380_v30 = vpop.xlane.xlu0 %3379  ;;  %v3361_v52 = vadd.f32 %v3357_v61, %v3351_v51 }
 0x738   : > { %v3382_v32 = vadd.f32 %v3380_v30, %v3372_v34 }
 0x73a   : > { %v3367_v63 = vpop.xlane.xlu1 %3366 }
 0x73b   : > { %v3390_v12 = vpop.xlane.xlu0 %3389  ;;  %v3371_v4 = vadd.f32 %v3367_v63, %v3361_v52 }
 0x73c   : > { %v3392_v55 = vadd.f32 %v3390_v12, %v3382_v32 }
 0x73e   : > { %v3377_v49 = vpop.xlane.xlu1 %3376 }
 0x73f   : > { %v3400_v14 = vpop.xlane.xlu0 %3399  ;;  %v3381_v58 = vadd.f32 %v3377_v49, %v3371_v4 }
 0x740   : > { %v3402_v8 = vadd.f32 %v3400_v14, %v3392_v55 }
 0x742   : > { %v3404_v22 = vmul.f32 0.001953125, %v3402_v8  ;;  %v3387_v59 = vpop.xlane.xlu1 %3386 }
 0x743   : > { %v3391_v29 = vadd.f32 %v3387_v59, %v3381_v58 }
 0x744   : > { %v3406_v54 = vadd.f32 1e-05, %v3404_v22 }
 0x746   : > { %4186 = vrsqrt.f32 %v3406_v54  ;;  %v3397_v16 = vpop.xlane.xlu1 %3396 }
 0x747   : > { %v3401_v60 = vadd.f32 %v3397_v16, %v3391_v29 }
 0x749   : > { %v3403_v45 = vmul.f32 0.001953125, %v3401_v60 }
 0x74a   : > { %v6046_v41 = vpop.permute.xlu1 %3425 }
 0x74b   : > { %v3405_v2 = vadd.f32 1e-05, %v3403_v45 }
 0x74d   : > { %4188 = vrsqrt.f32 %v3405_v2 }
 0x753   : > { %v4187_v37 = vpop.eup %4186 }
 0x754   : > { %v3410_v35 = vmul.f32 %v4187_v37, %v3238_v27 }
 0x756   : > { %3418 = vperm.xlu0 %4180, %v3410_v35  }
 0x75a   : > { %v4189_v31 = vpop.eup %4188 }
 0x75b   : > { %v3409_v3 = vmul.f32 %v4189_v31, %v3237_v7 }
 0x75d   : > { %3413 = vperm.xlu1 %4181, %v3409_v3  }
 0x761   : > { %3430 = vperm.xlu1 %4181, %v3240_v44  }
 0x7d1   : > { %v3419_v0 = vpop.permute.xlu0 %3418 }
 0x7d2   : > { %v3422_v36 = vmul.f32 %v3419_v0, %v5939_v15  ;;  %v3442_v17 = vmul.f32 %v3419_v0, %v5942_v50  ;;  %v3452_v57 = vmul.f32 %v3419_v0, %v5950_v18  ;;  %v3462_v38 = vmul.f32 %v3419_v0, %v5962_v39 }
 0x7d3   : > { %v3472_v11 = vmul.f32 %v3419_v0, %v5976_v9  ;;  %v3482_v21 = vmul.f32 %v3419_v0, %v5988_v53 }
 0x7d8   : > { %v3414_v13 = vpop.permute.xlu1 %3413 }
 0x7d9   : > { %v3421_v25 = vmul.f32 %v3414_v13, %v5953_v62  ;;  %v3441_v28 = vmul.f32 %v3414_v13, %v5956_v33  ;;  %v3492_v62 = vmul.f32 %v3419_v0, %v6000_v26  ;;  %v3502_v33 = vmul.f32 %v3419_v0, %v6012_v10 }
 0x7da   : > { %v3451_v15 = vmul.f32 %v3414_v13, %v5970_v24  ;;  %v3461_v20 = vmul.f32 %v3414_v13, %v5982_v23  ;;  %v3471_v50 = vmul.f32 %v3414_v13, %v5994_v6  ;;  %v3481_v18 = vmul.f32 %v3414_v13, %v6006_v40 }
 0x7db   : > { %v3433_v47 = vadd.f32 %v6046_v41, %v3421_v25  ;;  %v3443_v19 = vadd.f32 %v3441_v28, %v6046_v41  ;;  %v3491_v39 = vmul.f32 %v3414_v13, %v6018_v5  ;;  %v3501_v42 = vmul.f32 %v3414_v13, %v6027_v56 }
 0x7dc   : > { %v3431_v43 = vpop.permute.xlu1 %3430  ;;  %v3453_v40 = vadd.f32 %v3451_v15, %v6046_v41  ;;  %v3463_v46 = vadd.f32 %v3461_v20, %v6046_v41  ;;  %v3473_v56 = vadd.f32 %v3471_v50, %v6046_v41  ;;  %v3483_v55 = vadd.f32 %v3481_v18, %v6046_v41 }
 0x7dd   : > { %vm3435_vm14 = vcmp.ge.f32.partialorder %v3433_v47, 0.0  ;;  %v3434_v9 = vadd.f32 %v3431_v43, %v3422_v36  ;;  %v3437_v1 = vmul.f32 0.1, %v3433_v47  ;;  %vm3445_vm1 = vcmp.ge.f32.partialorder %v3443_v19, 0.0 }
 0x7de   : > { %v3444_v53 = vadd.f32 %v3442_v17, %v3431_v43  ;;  %v3454_v26 = vadd.f32 %v3452_v57, %v3431_v43  ;;  %v3447_v61 = vmul.f32 0.1, %v3443_v19  ;;  %v3464_v24 = vadd.f32 %v3462_v38, %v3431_v43 }
 0x7df   : > { %vm3436_vm2 = vcmp.ge.f32.partialorder %v3434_v9, 0.0  ;;  %v3438_v10 = vmul.f32 0.1, %v3434_v9  ;;  %v3474_v6 = vadd.f32 %v3472_v11, %v3431_v43  ;;  %v3484_v48 = vadd.f32 %v3482_v21, %v3431_v43 }
 0x7e0   : > { %vm3446_vm3 = vcmp.ge.f32.partialorder %v3444_v53, 0.0  ;;  %v3448_v23 = vmul.f32 0.1, %v3444_v53  ;;  %v3458_v30 = vmul.f32 0.1, %v3454_v26  ;;  %vm3456_vm4 = vcmp.ge.f32.partialorder %v3454_v26, 0.0 }
 0x7e1   : > { %v3440_v5 = vsel %vm3436_vm2, %v3434_v9, %v3438_v10  ;;  %v3468_v63 = vmul.f32 0.1, %v3464_v24  ;;  %v3439_v12 = vsel %vm3435_vm14, %v3433_v47, %v3437_v1  ;;  %v3449_v32 = vsel %vm3445_vm1, %v3443_v19, %v3447_v61 }
 0x7e2   : > { %v3450_v34 = vsel %vm3446_vm3, %v3444_v53, %v3448_v23  ;;  %vm3466_vm6 = vcmp.ge.f32.partialorder %v3464_v24, 0.0  ;;  %v3460_v49 = vsel %vm3456_vm4, %v3454_v26, %v3458_v30  ;;  %v3478_v52 = vmul.f32 0.1, %v3474_v6 }
 0x7e3   : > { %v3512_v51 = vmax.f32 %v3440_v5, %v3450_v34  ;;  %v3494_v14 = vadd.f32 %v3492_v62, %v3431_v43  ;;  %vm3455_vm7 = vcmp.ge.f32.partialorder %v3453_v40, 0.0  ;;  %v3457_v8 = vmul.f32 0.1, %v3453_v40 }
 0x7e4   : > { %vm3476_vm8 = vcmp.ge.f32.partialorder %v3474_v6, 0.0  ;;  %v3511_v22 = vmax.f32 %v3439_v12, %v3449_v32  ;;  %v3470_v59 = vsel %vm3466_vm6, %v3464_v24, %v3468_v63  ;;  %v3488_v58 = vmul.f32 0.1, %v3484_v48 }
 0x7e5   : > { %v3514_v4 = vmax.f32 %v3512_v51, %v3460_v49  ;;  %v3504_v54 = vadd.f32 %v3502_v33, %v3431_v43  ;;  %v3467_v29 = vmul.f32 0.1, %v3463_v46  ;;  %v3493_v16 = vadd.f32 %v3491_v39, %v6046_v41 }
 0x7e6   : > { %vm3486_vm9 = vcmp.ge.f32.partialorder %v3484_v48, 0.0  ;;  %vm3465_vm10 = vcmp.ge.f32.partialorder %v3463_v46, 0.0  ;;  %v3480_v45 = vsel %vm3476_vm8, %v3474_v6, %v3478_v52  ;;  %v3498_v2 = vmul.f32 0.1, %v3494_v14 }
 0x7e7   : > { %v3516_v60 = vmax.f32 %v3514_v4, %v3470_v59  ;;  %v3503_v27 = vadd.f32 %v3501_v42, %v6046_v41  ;;  %v3459_v37 = vsel %vm3455_vm7, %v3453_v40, %v3457_v8  ;;  %v3477_v35 = vmul.f32 0.1, %v3473_v56 }
 0x7e8   : > { %vm3496_vm11 = vcmp.ge.f32.partialorder %v3494_v14, 0.0  ;;  %v3490_v31 = vsel %vm3486_vm9, %v3484_v48, %v3488_v58  ;;  %v3508_v3 = vmul.f32 0.1, %v3504_v54  ;;  %vm3475_vm12 = vcmp.ge.f32.partialorder %v3473_v56, 0.0 }
 0x7e9   : > { %v3518_v7 = vmax.f32 %v3516_v60, %v3480_v45  ;;  %v3513_v44 = vmax.f32 %v3511_v22, %v3459_v37  ;;  %v3469_v0 = vsel %vm3465_vm10, %v3463_v46, %v3467_v29  ;;  %v3487_v13 = vmul.f32 0.1, %v3483_v55 }
 0x7ea   : > { %vm3506_vm13 = vcmp.ge.f32.partialorder %v3504_v54, 0.0  ;;  %vm3485_vm15 = vcmp.ge.f32.partialorder %v3483_v55, 0.0  ;;  %v3500_v28 = vsel %vm3496_vm11, %v3494_v14, %v3498_v2  ;;  %v3479_v41 = vsel %vm3475_vm12, %v3473_v56, %v3477_v35 }
 0x7eb   : > { %v3520_v25 = vmax.f32 %v3518_v7, %v3490_v31  ;;  %v3515_v36 = vmax.f32 %v3513_v44, %v3469_v0  ;;  %v3497_v47 = vmul.f32 0.1, %v3493_v16  ;;  %vm3495_vm0 = vcmp.ge.f32.partialorder %v3493_v16, 0.0 }
 0x7ec   : > { %v3510_v57 = vsel %vm3506_vm13, %v3504_v54, %v3508_v3  ;;  %v3489_v19 = vsel %vm3485_vm15, %v3483_v55, %v3487_v13  ;;  %v3507_v43 = vmul.f32 0.1, %v3503_v27  ;;  %vm3505_vm14 = vcmp.ge.f32.partialorder %v3503_v27, 0.0 }
 0x7ed   : > { %v3522_v17 = vmax.f32 %v3520_v25, %v3500_v28  ;;  %v3517_v38 = vmax.f32 %v3515_v36, %v3479_v41  ;;  %v3499_v62 = vsel %vm3495_vm0, %v3493_v16, %v3497_v47 }
 0x7ee   : > { %v3509_v15 = vsel %vm3505_vm14, %v3503_v27, %v3507_v43 }
 0x7ef   : > { %v3524_v11 = vmax.f32 %v3522_v17, %v3510_v57  ;;  %v3519_v21 = vmax.f32 %v3517_v38, %v3489_v19 }
 0x7f1   : > { %3526 = vst.msk [vmem:[%s485_s1 + $0x8] sm:$0xff] %vm1099_vm5, %v3524_v11  ;;  %v3521_v33 = vmax.f32 %v3519_v21, %v3499_v62 }
 0x7f3   : > { %v3523_v20 = vmax.f32 %v3521_v33, %v3509_v15 }
 0x7f5   : > { %3525 = vst.msk [vmem:[%s485_s1] sm:$0xff] %vm1099_vm5, %v3523_v20 }
 0x7f6   : > { %4203 = shalt.err (!%p4200_p3)
}
 0x7f7   : > { %s4204_s22 = scalar_lea.hbm %s6083_s24, 256  ;;  %s4208_s23 = scalar_lea.hbm %s6143_s13, 512 }
 0x7f8   : > { %p4205_p4 = scmp.ne.s32.totalorder %s6083_s24, %s4204_s22  ;;  %p4209_p9 = scmp.lt.s32.totalorder %s6083_s24, %s6143_s13 }
 0x7f9   : > { %p4210_p10 = scmp.lt.s32.totalorder %s4208_s23, %s4204_s22 }
 0x7fa   : > { %p4206_p7 = pnand %p4205_p4, %p4367_p5 }
 0x7fb   : > { %p4211_p11 = por %p4210_p10, %p4209_p9 }
 0x7fc   : > { %p4207_p8 = pneg %p4206_p7 }
 0x7fe   : > { %p4212_p12 = pnand %p4211_p11, %p4207_p8 }
 0x800   : > { %4215 = shalt.err (!%p4212_p12)
}
 0x801   : > { %s4257_s20 = smov 128   ;;  %s4258_s16 = smov 8  }
 0x802   : > { %4129 = dma.vmem_to_hbm [thread:$0]  (%p4367_p5), %s6085_s17, 256, %s6083_s24, %s6090_s29, %s4257_s20, %s4257_s20, %s4258_s16  }
 0x803 PF: > { %p4135_p13 = scmp.ge.s32.totalorder %s4250_s28, 2  ;;  %s3556_s21 = sand.u32 1, %s4238_s25  }
 0x804   : > { %s3557_s22 = scalar_lea.sflag [#allocation3], %s3556_s21 }
 0x805   : > { %p4132_p0 = pnand %p4135_p13, %p4371_p6 }
 0x807   : > { %p4133_p1 = pneg %p4132_p0 }
 0x809   : > { %4233 = dma.done.wait (%p4133_p1), %s3557_s22, 256  }
 0x80a   : > { %4235 = vsyncadd (%p4133_p1), %s3557_s22, 4294967040  ;;  %s6151_s30 = sld [smem:[#allocation5_spill]]  ;;  %p23_p2 = scmp.ge.s32.totalorder %s4354_s14, 4  }
 0x80b   : > { %s6152_s25 = smov %s4242_s26  ;;  %s6153_s26 = smov %s4246_s27 }
 0x80c   : > { %s6155_s28 = smov %s4354_s14  ;;  %25 = sbr.rel (!%p23_p2) target bundleno = 6 (0x6), region = 119 }
 0x810   : > { %s6154_s27 = smov %s6151_s30 }
 0x811   :  { %3562 = vsyncpa [#allocation3], 1 }
 0x812   :  { %3564 = vsyncpa [#allocation3 + $0x1], 1 }

</bundles_post_ra>
